<compile_context>
chip_gen: v5e
topology: v5e:2x2
jax: 0.10.0
libtpu: 0.0.40
codegen_flags: <defaults>
</compile_context>

<pallas_src>
import functools

import jax
import jax.numpy as jnp
from jax.experimental import pallas as pl
from jax.experimental.pallas import tpu as pltpu

LEAKY_SLOPE = 0.01
LN_EPS = 1e-5

L_IN = 500   # input length
L1 = 250     # stage-1 conv output length
L2 = 125     # stage-2 conv output length
LP = 128     # lane-padded per-sample block length (125 -> 128)
C1 = 8       # stage-1 output channels
K = 3        # conv kernel size


# ----------------------------------------------------------------------------
# The fused kernel.  One grid step processes one block of BB samples for BOTH
# branches.
#
# Column layouts (per block):
#   stage 1:  N1 = 2*BB*LP columns, ordered [even positions | odd positions],
#             each slab sample-major / position-minor, positions padded 125->128.
#   stage 2:  N2 = BB*LP columns, sample-major / position-minor.
# Row layouts: [time real; time imag; freq real; freq imag] channel blocks.
# ----------------------------------------------------------------------------
def _fused_kernel(rhs1_ref, w1_ref, b1_ref, g1_ref, be1_ref,
                  w2_ref, b2_ref, g2_ref, be2_ref,
                  seg1_ref, seg1t_ref, seg2_ref, seg2t_ref,
                  wh_ref, bh_ref,
                  z2_ref, head_ref, *, BB, F, NC, HEAD_ROWS):
    N2 = BB * LP

    def ln_act(y, g, b, seg, segt, inv_count, cpg):
        """NaiveComplexLayerNorm + complex leaky-relu (segmented, per sample).

        y: (ngroups*cpg, N); each contiguous group of cpg rows (one
        branch/half) gets its own per-sample LayerNorm.  Per-sample sums and
        the broadcast back to columns are MXU matmuls with the 0/1 segment
        matrices `seg` (N, BB) / `segt` (BB, N).
        INVARIANT: seg/segt and gamma/beta are zero at lane-padded columns, so
        those columns come out exactly 0 (leaky_relu(0)=0).  The shifted-odd
        stage-2 tap and the pooling rely on this -- do not change the padding.
        """
        ngroups = y.shape[0] // cpg
        ch_sum = jnp.dot(y, seg, preferred_element_type=jnp.float32)        # (R, BB)
        ch_sq = jnp.dot(y * y, seg, preferred_element_type=jnp.float32)     # (R, BB)
        mus, rstds = [], []
        for gi in range(ngroups):
            s1 = jnp.sum(ch_sum[gi * cpg:(gi + 1) * cpg], axis=0, keepdims=True)
            s2 = jnp.sum(ch_sq[gi * cpg:(gi + 1) * cpg], axis=0, keepdims=True)
            mu = s1 * inv_count
            var = jnp.maximum(s2 * inv_count - mu * mu, 0.0)   # one-pass, clamped
            mus.append(mu)
            rstds.append(jax.lax.rsqrt(var + LN_EPS))
        stats = jnp.concatenate(mus + rstds, axis=0)                         # (2G, BB)
        stats_bc = jnp.dot(stats, segt, preferred_element_type=jnp.float32)  # (2G, N)
        outs = []
        for gi in range(ngroups):
            yh = y[gi * cpg:(gi + 1) * cpg]
            yn = ((yh - stats_bc[gi:gi + 1])
                  * stats_bc[ngroups + gi:ngroups + gi + 1]
                  * g[gi * cpg:(gi + 1) * cpg] + b[gi * cpg:(gi + 1) * cpg])
            outs.append(jnp.where(yn > 0, yn, LEAKY_SLOPE * yn))
        return jnp.concatenate(outs, axis=0)

    # ---- stage 1: both branches as ONE block-diagonal complex-conv matmul ----
    rhs1 = rhs1_ref[0]                                                       # (12, 2*N2)
    y1 = jnp.dot(w1_ref[...], rhs1, preferred_element_type=jnp.float32) + b1_ref[...]
    z1 = ln_act(y1, g1_ref[...], be1_ref[...], seg1_ref[...], seg1t_ref[...],
                1.0 / float(C1 * L1), C1)                                    # (32, 2*N2)

    # ---- in-kernel im2col for stage 2 (kernel 3, stride 2, pad 1) ----------
    even = z1[:, 0:N2]                       # stage-1 positions 2m
    odd = z1[:, N2:2 * N2]                   # stage-1 positions 2m+1
    sh_odd = z1[:, N2 - 1:2 * N2 - 1]        # positions 2m-1 (boundaries hit z1's
    #                                          zero-padded columns == conv zero pad)
    rhs2 = jnp.concatenate([sh_odd, even, odd], axis=0)                      # (96, N2)

    # ---- stage 2 ------------------------------------------------------------
    y2 = jnp.dot(w2_ref[...], rhs2, preferred_element_type=jnp.float32) + b2_ref[...]
    z2 = ln_act(y2, g2_ref[...], be2_ref[...], seg2_ref[...], seg2t_ref[...],
                1.0 / float(F * L2), F)                                      # (4F, N2)
    z2_ref[0] = z2                                                           # lane-dense store

    # ---- AdaptiveAvgPool1d(1) as one matmul (seg2 masks padded columns) -----
    pooled = jnp.dot(z2, seg2_ref[...], preferred_element_type=jnp.float32) * (1.0 / L2)
    pt = pooled[0:2 * F]
    pf = pooled[2 * F:4 * F]
    comb = 0.5 * (pt + pf)

    # ---- 3 complex classifier heads as ONE block-diagonal matmul + abs ------
    head_in = jnp.concatenate([pt, pf, comb], axis=0)                        # (6F, BB)
    r = jnp.dot(wh_ref[...], head_in, preferred_element_type=jnp.float32) + bh_ref[...]
    mags = []
    for h in range(3):
        lr = r[h * 2 * NC:h * 2 * NC + NC]
        li = r[h * 2 * NC + NC:(h + 1) * 2 * NC]
        mags.append(jnp.sqrt(lr * lr + li * li))
    tile = jnp.concatenate([comb] + mags, axis=0)                            # (2F+3NC, BB)
    pad_rows = HEAD_ROWS - (2 * F + 3 * NC)
    if pad_rows:
        tile = jnp.concatenate([tile, jnp.zeros((pad_rows, BB), jnp.float32)], axis=0)
    head_ref[0] = tile                                                       # single store


# ----------------------------------------------------------------------------
# Wrapper-side parameter packing.
# ----------------------------------------------------------------------------
def _blockdiag(blocks):
    rows = sum(b.shape[0] for b in blocks)
    cols = sum(b.shape[1] for b in blocks)
    out = jnp.zeros((rows, cols), jnp.float32)
    r = c = 0
    for b in blocks:
        out = out.at[r:r + b.shape[0], c:c + b.shape[1]].set(b)
        r += b.shape[0]
        c += b.shape[1]
    return out


def _fuse_cw(wr, wi):
    # apply_complex block weight  [[wr, -wi], [wi, wr]]
    return jnp.concatenate([jnp.concatenate([wr, -wi], axis=1),
                            jnp.concatenate([wi, wr], axis=1)], axis=0)


def _fold_bias(p):
    # apply_complex: real-output bias = br - bi, imag-output bias = br + bi
    return jnp.concatenate([p["br"] - p["bi"], p["br"] + p["bi"]])[:, None]


def _pack_stage1(pt, pf):
    w = _blockdiag([_fuse_cw(pt["wr"].reshape(C1, K), pt["wi"].reshape(C1, K)),
                    _fuse_cw(pf["wr"].reshape(C1, K), pf["wi"].reshape(C1, K))])  # (32,12)
    b = jnp.concatenate([_fold_bias(pt), _fold_bias(pf)], axis=0)                 # (32,1)
    return w, b


def _pack_stage2(pt, pf):
    # Column order matches rhs2 = [sh_odd; even; odd] (tap-major over z1 rows).
    blocks = []
    for k in range(K):
        bt = _fuse_cw(pt["wr"][:, :, k], pt["wi"][:, :, k])   # (2F, 2*C1)
        bf = _fuse_cw(pf["wr"][:, :, k], pf["wi"][:, :, k])
        blocks.append(_blockdiag([bt, bf]))                   # (4F, 4*C1)
    w = jnp.concatenate(blocks, axis=1)                       # (4F, 3*4*C1)
    b = jnp.concatenate([_fold_bias(pt), _fold_bias(pf)], axis=0)
    return w, b


def _pack_ln1(pt, pf, BB):
    # gamma/beta for stage 1 in the [even | odd] layout, replicated only to the
    # batch-block width BB (index_map returns block 0 every grid step).
    def expand(a):   # (C1, 250) -> (C1, 2*BB*LP); padded columns are 0
        ae = jnp.pad(a[:, 0::2], ((0, 0), (0, LP - L2)))
        ao = jnp.pad(a[:, 1::2], ((0, 0), (0, LP - L2)))
        return jnp.concatenate([jnp.tile(ae, (1, BB)), jnp.tile(ao, (1, BB))], axis=1)

    g = jnp.concatenate([expand(pt["gr"]), expand(pt["gi"]),
                         expand(pf["gr"]), expand(pf["gi"])], axis=0)
    be = jnp.concatenate([expand(pt["betar"]), expand(pt["betai"]),
                          expand(pf["betar"]), expand(pf["betai"])], axis=0)
    return g, be


def _pack_ln2(pt, pf, BB):
    def expand(a):   # (F, 125) -> (F, BB*LP); padded columns are 0
        return jnp.tile(jnp.pad(a, ((0, 0), (0, LP - L2))), (1, BB))

    g = jnp.concatenate([expand(pt["gr"]), expand(pt["gi"]),
                         expand(pf["gr"]), expand(pf["gi"])], axis=0)
    be = jnp.concatenate([expand(pt["betar"]), expand(pt["betai"]),
                          expand(pf["betar"]), expand(pf["betai"])], axis=0)
    return g, be


def _pack_heads(params):
    blocks, biases = [], []
    for key in ("cls_time", "cls_freq", "cls_combined"):
        p = params[key]
        blocks.append(_fuse_cw(p["wr"], p["wi"]))       # (2NC, 2F)
        biases.append(_fold_bias(p))
    return _blockdiag(blocks), jnp.concatenate(biases, axis=0)   # (6NC, 6F), (6NC, 1)


def _build_rhs1(xtr, xti, xfr, xfi, NB, BB):
    """Stage-1 conv taps (k=3, stride=2, pad=1), per block, [even|odd] layout."""
    def branch(xr, xi):
        def taps(x):
            xp = jnp.pad(x, ((0, 0), (1, 3)))            # conv zero padding
            rows = []
            for k in range(K):
                te = jnp.pad(xp[:, k::4][:, :L2], ((0, 0), (0, LP - L2)))      # l = 2m
                to = jnp.pad(xp[:, k + 2::4][:, :L2], ((0, 0), (0, LP - L2)))  # l = 2m+1
                te = te.reshape(NB, 1, BB * LP)
                to = to.reshape(NB, 1, BB * LP)
                rows.append(jnp.concatenate([te, to], axis=2))
            return jnp.concatenate(rows, axis=1)         # (NB, 3, 2*BB*LP)
        return jnp.concatenate([taps(xr), taps(xi)], axis=1)                  # (NB, 6, .)
    return jnp.concatenate([branch(xtr, xti), branch(xfr, xfi)], axis=1)      # (NB, 12, .)


def _build_seg(BB):
    pos = jnp.arange(BB * LP)
    ind = ((pos[:, None] // LP) == jnp.arange(BB)[None, :]) & \
          ((pos[:, None] % LP) < L2)
    seg2 = ind.astype(jnp.float32)                       # (BB*LP, BB)
    seg1 = jnp.concatenate([seg2, seg2], axis=0)         # (2*BB*LP, BB)
    return seg1, seg1.T, seg2, seg2.T


@functools.partial(jax.jit, static_argnames=("feature_dim", "num_classes", "block_batch"))
def forward(params, x_time_r, x_time_i, x_freq_r, x_freq_i,
            *, feature_dim=16, num_classes=3, block_batch=None):
    B = x_time_r.shape[0]
    F, NC = feature_dim, num_classes
    BB = block_batch if block_batch is not None else min(8, B)
    NB = -(-B // BB)
    Bp = NB * BB
    HEAD_ROWS = -(-(2 * F + 3 * NC) // 8) * 8

    def padb(x):
        return jnp.pad(x, ((0, Bp - B), (0, 0)))

    rhs1 = _build_rhs1(padb(x_time_r), padb(x_time_i),
                       padb(x_freq_r), padb(x_freq_i), NB, BB)

    w1, b1 = _pack_stage1(params["t1"], params["f1"])
    g1, be1 = _pack_ln1(params["t1"], params["f1"], BB)
    w2, b2 = _pack_stage2(params["t2"], params["f2"])
    g2, be2 = _pack_ln2(params["t2"], params["f2"], BB)
    wh, bh = _pack_heads(params)
    seg1, seg1t, seg2, seg2t = _build_seg(BB)

    N1 = 2 * BB * LP
    N2 = BB * LP

    def const_spec(shape):
        n = len(shape)
        return pl.BlockSpec(shape, lambda i, n=n: (0,) * n)

    kernel = functools.partial(_fused_kernel, BB=BB, F=F, NC=NC, HEAD_ROWS=HEAD_ROWS)
    consts = (w1, b1, g1, be1, w2, b2, g2, be2, seg1, seg1t, seg2, seg2t, wh, bh)
    z2_out, head_out = pl.pallas_call(
        kernel,
        grid=(NB,),
        in_specs=[pl.BlockSpec((1, 12, N1), lambda i: (i, 0, 0))]
                 + [const_spec(c.shape) for c in consts],
        out_specs=[pl.BlockSpec((1, 4 * F, N2), lambda i: (i, 0, 0)),
                   pl.BlockSpec((1, HEAD_ROWS, BB), lambda i: (i, 0, 0))],
        out_shape=[jax.ShapeDtypeStruct((NB, 4 * F, N2), jnp.float32),
                   jax.ShapeDtypeStruct((NB, HEAD_ROWS, BB), jnp.float32)],
        compiler_params=pltpu.CompilerParams(
            dimension_semantics=("parallel",),
            vmem_limit_bytes=32 * 1024 * 1024),
    )(rhs1, *consts)

    # ---- unpack lane-dense slabs --------------------------------------------
    z2 = z2_out.reshape(NB, 4 * F, BB, LP)[..., :L2]
    z2 = jnp.transpose(z2, (0, 2, 1, 3)).reshape(Bp, 4 * F, L2)[:B]
    zt_r, zt_i = z2[:, 0:F], z2[:, F:2 * F]
    zf_r, zf_i = z2[:, 2 * F:3 * F], z2[:, 3 * F:4 * F]

    head = jnp.transpose(head_out, (0, 2, 1)).reshape(Bp, HEAD_ROWS)[:B]
    feat_r, feat_i = head[:, 0:F], head[:, F:2 * F]
    logits = [head[:, 2 * F + h * NC: 2 * F + (h + 1) * NC] for h in range(3)]

    return logits, [(zt_r, zt_i), (zf_r, zf_i)], (feat_r, feat_i)


# ----------------------------------------------------------------------------
# Parameters (PyTorch layout) and a pure-JAX reference for validation.
# ----------------------------------------------------------------------------
def init_params(key, feature_dim=16, num_classes=3):
    keys = iter(jax.random.split(key, 64))

    def rnd(shape, scale=0.1):
        return scale * jax.random.normal(next(keys), shape, dtype=jnp.float32)

    params = {}
    for name, cin, cout, lout in [("t1", 1, 8, 250), ("t2", 8, feature_dim, 125),
                                  ("f1", 1, 8, 250), ("f2", 8, feature_dim, 125)]:
        params[name] = dict(
            wr=rnd((cout, cin, 3)), wi=rnd((cout, cin, 3)),
            br=rnd((cout,)), bi=rnd((cout,)),
            gr=1.0 + rnd((cout, lout), 0.05), betar=rnd((cout, lout), 0.05),
            gi=1.0 + rnd((cout, lout), 0.05), betai=rnd((cout, lout), 0.05),
        )
    for name in ("cls_time", "cls_freq", "cls_combined"):
        params[name] = dict(
            wr=rnd((num_classes, feature_dim)), wi=rnd((num_classes, feature_dim)),
            br=rnd((num_classes,)), bi=rnd((num_classes,)),
        )
    return params


def im2col_1d(x, kernel_size=3, stride=2, padding=1):
    B, C, L = x.shape
    xp = jnp.pad(x, ((0, 0), (0, 0), (padding, padding)))
    L_out = (L + 2 * padding - kernel_size) // stride + 1
    cols = jnp.stack(
        [xp[:, :, k:k + stride * L_out:stride] for k in range(kernel_size)],
        axis=2)
    return cols.reshape(B, C * kernel_size, L_out)


def forward_ref(params, x_time_r, x_time_i, x_freq_r, x_freq_i):
    def stage(p, xr, xi):
        cr = im2col_1d(xr)
        ci = im2col_1d(xi)
        cout = p["wr"].shape[0]
        wr = p["wr"].reshape(cout, -1)
        wi = p["wi"].reshape(cout, -1)
        br = (p["br"] - p["bi"])[None, :, None]
        bi = (p["br"] + p["bi"])[None, :, None]
        yr = jnp.einsum("ok,bkl->bol", wr, cr) - jnp.einsum("ok,bkl->bol", wi, ci) + br
        yi = jnp.einsum("ok,bkl->bol", wr, ci) + jnp.einsum("ok,bkl->bol", wi, cr) + bi

        def ln(y, g, b):
            mu = jnp.mean(y, axis=(1, 2), keepdims=True)
            var = jnp.mean((y - mu) ** 2, axis=(1, 2), keepdims=True)
            return (y - mu) / jnp.sqrt(var + LN_EPS) * g[None] + b[None]

        yr = ln(yr, p["gr"], p["betar"])
        yi = ln(yi, p["gi"], p["betai"])
        lrelu = lambda v: jnp.where(v > 0, v, LEAKY_SLOPE * v)
        return lrelu(yr), lrelu(yi)

    zt = stage(params["t1"], x_time_r[:, None, :], x_time_i[:, None, :])
    zt = stage(params["t2"], *zt)
    zf = stage(params["f1"], x_freq_r[:, None, :], x_freq_i[:, None, :])
    zf = stage(params["f2"], *zf)
    pt = (zt[0].mean(-1), zt[1].mean(-1))
    pf = (zf[0].mean(-1), zf[1].mean(-1))
    comb = (0.5 * pt[0] + 0.5 * pf[0], 0.5 * pt[1] + 0.5 * pf[1])

    def clin(p, x):
        xr, xi = x
        lr = xr @ p["wr"].T - xi @ p["wi"].T + (p["br"] - p["bi"])
        li = xr @ p["wi"].T + xi @ p["wr"].T + (p["br"] + p["bi"])
        return jnp.sqrt(lr * lr + li * li)

    logits = [clin(params["cls_time"], pt), clin(params["cls_freq"], pf),
              clin(params["cls_combined"], comb)]
    return logits, [zt, zf], comb


if __name__ == "__main__":
    F, NC = 16, 3
    key = jax.random.PRNGKey(0)
    params = init_params(jax.random.fold_in(key, 7), feature_dim=F, num_classes=NC)
    TOL = dict(atol=2e-4, rtol=2e-4)

    def check(B, block_batch=None):
        ks = jax.random.split(jax.random.fold_in(key, B), 4)
        xtr = jax.random.normal(ks[0], (B, L_IN), dtype=jnp.float32)
        xti = jax.random.normal(ks[1], (B, L_IN), dtype=jnp.float32)
        xfr = jax.random.normal(ks[2], (B, L_IN), dtype=jnp.float32)
        xfi = jax.random.normal(ks[3], (B, L_IN), dtype=jnp.float32)
        out = forward(params, xtr, xti, xfr, xfi,
                      feature_dim=F, num_classes=NC, block_batch=block_batch)
        jax.block_until_ready(out)
        logits, (zt, zf), feat = out
        logits_ref, (zt_ref, zf_ref), feat_ref = forward_ref(params, xtr, xti, xfr, xfi)
        for a, b in zip(logits, logits_ref):
            assert jnp.allclose(a, b, **TOL), "logits mismatch"
        assert jnp.allclose(zt[0], zt_ref[0], **TOL)
        assert jnp.allclose(zt[1], zt_ref[1], **TOL)
        assert jnp.allclose(zf[0], zf_ref[0], **TOL)
        assert jnp.allclose(zf[1], zf_ref[1], **TOL)
        assert jnp.allclose(feat[0], feat_ref[0], **TOL)
        assert jnp.allclose(feat[1], feat_ref[1], **TOL)

    check(2)                    # single batch block (BB = 2), grid = (1,)
    check(5, block_batch=2)     # multi-block "parallel" grid + batch padding path

    print("KERNEL_OK")
</pallas_src>

<mosaic_0001>
module attributes {stable_mosaic.version = 11 : i64} {
  func.func @_fused_kernel(%arg0: i32, %arg1: memref<1x12x512xf32, #tpu.memory_space<vmem>>, %arg2: memref<32x12xf32, #tpu.memory_space<vmem>>, %arg3: memref<32x1xf32, #tpu.memory_space<vmem>>, %arg4: memref<32x512xf32, #tpu.memory_space<vmem>>, %arg5: memref<32x512xf32, #tpu.memory_space<vmem>>, %arg6: memref<64x96xf32, #tpu.memory_space<vmem>>, %arg7: memref<64x1xf32, #tpu.memory_space<vmem>>, %arg8: memref<64x256xf32, #tpu.memory_space<vmem>>, %arg9: memref<64x256xf32, #tpu.memory_space<vmem>>, %arg10: memref<512x2xf32, #tpu.memory_space<vmem>>, %arg11: memref<2x512xf32, #tpu.memory_space<vmem>>, %arg12: memref<256x2xf32, #tpu.memory_space<vmem>>, %arg13: memref<2x256xf32, #tpu.memory_space<vmem>>, %arg14: memref<18x96xf32, #tpu.memory_space<vmem>>, %arg15: memref<18x1xf32, #tpu.memory_space<vmem>>, %arg16: memref<1x64x256xf32, #tpu.memory_space<vmem>>, %arg17: memref<1x48x2xf32, #tpu.memory_space<vmem>>) attributes {dimension_semantics = [#tpu.dimension_semantics<parallel>], iteration_bounds = array<i64: 1>, scalar_prefetch = 0 : i64, scratch_operands = 0 : i64, tpu.core_type = #tpu.core_type<tc>, window_params = [{transform_indices = @transform_0, window_bounds = array<i64: 1, 12, 512>}, {pipeline_mode = #tpu.pipeline_mode<synchronous>, transform_indices = @transform_1, window_bounds = array<i64: 32, 12>}, {pipeline_mode = #tpu.pipeline_mode<synchronous>, transform_indices = @transform_2, window_bounds = array<i64: 32, 1>}, {pipeline_mode = #tpu.pipeline_mode<synchronous>, transform_indices = @transform_3, window_bounds = array<i64: 32, 512>}, {pipeline_mode = #tpu.pipeline_mode<synchronous>, transform_indices = @transform_4, window_bounds = array<i64: 32, 512>}, {pipeline_mode = #tpu.pipeline_mode<synchronous>, transform_indices = @transform_5, window_bounds = array<i64: 64, 96>}, {pipeline_mode = #tpu.pipeline_mode<synchronous>, transform_indices = @transform_6, window_bounds = array<i64: 64, 1>}, {pipeline_mode = #tpu.pipeline_mode<synchronous>, transform_indices = @transform_7, window_bounds = array<i64: 64, 256>}, {pipeline_mode = #tpu.pipeline_mode<synchronous>, transform_indices = @transform_8, window_bounds = array<i64: 64, 256>}, {pipeline_mode = #tpu.pipeline_mode<synchronous>, transform_indices = @transform_9, window_bounds = array<i64: 512, 2>}, {pipeline_mode = #tpu.pipeline_mode<synchronous>, transform_indices = @transform_10, window_bounds = array<i64: 2, 512>}, {pipeline_mode = #tpu.pipeline_mode<synchronous>, transform_indices = @transform_11, window_bounds = array<i64: 256, 2>}, {pipeline_mode = #tpu.pipeline_mode<synchronous>, transform_indices = @transform_12, window_bounds = array<i64: 2, 256>}, {pipeline_mode = #tpu.pipeline_mode<synchronous>, transform_indices = @transform_13, window_bounds = array<i64: 18, 96>}, {pipeline_mode = #tpu.pipeline_mode<synchronous>, transform_indices = @transform_14, window_bounds = array<i64: 18, 1>}, {transform_indices = @transform_15, window_bounds = array<i64: 1, 64, 256>}, {transform_indices = @transform_16, window_bounds = array<i64: 1, 48, 2>}]} {
    %c0 = arith.constant 0 : index
    %c0_0 = arith.constant 0 : index
    %c0_1 = arith.constant 0 : index
    %0 = vector.load %arg1[%c0, %c0_0, %c0_1] : memref<1x12x512xf32, #tpu.memory_space<vmem>>, vector<1x12x512xf32>
    %1 = vector.shape_cast %0 : vector<1x12x512xf32> to vector<12x512xf32>
    %c0_2 = arith.constant 0 : index
    %c0_3 = arith.constant 0 : index
    %2 = vector.load %arg2[%c0_2, %c0_3] : memref<32x12xf32, #tpu.memory_space<vmem>>, vector<32x12xf32>
    %cst = arith.constant dense<0.000000e+00> : vector<32x512xf32>
    %3 = tpu.matmul %2, %1, %cst {dimension_numbers = #tpu.dot_dimension_numbers<[1], [0], [0], [1], [0, 0, 1, 1], [], []>} : vector<32x12xf32>, vector<12x512xf32>, vector<32x512xf32> -> vector<32x512xf32>
    %c0_4 = arith.constant 0 : index
    %c0_5 = arith.constant 0 : index
    %4 = vector.load %arg3[%c0_4, %c0_5] : memref<32x1xf32, #tpu.memory_space<vmem>>, vector<32x1xf32>
    %5 = vector.broadcast %4 : vector<32x1xf32> to vector<32x512xf32>
    %6 = arith.addf %3, %5 : vector<32x512xf32>
    %c0_6 = arith.constant 0 : index
    %c0_7 = arith.constant 0 : index
    %7 = vector.load %arg4[%c0_6, %c0_7] : memref<32x512xf32, #tpu.memory_space<vmem>>, vector<32x512xf32>
    %c0_8 = arith.constant 0 : index
    %c0_9 = arith.constant 0 : index
    %8 = vector.load %arg5[%c0_8, %c0_9] : memref<32x512xf32, #tpu.memory_space<vmem>>, vector<32x512xf32>
    %c0_10 = arith.constant 0 : index
    %c0_11 = arith.constant 0 : index
    %9 = vector.load %arg10[%c0_10, %c0_11] : memref<512x2xf32, #tpu.memory_space<vmem>>, vector<512x2xf32>
    %c0_12 = arith.constant 0 : index
    %c0_13 = arith.constant 0 : index
    %10 = vector.load %arg11[%c0_12, %c0_13] : memref<2x512xf32, #tpu.memory_space<vmem>>, vector<2x512xf32>
    %cst_14 = arith.constant dense<0.000000e+00> : vector<32x2xf32>
    %11 = tpu.matmul %6, %9, %cst_14 {dimension_numbers = #tpu.dot_dimension_numbers<[1], [0], [0], [1], [0, 0, 1, 1], [], []>} : vector<32x512xf32>, vector<512x2xf32>, vector<32x2xf32> -> vector<32x2xf32>
    %12 = arith.mulf %6, %6 : vector<32x512xf32>
    %cst_15 = arith.constant dense<0.000000e+00> : vector<32x2xf32>
    %13 = tpu.matmul %12, %9, %cst_15 {dimension_numbers = #tpu.dot_dimension_numbers<[1], [0], [0], [1], [0, 0, 1, 1], [], []>} : vector<32x512xf32>, vector<512x2xf32>, vector<32x2xf32> -> vector<32x2xf32>
    %14 = vector.extract_strided_slice %11 {offsets = [0, 0], sizes = [8, 2], strides = [1, 1]} : vector<32x2xf32> to vector<8x2xf32>
    %cst_16 = arith.constant dense<0.000000e+00> : vector<2xf32>
    %15 = vector.multi_reduction <add>, %14, %cst_16 [0] : vector<8x2xf32> to vector<2xf32>
    %16 = vector.shape_cast %15 : vector<2xf32> to vector<1x2xf32>
    %17 = vector.extract_strided_slice %13 {offsets = [0, 0], sizes = [8, 2], strides = [1, 1]} : vector<32x2xf32> to vector<8x2xf32>
    %cst_17 = arith.constant dense<0.000000e+00> : vector<2xf32>
    %18 = vector.multi_reduction <add>, %17, %cst_17 [0] : vector<8x2xf32> to vector<2xf32>
    %19 = vector.shape_cast %18 : vector<2xf32> to vector<1x2xf32>
    %cst_18 = arith.constant 5.000000e-04 : f32
    %20 = vector.broadcast %cst_18 : f32 to vector<1x2xf32>
    %21 = arith.mulf %16, %20 : vector<1x2xf32>
    %cst_19 = arith.constant 5.000000e-04 : f32
    %22 = vector.broadcast %cst_19 : f32 to vector<1x2xf32>
    %23 = arith.mulf %19, %22 : vector<1x2xf32>
    %24 = arith.mulf %21, %21 : vector<1x2xf32>
    %25 = arith.subf %23, %24 : vector<1x2xf32>
    %cst_20 = arith.constant 0.000000e+00 : f32
    %26 = vector.broadcast %cst_20 : f32 to vector<1x2xf32>
    %27 = arith.maximumf %25, %26 : vector<1x2xf32>
    %cst_21 = arith.constant 9.99999974E-6 : f32
    %28 = vector.broadcast %cst_21 : f32 to vector<1x2xf32>
    %29 = arith.addf %27, %28 : vector<1x2xf32>
    %30 = math.rsqrt %29 : vector<1x2xf32>
    %31 = vector.extract_strided_slice %11 {offsets = [8, 0], sizes = [8, 2], strides = [1, 1]} : vector<32x2xf32> to vector<8x2xf32>
    %cst_22 = arith.constant dense<0.000000e+00> : vector<2xf32>
    %32 = vector.multi_reduction <add>, %31, %cst_22 [0] : vector<8x2xf32> to vector<2xf32>
    %33 = vector.shape_cast %32 : vector<2xf32> to vector<1x2xf32>
    %34 = vector.extract_strided_slice %13 {offsets = [8, 0], sizes = [8, 2], strides = [1, 1]} : vector<32x2xf32> to vector<8x2xf32>
    %cst_23 = arith.constant dense<0.000000e+00> : vector<2xf32>
    %35 = vector.multi_reduction <add>, %34, %cst_23 [0] : vector<8x2xf32> to vector<2xf32>
    %36 = vector.shape_cast %35 : vector<2xf32> to vector<1x2xf32>
    %cst_24 = arith.constant 5.000000e-04 : f32
    %37 = vector.broadcast %cst_24 : f32 to vector<1x2xf32>
    %38 = arith.mulf %33, %37 : vector<1x2xf32>
    %cst_25 = arith.constant 5.000000e-04 : f32
    %39 = vector.broadcast %cst_25 : f32 to vector<1x2xf32>
    %40 = arith.mulf %36, %39 : vector<1x2xf32>
    %41 = arith.mulf %38, %38 : vector<1x2xf32>
    %42 = arith.subf %40, %41 : vector<1x2xf32>
    %cst_26 = arith.constant 0.000000e+00 : f32
    %43 = vector.broadcast %cst_26 : f32 to vector<1x2xf32>
    %44 = arith.maximumf %42, %43 : vector<1x2xf32>
    %cst_27 = arith.constant 9.99999974E-6 : f32
    %45 = vector.broadcast %cst_27 : f32 to vector<1x2xf32>
    %46 = arith.addf %44, %45 : vector<1x2xf32>
    %47 = math.rsqrt %46 : vector<1x2xf32>
    %48 = vector.extract_strided_slice %11 {offsets = [16, 0], sizes = [8, 2], strides = [1, 1]} : vector<32x2xf32> to vector<8x2xf32>
    %cst_28 = arith.constant dense<0.000000e+00> : vector<2xf32>
    %49 = vector.multi_reduction <add>, %48, %cst_28 [0] : vector<8x2xf32> to vector<2xf32>
    %50 = vector.shape_cast %49 : vector<2xf32> to vector<1x2xf32>
    %51 = vector.extract_strided_slice %13 {offsets = [16, 0], sizes = [8, 2], strides = [1, 1]} : vector<32x2xf32> to vector<8x2xf32>
    %cst_29 = arith.constant dense<0.000000e+00> : vector<2xf32>
    %52 = vector.multi_reduction <add>, %51, %cst_29 [0] : vector<8x2xf32> to vector<2xf32>
    %53 = vector.shape_cast %52 : vector<2xf32> to vector<1x2xf32>
    %cst_30 = arith.constant 5.000000e-04 : f32
    %54 = vector.broadcast %cst_30 : f32 to vector<1x2xf32>
    %55 = arith.mulf %50, %54 : vector<1x2xf32>
    %cst_31 = arith.constant 5.000000e-04 : f32
    %56 = vector.broadcast %cst_31 : f32 to vector<1x2xf32>
    %57 = arith.mulf %53, %56 : vector<1x2xf32>
    %58 = arith.mulf %55, %55 : vector<1x2xf32>
    %59 = arith.subf %57, %58 : vector<1x2xf32>
    %cst_32 = arith.constant 0.000000e+00 : f32
    %60 = vector.broadcast %cst_32 : f32 to vector<1x2xf32>
    %61 = arith.maximumf %59, %60 : vector<1x2xf32>
    %cst_33 = arith.constant 9.99999974E-6 : f32
    %62 = vector.broadcast %cst_33 : f32 to vector<1x2xf32>
    %63 = arith.addf %61, %62 : vector<1x2xf32>
    %64 = math.rsqrt %63 : vector<1x2xf32>
    %65 = vector.extract_strided_slice %11 {offsets = [24, 0], sizes = [8, 2], strides = [1, 1]} : vector<32x2xf32> to vector<8x2xf32>
    %cst_34 = arith.constant dense<0.000000e+00> : vector<2xf32>
    %66 = vector.multi_reduction <add>, %65, %cst_34 [0] : vector<8x2xf32> to vector<2xf32>
    %67 = vector.shape_cast %66 : vector<2xf32> to vector<1x2xf32>
    %68 = vector.extract_strided_slice %13 {offsets = [24, 0], sizes = [8, 2], strides = [1, 1]} : vector<32x2xf32> to vector<8x2xf32>
    %cst_35 = arith.constant dense<0.000000e+00> : vector<2xf32>
    %69 = vector.multi_reduction <add>, %68, %cst_35 [0] : vector<8x2xf32> to vector<2xf32>
    %70 = vector.shape_cast %69 : vector<2xf32> to vector<1x2xf32>
    %cst_36 = arith.constant 5.000000e-04 : f32
    %71 = vector.broadcast %cst_36 : f32 to vector<1x2xf32>
    %72 = arith.mulf %67, %71 : vector<1x2xf32>
    %cst_37 = arith.constant 5.000000e-04 : f32
    %73 = vector.broadcast %cst_37 : f32 to vector<1x2xf32>
    %74 = arith.mulf %70, %73 : vector<1x2xf32>
    %75 = arith.mulf %72, %72 : vector<1x2xf32>
    %76 = arith.subf %74, %75 : vector<1x2xf32>
    %cst_38 = arith.constant 0.000000e+00 : f32
    %77 = vector.broadcast %cst_38 : f32 to vector<1x2xf32>
    %78 = arith.maximumf %76, %77 : vector<1x2xf32>
    %cst_39 = arith.constant 9.99999974E-6 : f32
    %79 = vector.broadcast %cst_39 : f32 to vector<1x2xf32>
    %80 = arith.addf %78, %79 : vector<1x2xf32>
    %81 = math.rsqrt %80 : vector<1x2xf32>
    %82 = tpu.concatenate %21, %38, %55, %72, %30, %47, %64, %81 in 0 : vector<1x2xf32>, vector<1x2xf32>, vector<1x2xf32>, vector<1x2xf32>, vector<1x2xf32>, vector<1x2xf32>, vector<1x2xf32>, vector<1x2xf32> -> vector<8x2xf32>
    %cst_40 = arith.constant dense<0.000000e+00> : vector<8x512xf32>
    %83 = tpu.matmul %82, %10, %cst_40 {dimension_numbers = #tpu.dot_dimension_numbers<[1], [0], [0], [1], [0, 0, 1, 1], [], []>} : vector<8x2xf32>, vector<2x512xf32>, vector<8x512xf32> -> vector<8x512xf32>
    %84 = vector.extract_strided_slice %6 {offsets = [0, 0], sizes = [8, 512], strides = [1, 1]} : vector<32x512xf32> to vector<8x512xf32>
    %85 = vector.extract_strided_slice %83 {offsets = [0, 0], sizes = [1, 512], strides = [1, 1]} : vector<8x512xf32> to vector<1x512xf32>
    %86 = vector.broadcast %85 : vector<1x512xf32> to vector<8x512xf32>
    %87 = arith.subf %84, %86 : vector<8x512xf32>
    %88 = vector.extract_strided_slice %83 {offsets = [4, 0], sizes = [1, 512], strides = [1, 1]} : vector<8x512xf32> to vector<1x512xf32>
    %89 = vector.broadcast %88 : vector<1x512xf32> to vector<8x512xf32>
    %90 = arith.mulf %87, %89 : vector<8x512xf32>
    %91 = vector.extract_strided_slice %7 {offsets = [0, 0], sizes = [8, 512], strides = [1, 1]} : vector<32x512xf32> to vector<8x512xf32>
    %92 = arith.mulf %90, %91 : vector<8x512xf32>
    %93 = vector.extract_strided_slice %8 {offsets = [0, 0], sizes = [8, 512], strides = [1, 1]} : vector<32x512xf32> to vector<8x512xf32>
    %94 = arith.addf %92, %93 : vector<8x512xf32>
    %cst_41 = arith.constant 0.000000e+00 : f32
    %95 = vector.broadcast %cst_41 : f32 to vector<8x512xf32>
    %96 = arith.cmpf ogt, %94, %95 : vector<8x512xf32>
    %cst_42 = arith.constant 0.00999999977 : f32
    %97 = vector.broadcast %cst_42 : f32 to vector<8x512xf32>
    %98 = arith.mulf %97, %94 : vector<8x512xf32>
    %99 = arith.select %96, %94, %98 : vector<8x512xi1>, vector<8x512xf32>
    %100 = vector.extract_strided_slice %6 {offsets = [8, 0], sizes = [8, 512], strides = [1, 1]} : vector<32x512xf32> to vector<8x512xf32>
    %101 = vector.extract_strided_slice %83 {offsets = [1, 0], sizes = [1, 512], strides = [1, 1]} : vector<8x512xf32> to vector<1x512xf32>
    %102 = vector.broadcast %101 : vector<1x512xf32> to vector<8x512xf32>
    %103 = arith.subf %100, %102 : vector<8x512xf32>
    %104 = vector.extract_strided_slice %83 {offsets = [5, 0], sizes = [1, 512], strides = [1, 1]} : vector<8x512xf32> to vector<1x512xf32>
    %105 = vector.broadcast %104 : vector<1x512xf32> to vector<8x512xf32>
    %106 = arith.mulf %103, %105 : vector<8x512xf32>
    %107 = vector.extract_strided_slice %7 {offsets = [8, 0], sizes = [8, 512], strides = [1, 1]} : vector<32x512xf32> to vector<8x512xf32>
    %108 = arith.mulf %106, %107 : vector<8x512xf32>
    %109 = vector.extract_strided_slice %8 {offsets = [8, 0], sizes = [8, 512], strides = [1, 1]} : vector<32x512xf32> to vector<8x512xf32>
    %110 = arith.addf %108, %109 : vector<8x512xf32>
    %cst_43 = arith.constant 0.000000e+00 : f32
    %111 = vector.broadcast %cst_43 : f32 to vector<8x512xf32>
    %112 = arith.cmpf ogt, %110, %111 : vector<8x512xf32>
    %cst_44 = arith.constant 0.00999999977 : f32
    %113 = vector.broadcast %cst_44 : f32 to vector<8x512xf32>
    %114 = arith.mulf %113, %110 : vector<8x512xf32>
    %115 = arith.select %112, %110, %114 : vector<8x512xi1>, vector<8x512xf32>
    %116 = vector.extract_strided_slice %6 {offsets = [16, 0], sizes = [8, 512], strides = [1, 1]} : vector<32x512xf32> to vector<8x512xf32>
    %117 = vector.extract_strided_slice %83 {offsets = [2, 0], sizes = [1, 512], strides = [1, 1]} : vector<8x512xf32> to vector<1x512xf32>
    %118 = vector.broadcast %117 : vector<1x512xf32> to vector<8x512xf32>
    %119 = arith.subf %116, %118 : vector<8x512xf32>
    %120 = vector.extract_strided_slice %83 {offsets = [6, 0], sizes = [1, 512], strides = [1, 1]} : vector<8x512xf32> to vector<1x512xf32>
    %121 = vector.broadcast %120 : vector<1x512xf32> to vector<8x512xf32>
    %122 = arith.mulf %119, %121 : vector<8x512xf32>
    %123 = vector.extract_strided_slice %7 {offsets = [16, 0], sizes = [8, 512], strides = [1, 1]} : vector<32x512xf32> to vector<8x512xf32>
    %124 = arith.mulf %122, %123 : vector<8x512xf32>
    %125 = vector.extract_strided_slice %8 {offsets = [16, 0], sizes = [8, 512], strides = [1, 1]} : vector<32x512xf32> to vector<8x512xf32>
    %126 = arith.addf %124, %125 : vector<8x512xf32>
    %cst_45 = arith.constant 0.000000e+00 : f32
    %127 = vector.broadcast %cst_45 : f32 to vector<8x512xf32>
    %128 = arith.cmpf ogt, %126, %127 : vector<8x512xf32>
    %cst_46 = arith.constant 0.00999999977 : f32
    %129 = vector.broadcast %cst_46 : f32 to vector<8x512xf32>
    %130 = arith.mulf %129, %126 : vector<8x512xf32>
    %131 = arith.select %128, %126, %130 : vector<8x512xi1>, vector<8x512xf32>
    %132 = vector.extract_strided_slice %6 {offsets = [24, 0], sizes = [8, 512], strides = [1, 1]} : vector<32x512xf32> to vector<8x512xf32>
    %133 = vector.extract_strided_slice %83 {offsets = [3, 0], sizes = [1, 512], strides = [1, 1]} : vector<8x512xf32> to vector<1x512xf32>
    %134 = vector.broadcast %133 : vector<1x512xf32> to vector<8x512xf32>
    %135 = arith.subf %132, %134 : vector<8x512xf32>
    %136 = vector.extract_strided_slice %83 {offsets = [7, 0], sizes = [1, 512], strides = [1, 1]} : vector<8x512xf32> to vector<1x512xf32>
    %137 = vector.broadcast %136 : vector<1x512xf32> to vector<8x512xf32>
    %138 = arith.mulf %135, %137 : vector<8x512xf32>
    %139 = vector.extract_strided_slice %7 {offsets = [24, 0], sizes = [8, 512], strides = [1, 1]} : vector<32x512xf32> to vector<8x512xf32>
    %140 = arith.mulf %138, %139 : vector<8x512xf32>
    %141 = vector.extract_strided_slice %8 {offsets = [24, 0], sizes = [8, 512], strides = [1, 1]} : vector<32x512xf32> to vector<8x512xf32>
    %142 = arith.addf %140, %141 : vector<8x512xf32>
    %cst_47 = arith.constant 0.000000e+00 : f32
    %143 = vector.broadcast %cst_47 : f32 to vector<8x512xf32>
    %144 = arith.cmpf ogt, %142, %143 : vector<8x512xf32>
    %cst_48 = arith.constant 0.00999999977 : f32
    %145 = vector.broadcast %cst_48 : f32 to vector<8x512xf32>
    %146 = arith.mulf %145, %142 : vector<8x512xf32>
    %147 = arith.select %144, %142, %146 : vector<8x512xi1>, vector<8x512xf32>
    %148 = tpu.concatenate %99, %115, %131, %147 in 0 : vector<8x512xf32>, vector<8x512xf32>, vector<8x512xf32>, vector<8x512xf32> -> vector<32x512xf32>
    %149 = vector.extract_strided_slice %148 {offsets = [0, 0], sizes = [32, 256], strides = [1, 1]} : vector<32x512xf32> to vector<32x256xf32>
    %150 = vector.extract_strided_slice %148 {offsets = [0, 256], sizes = [32, 256], strides = [1, 1]} : vector<32x512xf32> to vector<32x256xf32>
    %151 = vector.extract_strided_slice %148 {offsets = [0, 255], sizes = [32, 256], strides = [1, 1]} : vector<32x512xf32> to vector<32x256xf32>
    %152 = tpu.concatenate %151, %149, %150 in 0 : vector<32x256xf32>, vector<32x256xf32>, vector<32x256xf32> -> vector<96x256xf32>
    %c0_49 = arith.constant 0 : index
    %c0_50 = arith.constant 0 : index
    %153 = vector.load %arg6[%c0_49, %c0_50] : memref<64x96xf32, #tpu.memory_space<vmem>>, vector<64x96xf32>
    %cst_51 = arith.constant dense<0.000000e+00> : vector<64x256xf32>
    %154 = tpu.matmul %153, %152, %cst_51 {dimension_numbers = #tpu.dot_dimension_numbers<[1], [0], [0], [1], [0, 0, 1, 1], [], []>} : vector<64x96xf32>, vector<96x256xf32>, vector<64x256xf32> -> vector<64x256xf32>
    %c0_52 = arith.constant 0 : index
    %c0_53 = arith.constant 0 : index
    %155 = vector.load %arg7[%c0_52, %c0_53] : memref<64x1xf32, #tpu.memory_space<vmem>>, vector<64x1xf32>
    %156 = vector.broadcast %155 : vector<64x1xf32> to vector<64x256xf32>
    %157 = arith.addf %154, %156 : vector<64x256xf32>
    %c0_54 = arith.constant 0 : index
    %c0_55 = arith.constant 0 : index
    %158 = vector.load %arg8[%c0_54, %c0_55] : memref<64x256xf32, #tpu.memory_space<vmem>>, vector<64x256xf32>
    %c0_56 = arith.constant 0 : index
    %c0_57 = arith.constant 0 : index
    %159 = vector.load %arg9[%c0_56, %c0_57] : memref<64x256xf32, #tpu.memory_space<vmem>>, vector<64x256xf32>
    %c0_58 = arith.constant 0 : index
    %c0_59 = arith.constant 0 : index
    %160 = vector.load %arg12[%c0_58, %c0_59] : memref<256x2xf32, #tpu.memory_space<vmem>>, vector<256x2xf32>
    %c0_60 = arith.constant 0 : index
    %c0_61 = arith.constant 0 : index
    %161 = vector.load %arg13[%c0_60, %c0_61] : memref<2x256xf32, #tpu.memory_space<vmem>>, vector<2x256xf32>
    %cst_62 = arith.constant dense<0.000000e+00> : vector<64x2xf32>
    %162 = tpu.matmul %157, %160, %cst_62 {dimension_numbers = #tpu.dot_dimension_numbers<[1], [0], [0], [1], [0, 0, 1, 1], [], []>} : vector<64x256xf32>, vector<256x2xf32>, vector<64x2xf32> -> vector<64x2xf32>
    %163 = arith.mulf %157, %157 : vector<64x256xf32>
    %cst_63 = arith.constant dense<0.000000e+00> : vector<64x2xf32>
    %164 = tpu.matmul %163, %160, %cst_63 {dimension_numbers = #tpu.dot_dimension_numbers<[1], [0], [0], [1], [0, 0, 1, 1], [], []>} : vector<64x256xf32>, vector<256x2xf32>, vector<64x2xf32> -> vector<64x2xf32>
    %165 = vector.extract_strided_slice %162 {offsets = [0, 0], sizes = [16, 2], strides = [1, 1]} : vector<64x2xf32> to vector<16x2xf32>
    %cst_64 = arith.constant dense<0.000000e+00> : vector<2xf32>
    %166 = vector.multi_reduction <add>, %165, %cst_64 [0] : vector<16x2xf32> to vector<2xf32>
    %167 = vector.shape_cast %166 : vector<2xf32> to vector<1x2xf32>
    %168 = vector.extract_strided_slice %164 {offsets = [0, 0], sizes = [16, 2], strides = [1, 1]} : vector<64x2xf32> to vector<16x2xf32>
    %cst_65 = arith.constant dense<0.000000e+00> : vector<2xf32>
    %169 = vector.multi_reduction <add>, %168, %cst_65 [0] : vector<16x2xf32> to vector<2xf32>
    %170 = vector.shape_cast %169 : vector<2xf32> to vector<1x2xf32>
    %cst_66 = arith.constant 5.000000e-04 : f32
    %171 = vector.broadcast %cst_66 : f32 to vector<1x2xf32>
    %172 = arith.mulf %167, %171 : vector<1x2xf32>
    %cst_67 = arith.constant 5.000000e-04 : f32
    %173 = vector.broadcast %cst_67 : f32 to vector<1x2xf32>
    %174 = arith.mulf %170, %173 : vector<1x2xf32>
    %175 = arith.mulf %172, %172 : vector<1x2xf32>
    %176 = arith.subf %174, %175 : vector<1x2xf32>
    %cst_68 = arith.constant 0.000000e+00 : f32
    %177 = vector.broadcast %cst_68 : f32 to vector<1x2xf32>
    %178 = arith.maximumf %176, %177 : vector<1x2xf32>
    %cst_69 = arith.constant 9.99999974E-6 : f32
    %179 = vector.broadcast %cst_69 : f32 to vector<1x2xf32>
    %180 = arith.addf %178, %179 : vector<1x2xf32>
    %181 = math.rsqrt %180 : vector<1x2xf32>
    %182 = vector.extract_strided_slice %162 {offsets = [16, 0], sizes = [16, 2], strides = [1, 1]} : vector<64x2xf32> to vector<16x2xf32>
    %cst_70 = arith.constant dense<0.000000e+00> : vector<2xf32>
    %183 = vector.multi_reduction <add>, %182, %cst_70 [0] : vector<16x2xf32> to vector<2xf32>
    %184 = vector.shape_cast %183 : vector<2xf32> to vector<1x2xf32>
    %185 = vector.extract_strided_slice %164 {offsets = [16, 0], sizes = [16, 2], strides = [1, 1]} : vector<64x2xf32> to vector<16x2xf32>
    %cst_71 = arith.constant dense<0.000000e+00> : vector<2xf32>
    %186 = vector.multi_reduction <add>, %185, %cst_71 [0] : vector<16x2xf32> to vector<2xf32>
    %187 = vector.shape_cast %186 : vector<2xf32> to vector<1x2xf32>
    %cst_72 = arith.constant 5.000000e-04 : f32
    %188 = vector.broadcast %cst_72 : f32 to vector<1x2xf32>
    %189 = arith.mulf %184, %188 : vector<1x2xf32>
    %cst_73 = arith.constant 5.000000e-04 : f32
    %190 = vector.broadcast %cst_73 : f32 to vector<1x2xf32>
    %191 = arith.mulf %187, %190 : vector<1x2xf32>
    %192 = arith.mulf %189, %189 : vector<1x2xf32>
    %193 = arith.subf %191, %192 : vector<1x2xf32>
    %cst_74 = arith.constant 0.000000e+00 : f32
    %194 = vector.broadcast %cst_74 : f32 to vector<1x2xf32>
    %195 = arith.maximumf %193, %194 : vector<1x2xf32>
    %cst_75 = arith.constant 9.99999974E-6 : f32
    %196 = vector.broadcast %cst_75 : f32 to vector<1x2xf32>
    %197 = arith.addf %195, %196 : vector<1x2xf32>
    %198 = math.rsqrt %197 : vector<1x2xf32>
    %199 = vector.extract_strided_slice %162 {offsets = [32, 0], sizes = [16, 2], strides = [1, 1]} : vector<64x2xf32> to vector<16x2xf32>
    %cst_76 = arith.constant dense<0.000000e+00> : vector<2xf32>
    %200 = vector.multi_reduction <add>, %199, %cst_76 [0] : vector<16x2xf32> to vector<2xf32>
    %201 = vector.shape_cast %200 : vector<2xf32> to vector<1x2xf32>
    %202 = vector.extract_strided_slice %164 {offsets = [32, 0], sizes = [16, 2], strides = [1, 1]} : vector<64x2xf32> to vector<16x2xf32>
    %cst_77 = arith.constant dense<0.000000e+00> : vector<2xf32>
    %203 = vector.multi_reduction <add>, %202, %cst_77 [0] : vector<16x2xf32> to vector<2xf32>
    %204 = vector.shape_cast %203 : vector<2xf32> to vector<1x2xf32>
    %cst_78 = arith.constant 5.000000e-04 : f32
    %205 = vector.broadcast %cst_78 : f32 to vector<1x2xf32>
    %206 = arith.mulf %201, %205 : vector<1x2xf32>
    %cst_79 = arith.constant 5.000000e-04 : f32
    %207 = vector.broadcast %cst_79 : f32 to vector<1x2xf32>
    %208 = arith.mulf %204, %207 : vector<1x2xf32>
    %209 = arith.mulf %206, %206 : vector<1x2xf32>
    %210 = arith.subf %208, %209 : vector<1x2xf32>
    %cst_80 = arith.constant 0.000000e+00 : f32
    %211 = vector.broadcast %cst_80 : f32 to vector<1x2xf32>
    %212 = arith.maximumf %210, %211 : vector<1x2xf32>
    %cst_81 = arith.constant 9.99999974E-6 : f32
    %213 = vector.broadcast %cst_81 : f32 to vector<1x2xf32>
    %214 = arith.addf %212, %213 : vector<1x2xf32>
    %215 = math.rsqrt %214 : vector<1x2xf32>
    %216 = vector.extract_strided_slice %162 {offsets = [48, 0], sizes = [16, 2], strides = [1, 1]} : vector<64x2xf32> to vector<16x2xf32>
    %cst_82 = arith.constant dense<0.000000e+00> : vector<2xf32>
    %217 = vector.multi_reduction <add>, %216, %cst_82 [0] : vector<16x2xf32> to vector<2xf32>
    %218 = vector.shape_cast %217 : vector<2xf32> to vector<1x2xf32>
    %219 = vector.extract_strided_slice %164 {offsets = [48, 0], sizes = [16, 2], strides = [1, 1]} : vector<64x2xf32> to vector<16x2xf32>
    %cst_83 = arith.constant dense<0.000000e+00> : vector<2xf32>
    %220 = vector.multi_reduction <add>, %219, %cst_83 [0] : vector<16x2xf32> to vector<2xf32>
    %221 = vector.shape_cast %220 : vector<2xf32> to vector<1x2xf32>
    %cst_84 = arith.constant 5.000000e-04 : f32
    %222 = vector.broadcast %cst_84 : f32 to vector<1x2xf32>
    %223 = arith.mulf %218, %222 : vector<1x2xf32>
    %cst_85 = arith.constant 5.000000e-04 : f32
    %224 = vector.broadcast %cst_85 : f32 to vector<1x2xf32>
    %225 = arith.mulf %221, %224 : vector<1x2xf32>
    %226 = arith.mulf %223, %223 : vector<1x2xf32>
    %227 = arith.subf %225, %226 : vector<1x2xf32>
    %cst_86 = arith.constant 0.000000e+00 : f32
    %228 = vector.broadcast %cst_86 : f32 to vector<1x2xf32>
    %229 = arith.maximumf %227, %228 : vector<1x2xf32>
    %cst_87 = arith.constant 9.99999974E-6 : f32
    %230 = vector.broadcast %cst_87 : f32 to vector<1x2xf32>
    %231 = arith.addf %229, %230 : vector<1x2xf32>
    %232 = math.rsqrt %231 : vector<1x2xf32>
    %233 = tpu.concatenate %172, %189, %206, %223, %181, %198, %215, %232 in 0 : vector<1x2xf32>, vector<1x2xf32>, vector<1x2xf32>, vector<1x2xf32>, vector<1x2xf32>, vector<1x2xf32>, vector<1x2xf32>, vector<1x2xf32> -> vector<8x2xf32>
    %cst_88 = arith.constant dense<0.000000e+00> : vector<8x256xf32>
    %234 = tpu.matmul %233, %161, %cst_88 {dimension_numbers = #tpu.dot_dimension_numbers<[1], [0], [0], [1], [0, 0, 1, 1], [], []>} : vector<8x2xf32>, vector<2x256xf32>, vector<8x256xf32> -> vector<8x256xf32>
    %235 = vector.extract_strided_slice %157 {offsets = [0, 0], sizes = [16, 256], strides = [1, 1]} : vector<64x256xf32> to vector<16x256xf32>
    %236 = vector.extract_strided_slice %234 {offsets = [0, 0], sizes = [1, 256], strides = [1, 1]} : vector<8x256xf32> to vector<1x256xf32>
    %237 = vector.broadcast %236 : vector<1x256xf32> to vector<16x256xf32>
    %238 = arith.subf %235, %237 : vector<16x256xf32>
    %239 = vector.extract_strided_slice %234 {offsets = [4, 0], sizes = [1, 256], strides = [1, 1]} : vector<8x256xf32> to vector<1x256xf32>
    %240 = vector.broadcast %239 : vector<1x256xf32> to vector<16x256xf32>
    %241 = arith.mulf %238, %240 : vector<16x256xf32>
    %242 = vector.extract_strided_slice %158 {offsets = [0, 0], sizes = [16, 256], strides = [1, 1]} : vector<64x256xf32> to vector<16x256xf32>
    %243 = arith.mulf %241, %242 : vector<16x256xf32>
    %244 = vector.extract_strided_slice %159 {offsets = [0, 0], sizes = [16, 256], strides = [1, 1]} : vector<64x256xf32> to vector<16x256xf32>
    %245 = arith.addf %243, %244 : vector<16x256xf32>
    %cst_89 = arith.constant 0.000000e+00 : f32
    %246 = vector.broadcast %cst_89 : f32 to vector<16x256xf32>
    %247 = arith.cmpf ogt, %245, %246 : vector<16x256xf32>
    %cst_90 = arith.constant 0.00999999977 : f32
    %248 = vector.broadcast %cst_90 : f32 to vector<16x256xf32>
    %249 = arith.mulf %248, %245 : vector<16x256xf32>
    %250 = arith.select %247, %245, %249 : vector<16x256xi1>, vector<16x256xf32>
    %251 = vector.extract_strided_slice %157 {offsets = [16, 0], sizes = [16, 256], strides = [1, 1]} : vector<64x256xf32> to vector<16x256xf32>
    %252 = vector.extract_strided_slice %234 {offsets = [1, 0], sizes = [1, 256], strides = [1, 1]} : vector<8x256xf32> to vector<1x256xf32>
    %253 = vector.broadcast %252 : vector<1x256xf32> to vector<16x256xf32>
    %254 = arith.subf %251, %253 : vector<16x256xf32>
    %255 = vector.extract_strided_slice %234 {offsets = [5, 0], sizes = [1, 256], strides = [1, 1]} : vector<8x256xf32> to vector<1x256xf32>
    %256 = vector.broadcast %255 : vector<1x256xf32> to vector<16x256xf32>
    %257 = arith.mulf %254, %256 : vector<16x256xf32>
    %258 = vector.extract_strided_slice %158 {offsets = [16, 0], sizes = [16, 256], strides = [1, 1]} : vector<64x256xf32> to vector<16x256xf32>
    %259 = arith.mulf %257, %258 : vector<16x256xf32>
    %260 = vector.extract_strided_slice %159 {offsets = [16, 0], sizes = [16, 256], strides = [1, 1]} : vector<64x256xf32> to vector<16x256xf32>
    %261 = arith.addf %259, %260 : vector<16x256xf32>
    %cst_91 = arith.constant 0.000000e+00 : f32
    %262 = vector.broadcast %cst_91 : f32 to vector<16x256xf32>
    %263 = arith.cmpf ogt, %261, %262 : vector<16x256xf32>
    %cst_92 = arith.constant 0.00999999977 : f32
    %264 = vector.broadcast %cst_92 : f32 to vector<16x256xf32>
    %265 = arith.mulf %264, %261 : vector<16x256xf32>
    %266 = arith.select %263, %261, %265 : vector<16x256xi1>, vector<16x256xf32>
    %267 = vector.extract_strided_slice %157 {offsets = [32, 0], sizes = [16, 256], strides = [1, 1]} : vector<64x256xf32> to vector<16x256xf32>
    %268 = vector.extract_strided_slice %234 {offsets = [2, 0], sizes = [1, 256], strides = [1, 1]} : vector<8x256xf32> to vector<1x256xf32>
    %269 = vector.broadcast %268 : vector<1x256xf32> to vector<16x256xf32>
    %270 = arith.subf %267, %269 : vector<16x256xf32>
    %271 = vector.extract_strided_slice %234 {offsets = [6, 0], sizes = [1, 256], strides = [1, 1]} : vector<8x256xf32> to vector<1x256xf32>
    %272 = vector.broadcast %271 : vector<1x256xf32> to vector<16x256xf32>
    %273 = arith.mulf %270, %272 : vector<16x256xf32>
    %274 = vector.extract_strided_slice %158 {offsets = [32, 0], sizes = [16, 256], strides = [1, 1]} : vector<64x256xf32> to vector<16x256xf32>
    %275 = arith.mulf %273, %274 : vector<16x256xf32>
    %276 = vector.extract_strided_slice %159 {offsets = [32, 0], sizes = [16, 256], strides = [1, 1]} : vector<64x256xf32> to vector<16x256xf32>
    %277 = arith.addf %275, %276 : vector<16x256xf32>
    %cst_93 = arith.constant 0.000000e+00 : f32
    %278 = vector.broadcast %cst_93 : f32 to vector<16x256xf32>
    %279 = arith.cmpf ogt, %277, %278 : vector<16x256xf32>
    %cst_94 = arith.constant 0.00999999977 : f32
    %280 = vector.broadcast %cst_94 : f32 to vector<16x256xf32>
    %281 = arith.mulf %280, %277 : vector<16x256xf32>
    %282 = arith.select %279, %277, %281 : vector<16x256xi1>, vector<16x256xf32>
    %283 = vector.extract_strided_slice %157 {offsets = [48, 0], sizes = [16, 256], strides = [1, 1]} : vector<64x256xf32> to vector<16x256xf32>
    %284 = vector.extract_strided_slice %234 {offsets = [3, 0], sizes = [1, 256], strides = [1, 1]} : vector<8x256xf32> to vector<1x256xf32>
    %285 = vector.broadcast %284 : vector<1x256xf32> to vector<16x256xf32>
    %286 = arith.subf %283, %285 : vector<16x256xf32>
    %287 = vector.extract_strided_slice %234 {offsets = [7, 0], sizes = [1, 256], strides = [1, 1]} : vector<8x256xf32> to vector<1x256xf32>
    %288 = vector.broadcast %287 : vector<1x256xf32> to vector<16x256xf32>
    %289 = arith.mulf %286, %288 : vector<16x256xf32>
    %290 = vector.extract_strided_slice %158 {offsets = [48, 0], sizes = [16, 256], strides = [1, 1]} : vector<64x256xf32> to vector<16x256xf32>
    %291 = arith.mulf %289, %290 : vector<16x256xf32>
    %292 = vector.extract_strided_slice %159 {offsets = [48, 0], sizes = [16, 256], strides = [1, 1]} : vector<64x256xf32> to vector<16x256xf32>
    %293 = arith.addf %291, %292 : vector<16x256xf32>
    %cst_95 = arith.constant 0.000000e+00 : f32
    %294 = vector.broadcast %cst_95 : f32 to vector<16x256xf32>
    %295 = arith.cmpf ogt, %293, %294 : vector<16x256xf32>
    %cst_96 = arith.constant 0.00999999977 : f32
    %296 = vector.broadcast %cst_96 : f32 to vector<16x256xf32>
    %297 = arith.mulf %296, %293 : vector<16x256xf32>
    %298 = arith.select %295, %293, %297 : vector<16x256xi1>, vector<16x256xf32>
    %299 = tpu.concatenate %250, %266, %282, %298 in 0 : vector<16x256xf32>, vector<16x256xf32>, vector<16x256xf32>, vector<16x256xf32> -> vector<64x256xf32>
    %c0_97 = arith.constant 0 : index
    %c0_98 = arith.constant 0 : index
    %c0_99 = arith.constant 0 : index
    %300 = vector.load %arg16[%c0_97, %c0_98, %c0_99] : memref<1x64x256xf32, #tpu.memory_space<vmem>>, vector<1x64x256xf32>
    %301 = vector.shape_cast %300 : vector<1x64x256xf32> to vector<64x256xf32>
    %302 = vector.shape_cast %299 : vector<64x256xf32> to vector<1x64x256xf32>
    tpu.vector_store %arg16[%c0_97, %c0_98, %c0_99], %302 {strides = array<i32>} : memref<1x64x256xf32, #tpu.memory_space<vmem>>, vector<1x64x256xf32>,
    %c0_100 = arith.constant 0 : index
    %c0_101 = arith.constant 0 : index
    %303 = vector.load %arg12[%c0_100, %c0_101] : memref<256x2xf32, #tpu.memory_space<vmem>>, vector<256x2xf32>
    %cst_102 = arith.constant dense<0.000000e+00> : vector<64x2xf32>
    %304 = tpu.matmul %299, %303, %cst_102 {dimension_numbers = #tpu.dot_dimension_numbers<[1], [0], [0], [1], [0, 0, 1, 1], [], []>} : vector<64x256xf32>, vector<256x2xf32>, vector<64x2xf32> -> vector<64x2xf32>
    %cst_103 = arith.constant 8.000000e-03 : f32
    %305 = vector.broadcast %cst_103 : f32 to vector<64x2xf32>
    %306 = arith.mulf %304, %305 : vector<64x2xf32>
    %307 = vector.extract_strided_slice %306 {offsets = [0, 0], sizes = [32, 2], strides = [1, 1]} : vector<64x2xf32> to vector<32x2xf32>
    %308 = vector.extract_strided_slice %306 {offsets = [32, 0], sizes = [32, 2], strides = [1, 1]} : vector<64x2xf32> to vector<32x2xf32>
    %309 = arith.addf %307, %308 : vector<32x2xf32>
    %cst_104 = arith.constant 5.000000e-01 : f32
    %310 = vector.broadcast %cst_104 : f32 to vector<32x2xf32>
    %311 = arith.mulf %310, %309 : vector<32x2xf32>
    %312 = tpu.concatenate %307, %308, %311 in 0 : vector<32x2xf32>, vector<32x2xf32>, vector<32x2xf32> -> vector<96x2xf32>
    %c0_105 = arith.constant 0 : index
    %c0_106 = arith.constant 0 : index
    %313 = vector.load %arg14[%c0_105, %c0_106] : memref<18x96xf32, #tpu.memory_space<vmem>>, vector<18x96xf32>
    %cst_107 = arith.constant dense<0.000000e+00> : vector<18x2xf32>
    %314 = tpu.matmul %313, %312, %cst_107 {dimension_numbers = #tpu.dot_dimension_numbers<[1], [0], [0], [1], [0, 0, 1, 1], [], []>} : vector<18x96xf32>, vector<96x2xf32>, vector<18x2xf32> -> vector<18x2xf32>
    %c0_108 = arith.constant 0 : index
    %c0_109 = arith.constant 0 : index
    %315 = vector.load %arg15[%c0_108, %c0_109] : memref<18x1xf32, #tpu.memory_space<vmem>>, vector<18x1xf32>
    %316 = vector.broadcast %315 : vector<18x1xf32> to vector<18x2xf32>
    %317 = arith.addf %314, %316 : vector<18x2xf32>
    %318 = vector.extract_strided_slice %317 {offsets = [0, 0], sizes = [3, 2], strides = [1, 1]} : vector<18x2xf32> to vector<3x2xf32>
    %319 = vector.extract_strided_slice %317 {offsets = [3, 0], sizes = [3, 2], strides = [1, 1]} : vector<18x2xf32> to vector<3x2xf32>
    %320 = arith.mulf %318, %318 : vector<3x2xf32>
    %321 = arith.mulf %319, %319 : vector<3x2xf32>
    %322 = arith.addf %320, %321 : vector<3x2xf32>
    %323 = math.sqrt %322 : vector<3x2xf32>
    %324 = vector.extract_strided_slice %317 {offsets = [6, 0], sizes = [3, 2], strides = [1, 1]} : vector<18x2xf32> to vector<3x2xf32>
    %325 = vector.extract_strided_slice %317 {offsets = [9, 0], sizes = [3, 2], strides = [1, 1]} : vector<18x2xf32> to vector<3x2xf32>
    %326 = arith.mulf %324, %324 : vector<3x2xf32>
    %327 = arith.mulf %325, %325 : vector<3x2xf32>
    %328 = arith.addf %326, %327 : vector<3x2xf32>
    %329 = math.sqrt %328 : vector<3x2xf32>
    %330 = vector.extract_strided_slice %317 {offsets = [12, 0], sizes = [3, 2], strides = [1, 1]} : vector<18x2xf32> to vector<3x2xf32>
    %331 = vector.extract_strided_slice %317 {offsets = [15, 0], sizes = [3, 2], strides = [1, 1]} : vector<18x2xf32> to vector<3x2xf32>
    %332 = arith.mulf %330, %330 : vector<3x2xf32>
    %333 = arith.mulf %331, %331 : vector<3x2xf32>
    %334 = arith.addf %332, %333 : vector<3x2xf32>
    %335 = math.sqrt %334 : vector<3x2xf32>
    %336 = tpu.concatenate %311, %323, %329, %335 in 0 : vector<32x2xf32>, vector<3x2xf32>, vector<3x2xf32>, vector<3x2xf32> -> vector<41x2xf32>
    %cst_110 = arith.constant 0.000000e+00 : f32
    %337 = vector.broadcast %cst_110 : f32 to vector<7x2xf32>
    %338 = tpu.concatenate %336, %337 in 0 : vector<41x2xf32>, vector<7x2xf32> -> vector<48x2xf32>
    %c0_111 = arith.constant 0 : index
    %c0_112 = arith.constant 0 : index
    %c0_113 = arith.constant 0 : index
    %339 = vector.load %arg17[%c0_111, %c0_112, %c0_113] : memref<1x48x2xf32, #tpu.memory_space<vmem>>, vector<1x48x2xf32>
    %340 = vector.shape_cast %339 : vector<1x48x2xf32> to vector<48x2xf32>
    %341 = vector.shape_cast %338 : vector<48x2xf32> to vector<1x48x2xf32>
    tpu.vector_store %arg17[%c0_111, %c0_112, %c0_113], %341 {strides = array<i32>} : memref<1x48x2xf32, #tpu.memory_space<vmem>>, vector<1x48x2xf32>,
    return
  }
  func.func @transform_0(%arg0: i32) -> (i32, i32, i32) {
    %c0_i32 = arith.constant 0 : i32
    %c0_i32_0 = arith.constant 0 : i32
    %c0_i32_1 = arith.constant 0 : i32
    return %arg0, %c0_i32, %c0_i32_0 : i32, i32, i32
  }
  func.func @transform_1(%arg0: i32) -> (i32, i32) {
    %c0_i32 = arith.constant 0 : i32
    %c0_i32_0 = arith.constant 0 : i32
    %c0_i32_1 = arith.constant 0 : i32
    return %c0_i32, %c0_i32_0 : i32, i32
  }
  func.func @transform_2(%arg0: i32) -> (i32, i32) {
    %c0_i32 = arith.constant 0 : i32
    %c0_i32_0 = arith.constant 0 : i32
    %c0_i32_1 = arith.constant 0 : i32
    return %c0_i32, %c0_i32_0 : i32, i32
  }
  func.func @transform_3(%arg0: i32) -> (i32, i32) {
    %c0_i32 = arith.constant 0 : i32
    %c0_i32_0 = arith.constant 0 : i32
    %c0_i32_1 = arith.constant 0 : i32
    return %c0_i32, %c0_i32_0 : i32, i32
  }
  func.func @transform_4(%arg0: i32) -> (i32, i32) {
    %c0_i32 = arith.constant 0 : i32
    %c0_i32_0 = arith.constant 0 : i32
    %c0_i32_1 = arith.constant 0 : i32
    return %c0_i32, %c0_i32_0 : i32, i32
  }
  func.func @transform_5(%arg0: i32) -> (i32, i32) {
    %c0_i32 = arith.constant 0 : i32
    %c0_i32_0 = arith.constant 0 : i32
    %c0_i32_1 = arith.constant 0 : i32
    return %c0_i32, %c0_i32_0 : i32, i32
  }
  func.func @transform_6(%arg0: i32) -> (i32, i32) {
    %c0_i32 = arith.constant 0 : i32
    %c0_i32_0 = arith.constant 0 : i32
    %c0_i32_1 = arith.constant 0 : i32
    return %c0_i32, %c0_i32_0 : i32, i32
  }
  func.func @transform_7(%arg0: i32) -> (i32, i32) {
    %c0_i32 = arith.constant 0 : i32
    %c0_i32_0 = arith.constant 0 : i32
    %c0_i32_1 = arith.constant 0 : i32
    return %c0_i32, %c0_i32_0 : i32, i32
  }
  func.func @transform_8(%arg0: i32) -> (i32, i32) {
    %c0_i32 = arith.constant 0 : i32
    %c0_i32_0 = arith.constant 0 : i32
    %c0_i32_1 = arith.constant 0 : i32
    return %c0_i32, %c0_i32_0 : i32, i32
  }
  func.func @transform_9(%arg0: i32) -> (i32, i32) {
    %c0_i32 = arith.constant 0 : i32
    %c0_i32_0 = arith.constant 0 : i32
    %c0_i32_1 = arith.constant 0 : i32
    return %c0_i32, %c0_i32_0 : i32, i32
  }
  func.func @transform_10(%arg0: i32) -> (i32, i32) {
    %c0_i32 = arith.constant 0 : i32
    %c0_i32_0 = arith.constant 0 : i32
    %c0_i32_1 = arith.constant 0 : i32
    return %c0_i32, %c0_i32_0 : i32, i32
  }
  func.func @transform_11(%arg0: i32) -> (i32, i32) {
    %c0_i32 = arith.constant 0 : i32
    %c0_i32_0 = arith.constant 0 : i32
    %c0_i32_1 = arith.constant 0 : i32
    return %c0_i32, %c0_i32_0 : i32, i32
  }
  func.func @transform_12(%arg0: i32) -> (i32, i32) {
    %c0_i32 = arith.constant 0 : i32
    %c0_i32_0 = arith.constant 0 : i32
    %c0_i32_1 = arith.constant 0 : i32
    return %c0_i32, %c0_i32_0 : i32, i32
  }
  func.func @transform_13(%arg0: i32) -> (i32, i32) {
    %c0_i32 = arith.constant 0 : i32
    %c0_i32_0 = arith.constant 0 : i32
    %c0_i32_1 = arith.constant 0 : i32
    return %c0_i32, %c0_i32_0 : i32, i32
  }
  func.func @transform_14(%arg0: i32) -> (i32, i32) {
    %c0_i32 = arith.constant 0 : i32
    %c0_i32_0 = arith.constant 0 : i32
    %c0_i32_1 = arith.constant 0 : i32
    return %c0_i32, %c0_i32_0 : i32, i32
  }
  func.func @transform_15(%arg0: i32) -> (i32, i32, i32) {
    %c0_i32 = arith.constant 0 : i32
    %c0_i32_0 = arith.constant 0 : i32
    %c0_i32_1 = arith.constant 0 : i32
    return %arg0, %c0_i32, %c0_i32_0 : i32, i32, i32
  }
  func.func @transform_16(%arg0: i32) -> (i32, i32, i32) {
    %c0_i32 = arith.constant 0 : i32
    %c0_i32_0 = arith.constant 0 : i32
    %c0_i32_1 = arith.constant 0 : i32
    return %arg0, %c0_i32, %c0_i32_0 : i32, i32, i32
  }
}

</mosaic_0001>

<bundles_post_ra>
// kernel: neg.19
= control target key start
LH: loop header
LB: loop body
LE: loop exit
PB: predicated region body
PF: predicated region fallthrough
CT: control target
= control target key end

     0   :  { %s24_s0 = inlined_call_operand.vmem [shape: f32[3,16], index: 0, kind: input, shape index: {}]   ;;  %s25_s1 = inlined_call_operand.vmem [shape: f32[3,16], index: 1, kind: output, shape index: {}]  }
   0x1   :  { %v2_v0 = vld [vmem:[%s24_s0] sm:$0x7] }
   0x2   :  { %v5_v1 = vxor.u32 2147483648, %v2_v0 }
   0x4   :  { %7 = vst [vmem:[%s25_s1] sm:$0xf] %v5_v1 }

// kernel: forward.1
= control target key start
LH: loop header
LB: loop body
LE: loop exit
PB: predicated region body
PF: predicated region fallthrough
CT: control target
= control target key end

     0   :  { %vm101_vm0 = vcmask 1043456   ;;  %v2378_v3 = vmov 0   ;;  %vm88_vm1 = vcmask 97280   ;;  %vm575_vm2 = vcmask 15360   ;;  %s2379_s19 = smov 127   ;;  %s4180_s0 = inlined_call_operand.vmem [shape: f32[1,12,512], index: 0, kind: input, shape index: {}]   ;;  %s4181_s1 = inlined_call_operand.vmem [shape: f32[32,12], index: 1, kind: input, shape index: {}]   ;;  %s4182_s2 = inlined_call_operand.vmem [shape: f32[32,1], index: 2, kind: input, shape index: {}]   ;;  %s4183_s9 = inlined_call_operand.vmem [shape: f32[512,2], index: 9, kind: input, shape index: {}]   ;;  %s4184_s10 = inlined_call_operand.vmem [shape: f32[2,512], index: 10, kind: input, shape index: {}]   ;;  %s4185_s12 = inlined_call_operand.vmem [shape: f32[2,256], index: 12, kind: input, shape index: {}]   ;;  %s4186_s3 = inlined_call_operand.vmem [shape: f32[32,512], index: 3, kind: input, shape index: {}]   ;;  %s4187_s4 = inlined_call_operand.vmem [shape: f32[32,512], index: 4, kind: input, shape index: {}]   ;;  %s4188_s6 = inlined_call_operand.vmem [shape: f32[64,1], index: 6, kind: input, shape index: {}]   ;;  %s4189_s14 = inlined_call_operand.vmem [shape: f32[18,1], index: 14, kind: input, shape index: {}]   ;;  %s4190_s5 = inlined_call_operand.vmem [shape: f32[64,96], index: 5, kind: input, shape index: {}]   ;;  %s4191_s11 = inlined_call_operand.vmem [shape: f32[256,2], index: 11, kind: input, shape index: {}]   ;;  %s4192_s7 = inlined_call_operand.vmem [shape: f32[64,256], index: 7, kind: input, shape index: {}]   ;;  %s4193_s8 = inlined_call_operand.vmem [shape: f32[64,256], index: 8, kind: input, shape index: {}]   ;;  %s4194_s15 = inlined_call_operand.vmem [shape: f32[1,64,256], index: 15, kind: output, shape index: {0}]   ;;  %s4195_s16 = inlined_call_operand.vmem [shape: f32[1,48,2], index: 16, kind: output, shape index: {1}]   ;;  %s4196_s13 = inlined_call_operand.vmem [shape: f32[18,96], index: 13, kind: input, shape index: {}]  }
   0x1   :  { %4216 = sst [smem:[#allocation17_spill]] %s4180_s0  ;;  %2221 = vset.pattern.permute.xlu0 %v2378_v3  ;;  %2222 = vset.pattern.permute.xlu1 %v2378_v3  ;;  %v60_v9 = vld [vmem:[%s4181_s1] sm:$0xff]  ;;  %v66_v11 = vld [vmem:[%s4182_s2 + $0x10] sm:$0xff]  ;;  %v2510_v12 = vld [vmem:[%s4183_s9 + $0x78] sm:$0xff]  ;;  %vm698_vm3 = vcmask 1041408   ;;  %vm4214_vm4 = vcmask 1040384  }
   0x2   :  { %s4217_s23 = sld [smem:[#allocation17_spill]]  ;;  %v64_v10 = vld [vmem:[%s4182_s2] sm:$0xff]  ;;  %v2515_v13 = vld [vmem:[%s4183_s9 + $0xf8] sm:$0xff]  ;;  %80 = vperm.xlu1 %2222, %v66_v11   ;;  %v2522_v14 = vld [vmem:[%s4183_s9 + $0x70] sm:$0xff]  ;;  %2353 = vset.pattern.permute.xlu2 %v2378_v3  ;;  %vm4215_vm9 = vcmask 1042432  }
   0x3   :  { %70 = vperm.xlu0 %2221, %v64_v10   ;;  %v2527_v15 = vld [vmem:[%s4183_s9 + $0xf0] sm:$0xff]  ;;  %v2534_v16 = vld [vmem:[%s4183_s9 + $0x68] sm:$0xff]  ;;  %v2539_v17 = vld [vmem:[%s4183_s9 + $0x178] sm:$0xff] }
   0x4   :  { %v2544_v18 = vld [vmem:[%s4183_s9 + $0x1f8] sm:$0xff]  ;;  %v2549_v19 = vld [vmem:[%s4183_s9 + $0xe8] sm:$0xff]  ;;  %v2556_v20 = vld [vmem:[%s4183_s9 + $0x170] sm:$0xff] }
   0x5   :  { %v2561_v21 = vld [vmem:[%s4183_s9 + $0x1f0] sm:$0xff]  ;;  %v61_v22 = vld [vmem:[%s4181_s1 + $0x8] sm:$0xff]  ;;  %v67_v24 = vld [vmem:[%s4182_s2 + $0x18] sm:$0xff] }
   0x6   :  { %v65_v23 = vld [vmem:[%s4182_s2 + $0x8] sm:$0xff]  ;;  %v2583_v25 = vld [vmem:[%s4183_s9 + $0x60] sm:$0xff]  ;;  %v2605_v29 = vld [vmem:[%s4183_s9 + $0x58] sm:$0xff] }
   0x7   :  { %v2588_v26 = vld [vmem:[%s4183_s9 + $0xe0] sm:$0xff]  ;;  %v2595_v27 = vld [vmem:[%s4183_s9 + $0x168] sm:$0xff]  ;;  %v2610_v30 = vld [vmem:[%s4183_s9 + $0xd8] sm:$0xff] }
   0x8   :  { %v56_v0 = vld [vmem:[%s4217_s23 + $0x20] sm:$0xf]  ;;  %v57_v1 = vld [vmem:[%s4217_s23 + $0x28] sm:$0xf]  ;;  %v58_v2 = vld [vmem:[%s4217_s23 + $0x30] sm:$0xf] }
   0x9   :  { %2151 = vmatpush.msk.msra.mxu0 %vm101_vm0, %v56_v0  ;;  %2156 = vmatpush.msk.msra.mxu1 %vm101_vm0, %v57_v1  ;;  %v59_v4 = vld [vmem:[%s4217_s23 + $0x38] sm:$0xf]  ;;  %v52_v5 = vld [vmem:[%s4217_s23] sm:$0xff]  ;;  %v53_v6 = vld [vmem:[%s4217_s23 + $0x8] sm:$0xff] }
   0xa   :  { %2161 = vmatpush.msk.msra.mxu2 %vm101_vm0, %v58_v2  ;;  %2166 = vmatpush.msk.msra.mxu3 %vm101_vm0, %v59_v4  ;;  %v54_v7 = vld [vmem:[%s4217_s23 + $0x10] sm:$0xff]  ;;  %v55_v8 = vld [vmem:[%s4217_s23 + $0x18] sm:$0xff]  ;;  %v2600_v28 = vld [vmem:[%s4183_s9 + $0x1e8] sm:$0xff] }
   0xb   :  { %129 = vmatpush.msra.mxu0 %v52_v5  ;;  %158 = vmatpush.msra.mxu1 %v53_v6  ;;  %v2617_v31 = vld [vmem:[%s4183_s9 + $0x160] sm:$0xff]  ;;  %v2627_v33 = vld [vmem:[%s4183_s9 + $0x50] sm:$0xff]  ;;  %v2648_v36 = vld [vmem:[%s4183_s9 + $0x48] sm:$0xff] }
   0xc   :  { %187 = vmatpush.msra.mxu2 %v54_v7  ;;  %216 = vmatpush.msra.mxu3 %v55_v8  ;;  %v2622_v32 = vld [vmem:[%s4183_s9 + $0x1e0] sm:$0xff]  ;;  %v2632_v34 = vld [vmem:[%s4183_s9 + $0xd0] sm:$0xff]  ;;  %v2653_v37 = vld [vmem:[%s4183_s9 + $0xc8] sm:$0xff] }
   0xd   :  { %2152 = vmatmul.msk.f32.vlgmr.msra.gmra.mxu0 %vm88_vm1, %v60_v9  ;;  %2157 = vmatmul.msk.f32.vlgmr.msra.gmra.mxu1 %vm88_vm1, %v60_v9  ;;  %v62_v35 = vld [vmem:[%s4181_s1 + $0x10] sm:$0xff]  ;;  %v2660_v38 = vld [vmem:[%s4183_s9 + $0x158] sm:$0xff]  ;;  %v2672_v40 = vld [vmem:[%s4183_s9 + $0x40] sm:$0xff] }
   0xe   :  { %2162 = vmatmul.msk.f32.vlgmr.msra.gmra.mxu2 %vm88_vm1, %v60_v9  ;;  %2167 = vmatmul.msk.f32.vlgmr.msra.gmra.mxu3 %vm88_vm1, %v60_v9  ;;  %v2665_v39 = vld [vmem:[%s4183_s9 + $0x1d8] sm:$0xff]  ;;  %v2677_v41 = vld [vmem:[%s4183_s9 + $0xc0] sm:$0xff]  ;;  %v2684_v42 = vld [vmem:[%s4183_s9 + $0x150] sm:$0xff] }
   0xf   :  { %327 = vmatpush.msrb.mxu0 %v2510_v12  ;;  %356 = vmatpush.msrb.mxu1 %v2515_v13  ;;  %v2689_v43 = vld [vmem:[%s4183_s9 + $0x1d0] sm:$0xff]  ;;  %v2696_v44 = vld [vmem:[%s4183_s9 + $0x38] sm:$0xff]  ;;  %v2708_v46 = vld [vmem:[%s4183_s9 + $0x148] sm:$0xff] }
  0x10   :  { %385 = vmatpush.msrb.mxu2 %v2539_v17  ;;  %414 = vmatpush.msrb.mxu3 %v2544_v18  ;;  %v2701_v45 = vld [vmem:[%s4183_s9 + $0xb8] sm:$0xff]  ;;  %v2713_v47 = vld [vmem:[%s4183_s9 + $0x1c8] sm:$0xff]  ;;  %v2725_v49 = vld [vmem:[%s4183_s9 + $0x30] sm:$0xff] }
  0x11   :  { %328 = vmatpush.msrb.mxu0 %v2522_v14  ;;  %357 = vmatpush.msrb.mxu1 %v2527_v15  ;;  %v63_v48 = vld [vmem:[%s4181_s1 + $0x18] sm:$0xff]  ;;  %v2730_v50 = vld [vmem:[%s4183_s9 + $0xb0] sm:$0xff]  ;;  %v2739_v51 = vld [vmem:[%s4183_s9 + $0x140] sm:$0xff] }
  0x12   :  { %386 = vmatpush.msrb.mxu2 %v2556_v20  ;;  %415 = vmatpush.msrb.mxu3 %v2561_v21  ;;  %v2744_v52 = vld [vmem:[%s4183_s9 + $0x1c0] sm:$0xff]  ;;  %v2751_v53 = vld [vmem:[%s4183_s9 + $0x28] sm:$0xff]  ;;  %v2763_v55 = vld [vmem:[%s4183_s9 + $0x138] sm:$0xff] }
  0x13   :  { %329 = vmatpush.msrb.mxu0 %v2534_v16  ;;  %358 = vmatpush.msrb.mxu1 %v2549_v19  ;;  %v2756_v54 = vld [vmem:[%s4183_s9 + $0xa8] sm:$0xff]  ;;  %v2768_v56 = vld [vmem:[%s4183_s9 + $0x1b8] sm:$0xff]  ;;  %v2775_v57 = vld [vmem:[%s4183_s9 + $0x20] sm:$0xff] }
  0x14   :  { %75 = vperm.xlu0 %2221, %v65_v23   ;;  %85 = vperm.xlu1 %2222, %v67_v24   ;;  %v2780_v58 = vld [vmem:[%s4183_s9 + $0xa0] sm:$0xff]  ;;  %v2787_v59 = vld [vmem:[%s4183_s9 + $0x130] sm:$0xff]  ;;  %v2799_v61 = vld [vmem:[%s4183_s9 + $0x18] sm:$0xff] }
  0x15   :  { %2153 = vmatmul.msk.f32.gmra.mxu0 %vm88_vm1, %v61_v22  ;;  %2158 = vmatmul.msk.f32.gmra.mxu1 %vm88_vm1, %v61_v22  ;;  %v2792_v60 = vld [vmem:[%s4183_s9 + $0x1b0] sm:$0xff]  ;;  %v2804_v62 = vld [vmem:[%s4183_s9 + $0x98] sm:$0xff]  ;;  %v2826_v1 = vld [vmem:[%s4183_s9 + $0x128] sm:$0xff] }
  0x16   :  { %2163 = vmatmul.msk.f32.gmra.mxu2 %vm88_vm1, %v61_v22  ;;  %2168 = vmatmul.msk.f32.gmra.mxu3 %vm88_vm1, %v61_v22  ;;  %v2816_v63 = vld [vmem:[%s4183_s9 + $0x10] sm:$0xff]  ;;  %v2833_v2 = vld [vmem:[%s4183_s9 + $0x1a8] sm:$0xff]  ;;  %v2850_v5 = vld [vmem:[%s4183_s9 + $0x120] sm:$0xff] }
  0x17   :  { %330 = vmatpush.msrb.mxu0 %v2583_v25  ;;  %359 = vmatpush.msrb.mxu1 %v2588_v26  ;;  %v2821_v0 = vld [vmem:[%s4183_s9 + $0x90] sm:$0xff]  ;;  %v2840_v3 = vld [vmem:[%s4183_s9 + $0x8] sm:$0xff]  ;;  %v2857_v6 = vld [vmem:[%s4183_s9 + $0x1a0] sm:$0xff] }
  0x18   :  { %387 = vmatpush.msrb.mxu2 %v2595_v27  ;;  %416 = vmatpush.msrb.mxu3 %v2600_v28  ;;  %v2845_v4 = vld [vmem:[%s4183_s9 + $0x88] sm:$0xff]  ;;  %v2864_v7 = vld [vmem:[%s4183_s9] sm:$0xff]  ;;  %v2874_v9 = vld [vmem:[%s4183_s9 + $0x118] sm:$0xff] }
  0x19   :  { %331 = vmatpush.msrb.mxu0 %v2605_v29  ;;  %360 = vmatpush.msrb.mxu1 %v2610_v30  ;;  %v2869_v8 = vld [vmem:[%s4183_s9 + $0x80] sm:$0xff]  ;;  %v2881_v10 = vld [vmem:[%s4183_s9 + $0x198] sm:$0xff]  ;;  %v2886_v11 = vld [vmem:[%s4183_s9 + $0x110] sm:$0xff] }
  0x1a   :  { %388 = vmatpush.msrb.mxu2 %v2617_v31  ;;  %417 = vmatpush.msrb.mxu3 %v2622_v32  ;;  %v2891_v22 = vld [vmem:[%s4183_s9 + $0x190] sm:$0xff]  ;;  %v2902_v23 = vld [vmem:[%s4183_s9 + $0x108] sm:$0xff] }
  0x1b   :  { %332 = vmatpush.msrb.mxu0 %v2627_v33  ;;  %361 = vmatpush.msrb.mxu1 %v2632_v34  ;;  %v2907_v24 = vld [vmem:[%s4183_s9 + $0x188] sm:$0xff] }
  0x1c   :  { %389 = vmatpush.msrb.mxu2 %v2660_v38  ;;  %418 = vmatpush.msrb.mxu3 %v2665_v39 }
  0x1d   :  { %2154 = vmatmul.msk.f32.gmra.mxu0 %vm88_vm1, %v62_v35  ;;  %2159 = vmatmul.msk.f32.gmra.mxu1 %vm88_vm1, %v62_v35 }
  0x1e   :  { %2164 = vmatmul.msk.f32.gmra.mxu2 %vm88_vm1, %v62_v35  ;;  %2169 = vmatmul.msk.f32.gmra.mxu3 %vm88_vm1, %v62_v35 }
  0x1f   :  { %333 = vmatpush.msrb.mxu0 %v2648_v36  ;;  %362 = vmatpush.msrb.mxu1 %v2653_v37 }
  0x20   :  { %390 = vmatpush.msrb.mxu2 %v2684_v42  ;;  %419 = vmatpush.msrb.mxu3 %v2689_v43 }
  0x21   :  { %334 = vmatpush.msrb.mxu0 %v2672_v40  ;;  %363 = vmatpush.msrb.mxu1 %v2677_v41 }
  0x22   :  { %391 = vmatpush.msrb.mxu2 %v2708_v46  ;;  %420 = vmatpush.msrb.mxu3 %v2713_v47 }
  0x23   :  { %335 = vmatpush.msrb.mxu0 %v2696_v44  ;;  %364 = vmatpush.msrb.mxu1 %v2701_v45 }
  0x24   :  { %392 = vmatpush.msrb.mxu2 %v2739_v51  ;;  %421 = vmatpush.msrb.mxu3 %v2744_v52 }
  0x25   :  { %2155 = vmatmul.msk.f32.gmra.mxu0 %vm88_vm1, %v63_v48  ;;  %2160 = vmatmul.msk.f32.gmra.mxu1 %vm88_vm1, %v63_v48 }
  0x26   :  { %2165 = vmatmul.msk.f32.gmra.mxu2 %vm88_vm1, %v63_v48  ;;  %2170 = vmatmul.msk.f32.gmra.mxu3 %vm88_vm1, %v63_v48  ;;  %vm703_vm1 = vcmask 1044480  }
  0x27   :  { %336 = vmatpush.msrb.mxu0 %v2725_v49  ;;  %365 = vmatpush.msrb.mxu1 %v2730_v50 }
  0x28   :  { %393 = vmatpush.msrb.mxu2 %v2763_v55  ;;  %422 = vmatpush.msrb.mxu3 %v2768_v56 }
  0x29   :  { %337 = vmatpush.msrb.mxu0 %v2751_v53  ;;  %366 = vmatpush.msrb.mxu1 %v2756_v54 }
  0x2a   :  { %394 = vmatpush.msrb.mxu2 %v2787_v59  ;;  %423 = vmatpush.msrb.mxu3 %v2792_v60 }
  0x2b   :  { %338 = vmatpush.msrb.mxu0 %v2775_v57  ;;  %367 = vmatpush.msrb.mxu1 %v2780_v58 }
  0x2c   :  { %395 = vmatpush.msrb.mxu2 %v2826_v1  ;;  %424 = vmatpush.msrb.mxu3 %v2833_v2 }
  0x2d   :  { %339 = vmatpush.msrb.mxu0 %v2799_v61  ;;  %368 = vmatpush.msrb.mxu1 %v2804_v62 }
  0x2e   :  { %396 = vmatpush.msrb.mxu2 %v2850_v5  ;;  %425 = vmatpush.msrb.mxu3 %v2857_v6 }
  0x2f   :  { %340 = vmatpush.msrb.mxu0 %v2816_v63  ;;  %369 = vmatpush.msrb.mxu1 %v2821_v0 }
  0x30   :  { %397 = vmatpush.msrb.mxu2 %v2874_v9  ;;  %426 = vmatpush.msrb.mxu3 %v2881_v10 }
  0x31   :  { %341 = vmatpush.msrb.mxu0 %v2840_v3  ;;  %370 = vmatpush.msrb.mxu1 %v2845_v4 }
  0x32   :  { %398 = vmatpush.msrb.mxu2 %v2886_v11  ;;  %427 = vmatpush.msrb.mxu3 %v2891_v22 }
  0x33   :  { %342 = vmatpush.msrb.mxu0 %v2864_v7  ;;  %371 = vmatpush.msrb.mxu1 %v2869_v8 }
  0x34   :  { %399 = vmatpush.msrb.mxu2 %v2902_v23  ;;  %428 = vmatpush.msrb.mxu3 %v2907_v24 }
  0x35   :  { %459 = vmatpush.msra.mxu0 %v2510_v12  ;;  %488 = vmatpush.msra.mxu1 %v2515_v13  ;;  %v2916_v12 = vld [vmem:[%s4183_s9 + $0x100] sm:$0xff] }
  0x36   :  { %v2921_v13 = vld [vmem:[%s4183_s9 + $0x180] sm:$0xff]  ;;  %400 = vmatpush.msrb.mxu2 %v2916_v12 }
  0x37   :  { %460 = vmatpush.msra.mxu0 %v2522_v14  ;;  %489 = vmatpush.msra.mxu1 %v2527_v15 }
  0x38   :  { %429 = vmatpush.msrb.mxu3 %v2921_v13  ;;  %517 = vmatpush.msra.mxu2 %v2539_v17 }
  0x39   :  { %461 = vmatpush.msra.mxu0 %v2534_v16  ;;  %490 = vmatpush.msra.mxu1 %v2549_v19 }
  0x3a   :  { %546 = vmatpush.msra.mxu3 %v2544_v18  ;;  %518 = vmatpush.msra.mxu2 %v2556_v20 }
  0x3b   :  { %462 = vmatpush.msra.mxu0 %v2583_v25  ;;  %491 = vmatpush.msra.mxu1 %v2588_v26 }
  0x3c   :  { %547 = vmatpush.msra.mxu3 %v2561_v21  ;;  %519 = vmatpush.msra.mxu2 %v2595_v27 }
  0x3d   :  { %463 = vmatpush.msra.mxu0 %v2605_v29  ;;  %492 = vmatpush.msra.mxu1 %v2610_v30 }
  0x3e   :  { %548 = vmatpush.msra.mxu3 %v2600_v28  ;;  %520 = vmatpush.msra.mxu2 %v2617_v31 }
  0x3f   :  { %464 = vmatpush.msra.mxu0 %v2627_v33  ;;  %493 = vmatpush.msra.mxu1 %v2632_v34 }
  0x40   :  { %549 = vmatpush.msra.mxu3 %v2622_v32  ;;  %521 = vmatpush.msra.mxu2 %v2660_v38 }
  0x41   :  { %465 = vmatpush.msra.mxu0 %v2648_v36  ;;  %494 = vmatpush.msra.mxu1 %v2653_v37 }
  0x42   :  { %550 = vmatpush.msra.mxu3 %v2665_v39  ;;  %522 = vmatpush.msra.mxu2 %v2684_v42 }
  0x43   :  { %466 = vmatpush.msra.mxu0 %v2672_v40  ;;  %495 = vmatpush.msra.mxu1 %v2677_v41 }
  0x44   :  { %551 = vmatpush.msra.mxu3 %v2689_v43  ;;  %523 = vmatpush.msra.mxu2 %v2708_v46 }
  0x45   :  { %467 = vmatpush.msra.mxu0 %v2696_v44  ;;  %496 = vmatpush.msra.mxu1 %v2701_v45 }
  0x46   :  { %552 = vmatpush.msra.mxu3 %v2713_v47  ;;  %524 = vmatpush.msra.mxu2 %v2739_v51 }
  0x47   :  { %468 = vmatpush.msra.mxu0 %v2725_v49  ;;  %497 = vmatpush.msra.mxu1 %v2730_v50 }
  0x48   :  { %553 = vmatpush.msra.mxu3 %v2744_v52  ;;  %525 = vmatpush.msra.mxu2 %v2763_v55 }
  0x49   :  { %469 = vmatpush.msra.mxu0 %v2751_v53  ;;  %498 = vmatpush.msra.mxu1 %v2756_v54 }
  0x4a   :  { %554 = vmatpush.msra.mxu3 %v2768_v56  ;;  %526 = vmatpush.msra.mxu2 %v2787_v59 }
  0x4b   :  { %470 = vmatpush.msra.mxu0 %v2775_v57  ;;  %499 = vmatpush.msra.mxu1 %v2780_v58 }
  0x4c   :  { %555 = vmatpush.msra.mxu3 %v2792_v60  ;;  %527 = vmatpush.msra.mxu2 %v2826_v1 }
  0x4d   :  { %471 = vmatpush.msra.mxu0 %v2799_v61  ;;  %500 = vmatpush.msra.mxu1 %v2804_v62 }
  0x4e   :  { %556 = vmatpush.msra.mxu3 %v2833_v2  ;;  %528 = vmatpush.msra.mxu2 %v2850_v5 }
  0x4f   :  { %472 = vmatpush.msra.mxu0 %v2816_v63  ;;  %501 = vmatpush.msra.mxu1 %v2821_v0 }
  0x50   :  { %557 = vmatpush.msra.mxu3 %v2857_v6  ;;  %529 = vmatpush.msra.mxu2 %v2874_v9 }
  0x51   :  { %473 = vmatpush.msra.mxu0 %v2840_v3  ;;  %502 = vmatpush.msra.mxu1 %v2845_v4 }
  0x52   :  { %558 = vmatpush.msra.mxu3 %v2881_v10  ;;  %530 = vmatpush.msra.mxu2 %v2886_v11 }
  0x53   :  { %474 = vmatpush.msra.mxu0 %v2864_v7  ;;  %503 = vmatpush.msra.mxu1 %v2869_v8 }
  0x54   :  { %559 = vmatpush.msra.mxu3 %v2891_v22  ;;  %531 = vmatpush.msra.mxu2 %v2902_v23 }
  0x56   :  { %560 = vmatpush.msra.mxu3 %v2907_v24  ;;  %532 = vmatpush.msra.mxu2 %v2916_v12 }
  0x58   :  { %561 = vmatpush.msra.mxu3 %v2921_v13 }
  0x74   :  { %v81_v31 = vpop.permute.xlu1 %80 }
  0x75   :  { %v71_v14 = vpop.permute.xlu0 %70 }
  0x86   :  { %v76_v19 = vpop.permute.xlu0 %75  ;;  %v86_v40 = vpop.permute.xlu1 %85 }
  0x8a   :  { %v131_v15 = vpop.f32.mrf.mxu0  ;;  %v160_v16 = vpop.f32.mrf.mxu1 }
  0x8b   :  { %v2971_v17 = vadd.f32 %v131_v15, %v71_v14  ;;  %v2973_v18 = vadd.f32 %v160_v16, %v71_v14 }
  0x8d   :  { %343 = vmatmul.f32.vlgmr.msrb.gmra.mxu0 %v2971_v17  ;;  %372 = vmatmul.f32.vlgmr.msrb.gmra.mxu1 %v2973_v18  ;;  %v443_v53 = vmul.f32 %v2971_v17, %v2971_v17  ;;  %v444_v54 = vmul.f32 %v2973_v18, %v2973_v18 }
  0x91   :  { %v189_v20 = vpop.f32.mrf.mxu2  ;;  %v218_v21 = vpop.f32.mrf.mxu3 }
  0x92   :  { %v2987_v25 = vadd.f32 %v189_v20, %v71_v14  ;;  %v2989_v26 = vadd.f32 %v218_v21, %v71_v14  ;;  %v134_v27 = vpop.f32.mrf.mxu0  ;;  %v163_v28 = vpop.f32.mrf.mxu1 }
  0x93   :  { %v2991_v29 = vadd.f32 %v134_v27, %v76_v19  ;;  %v2993_v30 = vadd.f32 %v163_v28, %v76_v19 }
  0x94   :  { %401 = vmatmul.f32.vlgmr.msrb.gmra.mxu2 %v2987_v25  ;;  %430 = vmatmul.f32.vlgmr.msrb.gmra.mxu3 %v2989_v26  ;;  %v445_v55 = vmul.f32 %v2987_v25, %v2987_v25  ;;  %v446_v56 = vmul.f32 %v2989_v26, %v2989_v26 }
  0x95   :  { %346 = vmatmul.f32.gmra.mxu0 %v2991_v29  ;;  %375 = vmatmul.f32.gmra.mxu1 %v2993_v30  ;;  %v447_v57 = vmul.f32 %v2991_v29, %v2991_v29  ;;  %v448_v58 = vmul.f32 %v2993_v30, %v2993_v30 }
  0x99   :  { %v192_v32 = vpop.f32.mrf.mxu2  ;;  %v221_v33 = vpop.f32.mrf.mxu3 }
  0x9a   :  { %v3003_v34 = vadd.f32 %v192_v32, %v76_v19  ;;  %v3005_v35 = vadd.f32 %v221_v33, %v76_v19  ;;  %v137_v36 = vpop.f32.mrf.mxu0  ;;  %v166_v37 = vpop.f32.mrf.mxu1 }
  0x9b   :  { %v3007_v38 = vadd.f32 %v137_v36, %v81_v31  ;;  %v3009_v39 = vadd.f32 %v166_v37, %v81_v31 }
  0x9c   :  { %404 = vmatmul.f32.gmra.mxu2 %v3003_v34  ;;  %433 = vmatmul.f32.gmra.mxu3 %v3005_v35  ;;  %v449_v59 = vmul.f32 %v3003_v34, %v3003_v34  ;;  %v450_v60 = vmul.f32 %v3005_v35, %v3005_v35 }
  0x9d   :  { %349 = vmatmul.f32.gmra.mxu0 %v3007_v38  ;;  %378 = vmatmul.f32.gmra.mxu1 %v3009_v39  ;;  %v451_v61 = vmul.f32 %v3007_v38, %v3007_v38  ;;  %v452_v62 = vmul.f32 %v3009_v39, %v3009_v39 }
  0xa1   :  { %v195_v41 = vpop.f32.mrf.mxu2  ;;  %v224_v42 = vpop.f32.mrf.mxu3 }
  0xa2   :  { %v3015_v43 = vadd.f32 %v195_v41, %v81_v31  ;;  %v3017_v44 = vadd.f32 %v224_v42, %v81_v31  ;;  %v140_v45 = vpop.f32.mrf.mxu0  ;;  %v169_v46 = vpop.f32.mrf.mxu1 }
  0xa3   :  { %v3019_v47 = vadd.f32 %v140_v45, %v86_v40  ;;  %v3021_v48 = vadd.f32 %v169_v46, %v86_v40 }
  0xa4   :  { %407 = vmatmul.f32.gmra.mxu2 %v3015_v43  ;;  %436 = vmatmul.f32.gmra.mxu3 %v3017_v44  ;;  %v453_v63 = vmul.f32 %v3015_v43, %v3015_v43  ;;  %v454_v0 = vmul.f32 %v3017_v44, %v3017_v44 }
  0xa5   :  { %352 = vmatmul.f32.gmra.mxu0 %v3019_v47  ;;  %381 = vmatmul.f32.gmra.mxu1 %v3021_v48  ;;  %v455_v1 = vmul.f32 %v3019_v47, %v3019_v47  ;;  %v456_v2 = vmul.f32 %v3021_v48, %v3021_v48 }
  0xa9   :  { %v198_v49 = vpop.f32.mrf.mxu2  ;;  %v227_v50 = vpop.f32.mrf.mxu3 }
  0xaa   :  { %v3027_v51 = vadd.f32 %v198_v49, %v86_v40  ;;  %v3029_v52 = vadd.f32 %v227_v50, %v86_v40 }
  0xac   :  { %410 = vmatmul.f32.gmra.mxu2 %v3027_v51  ;;  %439 = vmatmul.f32.gmra.mxu3 %v3029_v52  ;;  %v457_v3 = vmul.f32 %v3027_v51, %v3027_v51  ;;  %v458_v4 = vmul.f32 %v3029_v52, %v3029_v52 }
  0xad   :  { %475 = vmatmul.f32.vlgmr.msra.gmra.mxu0 %v443_v53  ;;  %504 = vmatmul.f32.vlgmr.msra.gmra.mxu1 %v444_v54 }
  0xb4   :  { %533 = vmatmul.f32.vlgmr.msra.gmra.mxu2 %v445_v55  ;;  %562 = vmatmul.f32.vlgmr.msra.gmra.mxu3 %v446_v56 }
  0xb5   :  { %478 = vmatmul.f32.gmra.mxu0 %v447_v57  ;;  %507 = vmatmul.f32.gmra.mxu1 %v448_v58 }
  0xbc   :  { %536 = vmatmul.f32.gmra.mxu2 %v449_v59  ;;  %565 = vmatmul.f32.gmra.mxu3 %v450_v60 }
  0xbd   :  { %481 = vmatmul.f32.gmra.mxu0 %v451_v61  ;;  %510 = vmatmul.f32.gmra.mxu1 %v452_v62 }
  0xc4   :  { %539 = vmatmul.f32.gmra.mxu2 %v453_v63  ;;  %568 = vmatmul.f32.gmra.mxu3 %v454_v0 }
  0xc5   :  { %484 = vmatmul.f32.gmra.mxu0 %v455_v1  ;;  %513 = vmatmul.f32.gmra.mxu1 %v456_v2 }
  0xcc   :  { %542 = vmatmul.f32.gmra.mxu2 %v457_v3  ;;  %571 = vmatmul.f32.gmra.mxu3 %v458_v4 }
 0x10a   :  { %v344_v5 = vpop.f32.mrf.mxu0  ;;  %v373_v6 = vpop.f32.mrf.mxu1 }
 0x10b   :  { %v374_v12 = vadd.f32 %v373_v6, %v344_v5 }
 0x112   :  { %v347_v7 = vpop.f32.mrf.mxu0  ;;  %v376_v8 = vpop.f32.mrf.mxu1 }
 0x113   :  { %v377_v21 = vadd.f32 %v376_v8, %v347_v7 }
 0x117   :  { %v402_v9 = vpop.f32.mrf.mxu2  ;;  %v431_v10 = vpop.f32.mrf.mxu3 }
 0x118   :  { %v403_v15 = vadd.f32 %v402_v9, %v374_v12 }
 0x11a   :  { %v350_v11 = vpop.f32.mrf.mxu0  ;;  %v379_v22 = vpop.f32.mrf.mxu1  ;;  %v432_v16 = vadd.f32 %v431_v10, %v403_v15 }
 0x11b   :  { %v380_v37 = vadd.f32 %v379_v22, %v350_v11 }
 0x11c   :  { %v576_v28 = vsel %vm575_vm2, %v432_v16, 0.0 }
 0x11d   :  { %v577_v33 = vrot.slane %v576_v28, 4 }
 0x11f   :  { %v405_v23 = vpop.f32.mrf.mxu2  ;;  %v434_v24 = vpop.f32.mrf.mxu3  ;;  %v578_v45 = vadd.f32 %v577_v33, %v576_v28 }
 0x120   :  { %v406_v27 = vadd.f32 %v405_v23, %v377_v21 }
 0x121   :  { %v579_v53 = vrot.slane %v578_v45, 2 }
 0x122   :  { %v353_v13 = vpop.f32.mrf.mxu0  ;;  %v382_v14 = vpop.f32.mrf.mxu1  ;;  %v435_v36 = vadd.f32 %v434_v24, %v406_v27 }
 0x123   :  { %v383_v59 = vadd.f32 %v382_v14, %v353_v13  ;;  %v580_v63 = vadd.f32 %v579_v53, %v578_v45 }
 0x124   :  { %v606_v46 = vsel %vm575_vm2, %v435_v36, 0.0 }
 0x125   :  { %v607_v49 = vrot.slane %v606_v46, 4  ;;  %v581_v6 = vrot.slane %v580_v63, 1 }
 0x127   :  { %v408_v19 = vpop.f32.mrf.mxu2  ;;  %v437_v20 = vpop.f32.mrf.mxu3  ;;  %v608_v61 = vadd.f32 %v607_v49, %v606_v46  ;;  %v582_v15 = vadd.f32 %v581_v6, %v580_v63 }
 0x128   :  { %v409_v42 = vadd.f32 %v408_v19, %v380_v37 }
 0x129   :  { %v609_v4 = vrot.slane %v608_v61, 2  ;;  %v3071_v36 = vmul.f32 0.0005, %v582_v15 }
 0x12a   :  { %v476_v31 = vpop.f32.mrf.mxu0  ;;  %v505_v32 = vpop.f32.mrf.mxu1  ;;  %v438_v50 = vadd.f32 %v437_v20, %v409_v42 }
 0x12b   :  { %v506_v54 = vadd.f32 %v505_v32, %v476_v31  ;;  %v610_v24 = vadd.f32 %v609_v4, %v608_v61 }
 0x12c   :  { %v636_v62 = vsel %vm575_vm2, %v438_v50, 0.0 }
 0x12d   :  { %v637_v2 = vrot.slane %v636_v62, 4  ;;  %v611_v28 = vrot.slane %v610_v24, 1 }
 0x12f   :  { %v411_v40 = vpop.f32.mrf.mxu2  ;;  %v440_v41 = vpop.f32.mrf.mxu3  ;;  %v638_v22 = vadd.f32 %v637_v2, %v636_v62  ;;  %v612_v50 = vadd.f32 %v611_v28, %v610_v24 }
 0x130   :  { %v412_v0 = vadd.f32 %v411_v40, %v383_v59 }
 0x131   :  { %v639_v21 = vrot.slane %v638_v22, 2 }
 0x132   :  { %v479_v55 = vpop.f32.mrf.mxu0  ;;  %v508_v56 = vpop.f32.mrf.mxu1  ;;  %v441_v7 = vadd.f32 %v440_v41, %v412_v0  ;;  %v3076_v0 = vmul.f32 0.0005, %v612_v50 }
 0x133   :  { %v509_v8 = vadd.f32 %v508_v56, %v479_v55  ;;  %v640_v46 = vadd.f32 %v639_v21, %v638_v22  ;;  %v592_v56 = vmul.f32 %v3071_v36, %v3071_v36 }
 0x134   :  { %v666_v16 = vsel %vm575_vm2, %v441_v7, 0.0  ;;  %v622_v22 = vmul.f32 %v3076_v0, %v3076_v0 }
 0x135   :  { %v667_v31 = vrot.slane %v666_v16, 4  ;;  %v641_v61 = vrot.slane %v640_v46, 1 }
 0x137   :  { %v534_v57 = vpop.f32.mrf.mxu2  ;;  %v563_v58 = vpop.f32.mrf.mxu3  ;;  %v668_v53 = vadd.f32 %v667_v31, %v666_v16 }
 0x138   :  { %v535_v60 = vadd.f32 %v534_v57, %v506_v54 }
 0x13a   :  { %v564_v1 = vadd.f32 %v563_v58, %v535_v60  ;;  %v482_v13 = vpop.f32.mrf.mxu0  ;;  %v511_v14 = vpop.f32.mrf.mxu1 }
 0x13b   :  { %v512_v37 = vadd.f32 %v511_v14, %v482_v13 }
 0x13c   :  { %v583_v3 = vsel %vm575_vm2, %v564_v1, 0.0  ;;  %v669_v1 = vrot.slane %v668_v53, 2 }
 0x13d   :  { %v584_v5 = vrot.slane %v583_v3, 4 }
 0x13f   :  { %v585_v9 = vadd.f32 %v584_v5, %v583_v3  ;;  %v537_v10 = vpop.f32.mrf.mxu2  ;;  %v566_v11 = vpop.f32.mrf.mxu3 }
 0x140   :  { %v538_v23 = vadd.f32 %v537_v10, %v509_v8  ;;  %v642_v8 = vadd.f32 %v641_v61, %v640_v46 }
 0x141   :  { %v586_v12 = vrot.slane %v585_v9, 2 }
 0x142   :  { %v567_v19 = vadd.f32 %v566_v11, %v538_v23  ;;  %v485_v59 = vpop.f32.mrf.mxu0  ;;  %v514_v60 = vpop.f32.mrf.mxu1  ;;  %v326_v11 = vld [vmem:[%s4184_s10] sm:$0xff]  ;;  %v670_v23 = vadd.f32 %v669_v1, %v668_v53 }
 0x143   :  { %v587_v20 = vadd.f32 %v586_v12, %v585_v9  ;;  %v515_v4 = vadd.f32 %v514_v60, %v485_v59  ;;  %710 = vst [vmem:[#allocation1] ss:$4 sm:$0xff] %v326_v11 }
 0x144   :  { %v613_v27 = vsel %vm575_vm2, %v567_v19, 0.0  ;;  %v3083_v19 = vmul.f32 0.0005, %v642_v8 }
 0x145   :  { %v588_v32 = vrot.slane %v587_v20, 1  ;;  %v614_v33 = vrot.slane %v613_v27, 4 }
 0x147   :  { %v589_v40 = vadd.f32 %v588_v32, %v587_v20  ;;  %v615_v41 = vadd.f32 %v614_v33, %v613_v27  ;;  %v540_v42 = vpop.f32.mrf.mxu2  ;;  %v569_v45 = vpop.f32.mrf.mxu3  ;;  %v671_v27 = vrot.slane %v670_v23, 1 }
 0x148   :  { %v541_v49 = vadd.f32 %v540_v42, %v512_v37 }
 0x149   :  { %v591_v54 = vmul.f32 0.0005, %v589_v40  ;;  %v616_v55 = vrot.slane %v615_v41, 2  ;;  %v672_v46 = vadd.f32 %v671_v27, %v670_v23 }
 0x14a   :  { %v570_v57 = vadd.f32 %v569_v45, %v541_v49  ;;  %v711_v42 = vld.sshfl [vmem:[#allocation1] sm:$0xff pattern:$0x73625140]  ;;  %v712_v45 = vld.sshfl [vmem:[#allocation1 + $0x8] sm:$0xff pattern:$0x73625140] }
 0x14b   :  { %v617_v58 = vadd.f32 %v616_v55, %v615_v41  ;;  %v593_v62 = vsub.f32 %v591_v54, %v592_v56  ;;  %v652_v41 = vmul.f32 %v3083_v19, %v3083_v19  ;;  %2171 = vmatpush.msk.msrb.mxu0 %vm698_vm3, %v711_v42  ;;  %2173 = vmatpush.msk.msrb.mxu1 %vm698_vm3, %v712_v45  ;;  %v713_v55 = vld.sshfl [vmem:[#allocation1 + $0x10] sm:$0xff pattern:$0x73625140]  ;;  %v680_v56 = vmul.f32 0.0005, %v672_v46 }
 0x14c   :  { %v643_v63 = vsel %vm575_vm2, %v570_v57, 0.0 }
 0x14d   :  { %v618_v2 = vrot.slane %v617_v58, 1  ;;  %v644_v3 = vrot.slane %v643_v63, 4  ;;  %v594_v9 = vmax.f32 %v593_v62, 0.0  ;;  %2175 = vmatpush.msk.msra.mxu1 %vm698_vm3, %v713_v55 }
 0x14f   :  { %v619_v5 = vadd.f32 %v618_v2, %v617_v58  ;;  %v645_v6 = vadd.f32 %v644_v3, %v643_v63  ;;  %v543_v7 = vpop.f32.mrf.mxu2  ;;  %v572_v13 = vpop.f32.mrf.mxu3  ;;  %v3085_v20 = vadd.f32 1e-05, %v594_v9  ;;  %v682_v63 = vmul.f32 %v680_v56, %v680_v56 }
 0x150   :  { %v544_v10 = vadd.f32 %v543_v7, %v515_v4 }
 0x151   :  { %v621_v24 = vmul.f32 0.0005, %v619_v5  ;;  %v646_v12 = vrot.slane %v645_v6, 2  ;;  %2354 = vrsqrt.f32 %v3085_v20  ;;  %v714_v5 = vld.sshfl [vmem:[#allocation1 + $0x18] sm:$0xff pattern:$0x73625140]  ;;  %vm602_vm7 = vweird.f32 %v3085_v20 }
 0x152   :  { %v573_v14 = vadd.f32 %v572_v13, %v544_v10 }
 0x153   :  { %v623_v15 = vsub.f32 %v621_v24, %v622_v22  ;;  %v647_v16 = vadd.f32 %v646_v12, %v645_v6  ;;  %v1355_v6 = vld [vmem:[%s4185_s12] sm:$0xf] }
 0x154   :  { %v673_v21 = vsel %vm575_vm2, %v573_v14, 0.0  ;;  %1680 = vst [vmem:[#allocation1] ss:$4 sm:$0xff] %v1355_v6 }
 0x155   :  { %v624_v28 = vmax.f32 %v623_v15, 0.0  ;;  %v648_v31 = vrot.slane %v647_v16, 1  ;;  %v674_v32 = vrot.slane %v673_v21, 4 }
 0x157   :  { %v3088_v33 = vadd.f32 1e-05, %v624_v28  ;;  %v649_v37 = vadd.f32 %v648_v31, %v647_v16  ;;  %v675_v40 = vadd.f32 %v674_v32, %v673_v21  ;;  %v2355_v59 = vpop.eup %2354 }
 0x158   :  { %v597_v1 = vmul.f32 %v2355_v59, %v3085_v20  ;;  %vm603_vm5 = vweird.f32 %v2355_v59 }
 0x159   :  { %2356 = vrsqrt.f32 %v3088_v33  ;;  %v651_v49 = vmul.f32 0.0005, %v649_v37  ;;  %v676_v50 = vrot.slane %v675_v40, 2  ;;  %vm3106_vm10 = vmor %vm602_vm7, %vm603_vm5  ;;  %vm632_vm11 = vweird.f32 %v3088_v33 }
 0x15a   :  { %v598_v7 = vmul.f32 %v2355_v59, %v597_v1  ;;  %vm705_vm5 = vcmask 1045504  }
 0x15b   :  { %v653_v53 = vsub.f32 %v651_v49, %v652_v41  ;;  %v677_v54 = vadd.f32 %v676_v50, %v675_v40  ;;  %v697_v40 = vsel %vm4214_vm4, %v3071_v36, %v3076_v0 }
 0x15c   :  { %v599_v23 = vmul.f32 0.5, %v598_v7  ;;  %v699_v45 = vsel %vm698_vm3, %v697_v40, %v3083_v19 }
 0x15d   :  { %v654_v57 = vmax.f32 %v653_v53, 0.0  ;;  %v678_v58 = vrot.slane %v677_v54, 1 }
 0x15e   :  { %v600_v14 = vsub.f32 1.5, %v599_v23 }
 0x15f   :  { %v2357_v60 = vpop.eup %2356  ;;  %v655_v61 = vadd.f32 1e-05, %v654_v57  ;;  %v679_v62 = vadd.f32 %v678_v58, %v677_v54 }
 0x160   :  { %v627_v3 = vmul.f32 %v2357_v60, %v3088_v33  ;;  %v601_v28 = vmul.f32 %v2355_v59, %v600_v14  ;;  %vm633_vm6 = vweird.f32 %v2357_v60  ;;  %v701_v33 = vsel %vm4215_vm9, %v699_v45, %v680_v56  ;;  %v244_v45 = vld [vmem:[%s4186_s3 + $0x70] sm:$0xff] }
 0x161   :  { %2358 = vrsqrt.f32 %v655_v61  ;;  %v681_v2 = vmul.f32 0.0005, %v679_v62  ;;  %vm3115_vm12 = vmor %vm632_vm11, %vm633_vm6  ;;  %vm662_vm13 = vweird.f32 %v655_v61  ;;  %vm4198_vm6 = vcmask 1046528  }
 0x162   :  { %v628_v9 = vmul.f32 %v2357_v60, %v627_v3  ;;  %v605_v20 = vsel %vm3106_vm10, %v2355_v59, %v601_v28 }
 0x163   :  { %v683_v4 = vsub.f32 %v681_v2, %v682_v63  ;;  %v702_v50 = vsel %vm101_vm0, %v701_v33, %v605_v20  ;;  %v236_v20 = vld [vmem:[%s4186_s3 + $0x30] sm:$0xff] }
 0x164   :  { %v629_v24 = vmul.f32 0.5, %v628_v9 }
 0x165   :  { %v684_v8 = vmax.f32 %v683_v4, 0.0 }
 0x166   :  { %v630_v15 = vsub.f32 1.5, %v629_v24 }
 0x167   :  { %v2359_v10 = vpop.eup %2358  ;;  %v685_v11 = vadd.f32 1e-05, %v684_v8 }
 0x168   :  { %v657_v22 = vmul.f32 %v2359_v10, %v655_v61  ;;  %v631_v31 = vmul.f32 %v2357_v60, %v630_v15  ;;  %vm663_vm8 = vweird.f32 %v2359_v10  ;;  %v234_v15 = vld [vmem:[%s4186_s3 + $0x20] sm:$0xff] }
 0x169   :  { %2360 = vrsqrt.f32 %v685_v11  ;;  %vm664_vm14 = vmor %vm662_vm13, %vm663_vm8  ;;  %vm692_vm7 = vweird.f32 %v685_v11 }
 0x16a   :  { %v658_v12 = vmul.f32 %v2359_v10, %v657_v22  ;;  %v635_v36 = vsel %vm3115_vm12, %v2357_v60, %v631_v31 }
 0x16b   :  { %v704_v53 = vsel %vm703_vm1, %v702_v50, %v635_v36 }
 0x16c   :  { %v659_v13 = vmul.f32 0.5, %v658_v12 }
 0x16e   :  { %v660_v21 = vsub.f32 1.5, %v659_v13 }
 0x16f   :  { %v2361_v16 = vpop.eup %2360 }
 0x170   :  { %v687_v27 = vmul.f32 %v2361_v16, %v685_v11  ;;  %v661_v37 = vmul.f32 %v2359_v10, %v660_v21  ;;  %vm693_vm15 = vweird.f32 %v2361_v16 }
 0x171   :  { %vm694_vm10 = vmor %vm692_vm7, %vm693_vm15 }
 0x172   :  { %v688_v32 = vmul.f32 %v2361_v16, %v687_v27  ;;  %v665_v49 = vsel %vm664_vm14, %v2359_v10, %v661_v37 }
 0x173   :  { %v706_v55 = vsel %vm705_vm5, %v704_v53, %v665_v49  ;;  %v255_v49 = vld [vmem:[%s4187_s4 + $0x48] sm:$0xff] }
 0x174   :  { %v689_v42 = vmul.f32 0.5, %v688_v32 }
 0x176   :  { %v690_v0 = vsub.f32 1.5, %v689_v42  ;;  %v254_v42 = vld [vmem:[%s4187_s4 + $0x40] sm:$0xff] }
 0x178   :  { %v691_v19 = vmul.f32 %v2361_v16, %v690_v0 }
 0x17a   :  { %v695_v54 = vsel %vm694_vm10, %v2361_v16, %v691_v19  ;;  %v250_v19 = vld [vmem:[%s4187_s4 + $0x20] sm:$0xff] }
 0x17b   :  { %v708_v57 = vsel %vm4198_vm6, %v706_v55, %v695_v54 }
 0x17c   :  { %2172 = vmatmul.msk.f32.vlgmr.msrb.gmra.mxu0 %vm575_vm2, %v708_v57  ;;  %2174 = vmatmul.msk.f32.vlgmr.msrb.gmra.mxu1 %vm575_vm2, %v708_v57 }
 0x17d   :  { %2177 = vmatpush.msk.msrb.mxu1 %vm698_vm3, %v714_v5 }
 0x184   :  { %2176 = vmatmul.msk.f32.vlgmr.msra.gmra.mxu1 %vm575_vm2, %v708_v57 }
 0x18c   :  { %2178 = vmatmul.msk.f32.vlgmr.msrb.gmra.mxu1 %vm575_vm2, %v708_v57  ;;  %v251_v57 = vld [vmem:[%s4187_s4 + $0x28] sm:$0xff] }
 0x1f9   :  { %v3131_v56 = vpop.f32.mrf.mxu0  ;;  %v3133_v58 = vpop.f32.mrf.mxu1 }
 0x1fa   :  { %v878_v59 = vperm.slane %v3131_v56, 2  ;;  %v879_v60 = vperm.slane %v3133_v58, 2  ;;  %v842_v61 = vperm.slane %v3131_v56, 1  ;;  %v843_v62 = vperm.slane %v3133_v58, 1 }
 0x1fb   :  { %v886_v2 = vperm.slane %v3131_v56, 6  ;;  %v887_v3 = vperm.slane %v3133_v58, 6  ;;  %v914_v6 = vperm.slane %v3131_v56, 3  ;;  %v915_v7 = vperm.slane %v3133_v58, 3 }
 0x1fc   :  { %v882_v63 = vsub.f32 %v3007_v38, %v878_v59  ;;  %v883_v1 = vsub.f32 %v3009_v39, %v879_v60  ;;  %v846_v4 = vsub.f32 %v2991_v29, %v842_v61  ;;  %v847_v5 = vsub.f32 %v2993_v30, %v843_v62  ;;  %v238_v39 = vld [vmem:[%s4186_s3 + $0x40] sm:$0xff]  ;;  %v239_v29 = vld [vmem:[%s4186_s3 + $0x48] sm:$0xff]  ;;  %v252_v61 = vld [vmem:[%s4187_s4 + $0x30] sm:$0xff] }
 0x1fd   :  { %v850_v10 = vperm.slane %v3131_v56, 5  ;;  %v851_v38 = vperm.slane %v3133_v58, 5  ;;  %v922_v30 = vperm.slane %v3131_v56, 7  ;;  %v918_v24 = vsub.f32 %v3019_v47, %v914_v6  ;;  %v235_v47 = vld [vmem:[%s4186_s3 + $0x28] sm:$0xff] }
 0x1fe   :  { %v890_v8 = vmul.f32 %v886_v2, %v882_v63  ;;  %v891_v9 = vmul.f32 %v887_v3, %v883_v1  ;;  %v919_v12 = vsub.f32 %v3021_v48, %v915_v7  ;;  %v806_v16 = vperm.slane %v3131_v56, 0  ;;  %v240_v63 = vld [vmem:[%s4186_s3 + $0x50] sm:$0xff] }
 0x1ff   :  { %v854_v22 = vmul.f32 %v850_v10, %v846_v4  ;;  %v855_v23 = vmul.f32 %v851_v38, %v847_v5  ;;  %v807_v21 = vperm.slane %v3133_v58, 0  ;;  %v923_v53 = vperm.slane %v3133_v58, 7  ;;  %v232_v38 = vld [vmem:[%s4186_s3 + $0x10] sm:$0xff] }
 0x200   :  { %v894_v31 = vmul.f32 %v890_v8, %v238_v39  ;;  %v895_v32 = vmul.f32 %v891_v9, %v239_v29  ;;  %v3194_v59 = vmul.f32 %v922_v30, %v918_v24  ;;  %v3205_v2 = vsub.f32 %v2971_v17, %v806_v16 }
 0x201   :  { %v783_v11 = vpop.f32.mrf.mxu1  ;;  %v858_v0 = vmul.f32 %v854_v22, %v234_v15  ;;  %v859_v50 = vmul.f32 %v855_v23, %v235_v47  ;;  %v3202_v1 = vmul.f32 %v923_v53, %v919_v12  ;;  %v3212_v7 = vsub.f32 %v2973_v18, %v807_v21  ;;  %v241_v12 = vld [vmem:[%s4186_s3 + $0x58] sm:$0xff] }
 0x202   :  { %v916_v13 = vperm.slane %v783_v11, 3  ;;  %v844_v14 = vperm.slane %v783_v11, 1  ;;  %v808_v27 = vperm.slane %v783_v11, 0  ;;  %v880_v28 = vperm.slane %v783_v11, 2  ;;  %v261_v47 = vld [vmem:[%s4187_s4 + $0x78] sm:$0xff] }
 0x203   :  { %v924_v37 = vperm.slane %v783_v11, 7  ;;  %v852_v41 = vperm.slane %v783_v11, 5  ;;  %v888_v36 = vperm.slane %v783_v11, 6  ;;  %v3189_v55 = vadd.f32 %v894_v31, %v254_v42  ;;  %v237_v31 = vld [vmem:[%s4186_s3 + $0x38] sm:$0xff] }
 0x204   :  { %v920_v48 = vsub.f32 %v3027_v51, %v916_v13  ;;  %v848_v40 = vsub.f32 %v3003_v34, %v844_v14  ;;  %v812_v46 = vsub.f32 %v2987_v25, %v808_v27  ;;  %v884_v51 = vsub.f32 %v3015_v43, %v880_v28  ;;  %v260_v25 = vld [vmem:[%s4187_s4 + $0x70] sm:$0xff]  ;;  %v245_v13 = vld [vmem:[%s4186_s3 + $0x78] sm:$0xff] }
 0x205   :  { %v816_v43 = vperm.slane %v783_v11, 4  ;;  %v3207_v5 = vadd.f32 %v895_v32, %v255_v49  ;;  %v3209_v6 = vadd.f32 %v858_v0, %v250_v19  ;;  %v3217_v39 = vadd.f32 %v859_v50, %v251_v57  ;;  %v257_v32 = vld [vmem:[%s4187_s4 + $0x58] sm:$0xff] }
 0x206   :  { %v928_v34 = vmul.f32 %v924_v37, %v920_v48  ;;  %v856_v33 = vmul.f32 %v852_v41, %v848_v40  ;;  %v892_v54 = vmul.f32 %v888_v36, %v884_v51  ;;  %v3220_v11 = vmul.f32 0.01, %v3189_v55  ;;  %v249_v50 = vld [vmem:[%s4187_s4 + $0x18] sm:$0xff] }
 0x207   :  { %v820_v4 = vmul.f32 %v816_v43, %v812_v46  ;;  %vm902_vm8 = vcmp.gt.f32.partialorder %v3189_v55, 0.0  ;;  %vm903_vm12 = vcmp.gt.f32.partialorder %v3207_v5, 0.0  ;;  %v233_v46 = vld [vmem:[%s4186_s3 + $0x18] sm:$0xff]  ;;  %vm866_vm10 = vcmp.gt.f32.partialorder %v3209_v6, 0.0 }
 0x208   :  { %v932_v60 = vmul.f32 %v928_v34, %v244_v45  ;;  %v860_v62 = vmul.f32 %v856_v33, %v236_v20  ;;  %v896_v30 = vmul.f32 %v892_v54, %v240_v63  ;;  %v253_v20 = vld [vmem:[%s4187_s4 + $0x38] sm:$0xff]  ;;  %v907_v33 = vmul.f32 0.01, %v3207_v5 }
 0x209   :  { %v803_v3 = vpop.f32.mrf.mxu1  ;;  %v824_v21 = vmul.f32 %v820_v4, %v232_v38 }
 0x20a   :  { %v917_v8 = vperm.slane %v803_v3, 3  ;;  %v936_v9 = vadd.f32 %v932_v60, %v260_v25  ;;  %v881_v10 = vperm.slane %v803_v3, 2  ;;  %v845_v17 = vperm.slane %v803_v3, 1 }
 0x20b   :  { %v864_v29 = vadd.f32 %v860_v62, %v252_v61  ;;  %v925_v23 = vperm.slane %v803_v3, 7  ;;  %v889_v24 = vperm.slane %v803_v3, 6  ;;  %v853_v15 = vperm.slane %v803_v3, 5 }
 0x20c   :  { %v921_v22 = vsub.f32 %v3029_v52, %v917_v8  ;;  %v885_v18 = vsub.f32 %v3017_v44, %v881_v10  ;;  %v849_v14 = vsub.f32 %v3005_v35, %v845_v17  ;;  %v809_v16 = vperm.slane %v803_v3, 0  ;;  %v256_v52 = vld [vmem:[%s4187_s4 + $0x50] sm:$0xff]  ;;  %v243_v10 = vld [vmem:[%s4186_s3 + $0x68] sm:$0xff] }
 0x20d   :  { %vm940_vm11 = vcmp.gt.f32.partialorder %v936_v9, 0.0  ;;  %v944_v27 = vmul.f32 0.01, %v936_v9  ;;  %v248_v35 = vld [vmem:[%s4187_s4 + $0x10] sm:$0xff]  ;;  %v872_v37 = vmul.f32 0.01, %v864_v29  ;;  %v900_v51 = vadd.f32 %v896_v30, %v256_v52 }
 0x20e   :  { %v929_v44 = vmul.f32 %v925_v23, %v921_v22  ;;  %v893_v28 = vmul.f32 %v889_v24, %v885_v18  ;;  %v857_v48 = vmul.f32 %v853_v15, %v849_v14  ;;  %v813_v40 = vsub.f32 %v2989_v26, %v809_v16  ;;  %v258_v18 = vld [vmem:[%s4187_s4 + $0x60] sm:$0xff] }
 0x20f   :  { %v817_v41 = vperm.slane %v803_v3, 4  ;;  %vm868_vm13 = vcmp.gt.f32.partialorder %v864_v29, 0.0  ;;  %v828_v34 = vadd.f32 %v824_v21, %v248_v35  ;;  %v3257_v26 = vsel %vm940_vm11, %v936_v9, %v944_v27  ;;  %v242_v9 = vld [vmem:[%s4186_s3 + $0x60] sm:$0xff]  ;;  %v247_v35 = vld [vmem:[%s4187_s4 + $0x8] sm:$0xff] }
 0x210   :  { %v933_v42 = vmul.f32 %v929_v44, %v245_v13  ;;  %v897_v45 = vmul.f32 %v893_v28, %v241_v12  ;;  %v861_v36 = vmul.f32 %v857_v48, %v237_v31  ;;  %v908_v53 = vmul.f32 0.01, %v900_v51  ;;  %v230_v31 = vld [vmem:[%s4186_s3] sm:$0xff] }
 0x211   :  { %v821_v0 = vmul.f32 %v817_v41, %v813_v40  ;;  %v3262_v43 = vsel %vm868_vm13, %v864_v29, %v872_v37  ;;  %vm904_vm14 = vcmp.gt.f32.partialorder %v900_v51, 0.0  ;;  %v836_v63 = vmul.f32 0.01, %v828_v34 }
 0x212   :  { %v937_v49 = vadd.f32 %v933_v42, %v261_v47  ;;  %v901_v19 = vadd.f32 %v897_v45, %v257_v32  ;;  %v865_v25 = vadd.f32 %v861_v36, %v253_v20  ;;  %vm832_vm11 = vcmp.gt.f32.partialorder %v828_v34, 0.0  ;;  %v246_v45 = vld [vmem:[%s4187_s4] sm:$0xff] }
 0x213   :  { %v825_v54 = vmul.f32 %v821_v0, %v233_v46  ;;  %v3269_v8 = vsel %vm904_vm14, %v900_v51, %v908_v53  ;;  %v910_v23 = vsel %vm902_vm8, %v3189_v55, %v3220_v11  ;;  %vm867_vm14 = vcmp.gt.f32.partialorder %v3217_v39, 0.0  ;;  %v259_v55 = vld [vmem:[%s4187_s4 + $0x68] sm:$0xff]  ;;  %s2380_s4 = smov 1  }
 0x214   :  { %vm941_vm15 = vcmp.gt.f32.partialorder %v937_v49, 0.0  ;;  %v945_v57 = vmul.f32 0.01, %v937_v49  ;;  %vm905_vm7 = vcmp.gt.f32.partialorder %v901_v19, 0.0  ;;  %v909_v60 = vmul.f32 0.01, %v901_v19 }
 0x215   :  { %vm869_vm6 = vcmp.gt.f32.partialorder %v865_v25, 0.0  ;;  %v873_v61 = vmul.f32 0.01, %v865_v25  ;;  %v829_v62 = vadd.f32 %v825_v54, %v249_v50  ;;  %v3294_v24 = vsel %vm832_vm11, %v828_v34, %v836_v63 }
 0x216   :  { %v3265_v3 = vsel %vm941_vm15, %v937_v49, %v945_v57  ;;  %v3267_v4 = vsel %vm905_vm7, %v901_v19, %v909_v60  ;;  %v3299_v12 = vsel %vm903_vm12, %v3207_v5, %v907_v33  ;;  %v930_v11 = vmul.f32 %v3194_v59, %v242_v9 }
 0x217   :  { %v2223_v38 = vpack.i.bf16 %v3265_v3, %v3257_v26  ;;  %v2343_v17 = vpack.i.bf16 %v3267_v4, %v3265_v3  ;;  %v3281_v29 = vsel %vm869_vm6, %v865_v25, %v873_v61  ;;  %vm833_vm13 = vcmp.gt.f32.partialorder %v829_v62, 0.0  ;;  %v1019_v3 = vld [vmem:[%s4188_s6 + $0x20] sm:$0xff] }
 0x218   :  { %v2238_v30 = vpack.i.bf16 %v3281_v29, %v3262_v43  ;;  %v837_v22 = vmul.f32 0.01, %v829_v62  ;;  %v931_v13 = vmul.f32 %v3202_v1, %v243_v10  ;;  %v814_v15 = vperm.slane %v3131_v56, 4  ;;  %v231_v1 = vld [vmem:[%s4186_s3 + $0x8] sm:$0xff] }
 0x219   :  { %2224 = vrot.lane.b32.xlu2 %v2223_v38, %s2379_s19  ;;  %v815_v16 = vperm.slane %v3133_v58, 4  ;;  %v2323_v5 = vpack.i.bf16 %v3269_v8, %v3299_v12  ;;  %v870_v52 = vmul.f32 0.01, %v3209_v6  ;;  %v871_v59 = vmul.f32 0.01, %v3217_v39 }
 0x21a   :  { %2239 = vrot.lane.b32.xlu0 %v2238_v30, %s2379_s19  ;;  %v3307_v14 = vsel %vm833_vm13, %v829_v62, %v837_v22  ;;  %v934_v44 = vadd.f32 %v930_v11, %v258_v18  ;;  %v935_v27 = vadd.f32 %v931_v13, %v259_v55  ;;  %v818_v56 = vmul.f32 %v814_v15, %v3205_v2 }
 0x21b   :  { %v2248_v21 = vpack.i.bf16 %v3307_v14, %v3294_v24  ;;  %v819_v58 = vmul.f32 %v815_v16, %v3212_v7  ;;  %v2348_v28 = vpack.i.bf16 %v3307_v14, %v3281_v29  ;;  %v2228_v47 = vpack.i.bf16 %v3267_v4, %v3269_v8  ;;  %v1018_v4 = vld [vmem:[%s4188_s6 + $0x18] sm:$0xff]  ;;  %v2007_v29 = vld [vmem:[%s4189_s14] sm:$0xff] }
 0x21c   :  { %v2243_v2 = vpack.i.bf16 %v3299_v12, %v910_v23  ;;  %v874_v7 = vsel %vm866_vm10, %v3209_v6, %v870_v52  ;;  %v3340_v48 = vsel %vm867_vm14, %v3217_v39, %v871_v59  ;;  %v942_v37 = vmul.f32 0.01, %v934_v44  ;;  %v1022_v8 = vld [vmem:[%s4188_s6 + $0x38] sm:$0xff] }
 0x21d   :  { %2249 = vrot.lane.b32.xlu1 %v2248_v21, %s2379_s19  ;;  %v823_v32 = vmul.f32 %v819_v58, %v231_v1  ;;  %v943_v40 = vmul.f32 0.01, %v935_v27  ;;  %v822_v41 = vmul.f32 %v818_v56, %v230_v31  ;;  %vm938_vm6 = vcmp.gt.f32.partialorder %v934_v44, 0.0 }
 0x21e   :  { %vm939_vm8 = vcmp.gt.f32.partialorder %v935_v27, 0.0  ;;  %v2253_v20 = vpack.i.bf16 %v3340_v48, %v874_v7  ;;  %v946_v39 = vsel %vm938_vm6, %v934_v44, %v942_v37  ;;  %vm974_vm7 = vcmask 1039360  }
 0x21f   :  { %v827_v42 = vadd.f32 %v823_v32, %v247_v35  ;;  %v947_v46 = vsel %vm939_vm8, %v935_v27, %v943_v40  ;;  %v826_v51 = vadd.f32 %v822_v41, %v246_v45  ;;  %vm1135_vm10 = vcmask 7168  }
 0x220   :  { %v2233_v34 = vpack.i.bf16 %v947_v46, %v946_v39  ;;  %vm1184_vm11 = vcmask 785408  }
 0x221   :  { %2229 = vrot.lane.b32.xlu2 %v2228_v47, %s2379_s19  ;;  %vm831_vm12 = vcmp.gt.f32.partialorder %v827_v42, 0.0  ;;  %v835_v6 = vmul.f32 0.01, %v827_v42  ;;  %v834_v33 = vmul.f32 0.01, %v826_v51  ;;  %vm830_vm15 = vcmp.gt.f32.partialorder %v826_v51, 0.0 }
 0x222   :  { %2244 = vrot.lane.b32.xlu0 %v2243_v2, %s2379_s19 }
 0x223   :  { %v3348_v36 = vsel %vm831_vm12, %v827_v42, %v835_v6  ;;  %v838_v49 = vsel %vm830_vm15, %v826_v51, %v834_v33 }
 0x224   :  { %v2338_v0 = vpack.i.bf16 %v3294_v24, %v3348_v36  ;;  %v2258_v19 = vpack.i.bf16 %v3348_v36, %v838_v49  ;;  %v2009_v24 = vld [vmem:[%s4189_s14 + $0x10] sm:$0x3] }
 0x225   :  { %2254 = vrot.lane.b32.xlu1 %v2253_v20, %s2379_s19 }
 0x229   :  { %2234 = vrot.lane.b32.xlu2 %v2233_v34, %s2379_s19 }
 0x231   :  { %2259 = vrot.lane.b32.xlu2 %v2258_v19, %s2379_s19 }
 0x273   :  { %v2225_v50 = vpop.permute.xlu2 %2224 }
 0x274   :  { %v2227_v54 = vunpack.i.h.bf16 %v2225_v50  ;;  %v2226_v7 = vunpack.i.l.bf16 %v2225_v50 }
 0x276   :  { %v1006_v41 = vsel %vm974_vm7, %v2226_v7, %v2227_v54 }
 0x277   :  { %v2293_v42 = vpack.i.bf16 %v1006_v41, %v2226_v7 }
 0x27b   :  { %v2230_v53 = vpop.permute.xlu2 %2229 }
 0x27c   :  { %v2232_v61 = vunpack.i.h.bf16 %v2230_v53  ;;  %v2231_v56 = vunpack.i.l.bf16 %v2230_v53 }
 0x27e   :  { %v1005_v32 = vsel %vm974_vm7, %v2231_v56, %v2232_v61 }
 0x27f   :  { %v2298_v37 = vpack.i.bf16 %v1005_v32, %v2231_v56 }
 0x283   :  { %v2235_v25 = vpop.permute.xlu2 %2234 }
 0x284   :  { %v2237_v57 = vunpack.i.h.bf16 %v2235_v25  ;;  %v2236_v60 = vunpack.i.l.bf16 %v2235_v25 }
 0x286   :  { %v2273_v62 = vpack.i.bf16 %v2236_v60, %v2227_v54  ;;  %v978_v63 = vsel %vm974_vm7, %v2236_v60, %v2237_v57  ;;  %v2303_v6 = vpack.i.bf16 %v947_v46, %v2237_v57 }
 0x287   :  { %v2278_v9 = vpack.i.bf16 %v2232_v61, %v978_v63 }
 0x288   :  { %2274 = vrot.lane.b32.xlu1 %v2273_v62, %s2380_s4 }
 0x289   :  { %2279 = vrot.lane.b32.xlu2 %v2278_v9, %s2380_s4 }
 0x28b   :  { %v2260_v18 = vpop.permute.xlu2 %2259 }
 0x28c   :  { %v2240_v10 = vpop.permute.xlu0 %2239  ;;  %v2262_v59 = vunpack.i.h.bf16 %v2260_v18  ;;  %v2261_v44 = vunpack.i.l.bf16 %v2260_v18 }
 0x28d   :  { %v2242_v13 = vunpack.i.h.bf16 %v2240_v10  ;;  %v2241_v31 = vunpack.i.l.bf16 %v2240_v10 }
 0x28e   :  { %v975_v35 = vsel %vm974_vm7, %v2261_v44, %v2262_v59  ;;  %v2333_v33 = vpack.i.bf16 %v2262_v59, %v3262_v43  ;;  %v1015_v43 = vld [vmem:[%s4188_s6] sm:$0xff] }
 0x28f   :  { %v2250_v38 = vpop.permute.xlu1 %2249  ;;  %v1004_v47 = vsel %vm974_vm7, %v2241_v31, %v2242_v13  ;;  %v2268_v2 = vpack.i.bf16 %v975_v35, %v2261_v44 }
 0x290   :  { %v2252_v52 = vunpack.i.h.bf16 %v2250_v38  ;;  %v2308_v40 = vpack.i.bf16 %v1004_v47, %v2241_v31  ;;  %v2251_v45 = vunpack.i.l.bf16 %v2250_v38 }
 0x292   :  { %v1003_v39 = vsel %vm974_vm7, %v2251_v45, %v2252_v52 }
 0x293   :  { %v2318_v51 = vpack.i.bf16 %v1003_v39, %v2251_v45 }
 0x294   :  { %v2245_v30 = vpop.permute.xlu0 %2244 }
 0x295   :  { %v2247_v22 = vunpack.i.h.bf16 %v2245_v30  ;;  %v2246_v23 = vunpack.i.l.bf16 %v2245_v30 }
 0x297   :  { %v977_v55 = vsel %vm974_vm7, %v2246_v23, %v2247_v22  ;;  %v2255_v11 = vpop.permute.xlu1 %2254  ;;  %v2313_v20 = vpack.i.bf16 %v2247_v22, %v3257_v26  ;;  %v1016_v26 = vld [vmem:[%s4188_s6 + $0x8] sm:$0xff] }
 0x298   :  { %v2263_v15 = vpack.i.bf16 %v977_v55, %v2246_v23  ;;  %v2257_v16 = vunpack.i.h.bf16 %v2255_v11  ;;  %v2256_v21 = vunpack.i.l.bf16 %v2255_v11 }
 0x29a   :  { %v2283_v1 = vpack.i.bf16 %v2256_v21, %v2242_v13  ;;  %2264 = vrot.lane.b32.xlu0 %v2263_v15, %s2380_s4  ;;  %v976_v27 = vsel %vm974_vm7, %v2256_v21, %v2257_v16  ;;  %v2328_v34 = vpack.i.bf16 %v3340_v48, %v2257_v16 }
 0x29b   :  { %v2288_v58 = vpack.i.bf16 %v2252_v52, %v976_v27 }
 0x29c   :  { %2284 = vrot.lane.b32.xlu1 %v2283_v1, %s2380_s4 }
 0x29d   :  { %2289 = vrot.lane.b32.xlu2 %v2288_v58, %s2380_s4 }
 0x2a2   :  { %2269 = vrot.lane.b32.xlu0 %v2268_v2, %s2380_s4 }
 0x2a4   :  { %2299 = vrot.lane.b32.xlu1 %v2298_v37, %s2380_s4 }
 0x2a5   :  { %2309 = vrot.lane.b32.xlu2 %v2308_v40, %s2380_s4 }
 0x2aa   :  { %2294 = vrot.lane.b32.xlu0 %v2293_v42, %s2380_s4 }
 0x2ac   :  { %2304 = vrot.lane.b32.xlu1 %v2303_v6, %s2380_s4 }
 0x2ad   :  { %2314 = vrot.lane.b32.xlu2 %v2313_v20, %s2380_s4 }
 0x2b2   :  { %2319 = vrot.lane.b32.xlu0 %v2318_v51, %s2380_s4 }
 0x2b4   :  { %2329 = vrot.lane.b32.xlu1 %v2328_v34, %s2380_s4 }
 0x2b5   :  { %2334 = vrot.lane.b32.xlu2 %v2333_v33, %s2380_s4 }
 0x2ba   :  { %2324 = vrot.lane.b32.xlu0 %v2323_v5, %s2380_s4 }
 0x2bc   :  { %2344 = vrot.lane.b32.xlu1 %v2343_v17, %s2380_s4  ;;  %v1021_v17 = vld [vmem:[%s4188_s6 + $0x30] sm:$0xff] }
 0x2bd   :  { %2349 = vrot.lane.b32.xlu2 %v2348_v28, %s2380_s4 }
 0x2c2   :  { %2339 = vrot.lane.b32.xlu0 %v2338_v0, %s2380_s4 }
 0x2c4   :  { %1030 = vperm.xlu1 %2222, %v1016_v26  }
 0x2ca   :  { %1025 = vperm.xlu0 %2221, %v1015_v43  }
 0x2cc   :  { %1045 = vperm.xlu1 %2222, %v1019_v3  }
 0x2d2   :  { %1040 = vperm.xlu0 %2221, %v1018_v4  }
 0x2d4   :  { %1060 = vperm.xlu1 %2222, %v1022_v8  }
 0x2da   :  { %1055 = vperm.xlu0 %2221, %v1021_v17  }
 0x2dc   :  { %2012 = vperm.xlu1 %2222, %v2007_v29  }
 0x2e2   :  { %2022 = vperm.xlu0 %2221, %v2009_v24  }
 0x2e3   :  { %v2280_v12 = vpop.permute.xlu2 %2279 }
 0x2e4   :  { %v2282_v60 = vunpack.i.h.bf16 %v2280_v12  ;;  %v2281_v59 = vunpack.i.l.bf16 %v2280_v12 }
 0x2f7   :  { %v3421_v14 = vpop.permute.xlu2 %2289 }
 0x2f8   :  { %v2292_v15 = vunpack.i.h.bf16 %v3421_v14  ;;  %v2291_v40 = vunpack.i.l.bf16 %v3421_v14 }
 0x2fa   :  { %v2275_v5 = vpop.permute.xlu1 %2274 }
 0x2fb   :  { %v2276_v19 = vunpack.i.l.bf16 %v2275_v5  ;;  %v2277_v55 = vunpack.i.h.bf16 %v2275_v5 }
 0x2fd   :  { %v1150_v31 = vsel %vm1135_vm10, %v2277_v55, %v2281_v59  ;;  %v3530_v55 = vld [vmem:[%s4191_s11 + $0xe8] sm:$0xff] }
 0x2ff   :  { %v2310_v46 = vpop.permute.xlu2 %2309 }
 0x300   :  { %v2312_v61 = vunpack.i.h.bf16 %v2310_v46  ;;  %v2311_v63 = vunpack.i.l.bf16 %v2310_v46 }
 0x302   :  { %v1154_v23 = vsel %vm1135_vm10, %v2311_v63, %v2312_v61  ;;  %v1009_v63 = vld [vmem:[%s4190_s5 + $0x10] sm:$0xff] }
 0x307   :  { %v3427_v49 = vpop.permute.xlu2 %2314 }
 0x308   :  { %v2317_v35 = vunpack.i.h.bf16 %v3427_v49  ;;  %v2316_v34 = vunpack.i.l.bf16 %v3427_v49 }
 0x30c   :  { %v2265_v28 = vpop.permute.xlu0 %2264 }
 0x30d   :  { %v2267_v1 = vunpack.i.h.bf16 %v2265_v28  ;;  %v2266_v27 = vunpack.i.l.bf16 %v2265_v28 }
 0x30e   :  { %v3423_v48 = vpop.permute.xlu1 %2284 }
 0x30f   :  { %v2286_v9 = vunpack.i.l.bf16 %v3423_v48  ;;  %v3438_v11 = vpop.permute.xlu2 %2334  ;;  %v2287_v32 = vunpack.i.h.bf16 %v3423_v48  ;;  %v1148_v41 = vsel %vm1135_vm10, %v2266_v27, %v2267_v1  ;;  %v1149_v42 = vsel %vm1135_vm10, %v2267_v1, %v2317_v35  ;;  %v3589_v1 = vld [vmem:[%s4191_s11 + $0xc8] sm:$0xff]  ;;  %v3598_v27 = vld [vmem:[%s4191_s11 + $0x40] sm:$0xff]  ;;  %v3622_v35 = vld [vmem:[%s4191_s11 + $0xb8] sm:$0xff] }
 0x310   :  { %v2337_v45 = vunpack.i.h.bf16 %v3438_v11  ;;  %v2336_v28 = vunpack.i.l.bf16 %v3438_v11  ;;  %v3539_v11 = vld [vmem:[%s4191_s11 + $0x60] sm:$0xff] }
 0x311   :  { %v1155_v18 = vsel %vm1135_vm10, %v2312_v61, %v2286_v9  ;;  %v1146_v39 = vsel %vm1135_vm10, %v2287_v32, %v2291_v40  ;;  %v1008_v61 = vld [vmem:[%s4190_s5 + $0x8] sm:$0xff]  ;;  %v3631_v32 = vld [vmem:[%s4191_s11 + $0x30] sm:$0xff] }
 0x312   :  { %v2008_v9 = vld [vmem:[%s4189_s14 + $0x8] sm:$0xff] }
 0x314   :  { %v3425_v36 = vpop.permute.xlu0 %2269 }
 0x315   :  { %v2272_v7 = vunpack.i.h.bf16 %v3425_v36  ;;  %v2271_v37 = vunpack.i.l.bf16 %v3425_v36 }
 0x316   :  { %v2300_v0 = vpop.permute.xlu1 %2299 }
 0x317   :  { %v2302_v53 = vunpack.i.h.bf16 %v2300_v0  ;;  %v2301_v25 = vunpack.i.l.bf16 %v2300_v0  ;;  %v2350_v33 = vpop.permute.xlu2 %2349  ;;  %v1144_v43 = vsel %vm1135_vm10, %v2271_v37, %v2272_v7  ;;  %v1145_v3 = vsel %vm1135_vm10, %v2272_v7, %v2337_v45  ;;  %v3650_v7 = vld [vmem:[%s4191_s11 + $0xa8] sm:$0xff]  ;;  %v1013_v37 = vld [vmem:[%s4190_s5 + $0x30] sm:$0xff]  ;;  %v3683_v45 = vld [vmem:[%s4191_s11 + $0x98] sm:$0xff] }
 0x318   :  { %v2351_v24 = vunpack.i.l.bf16 %v2350_v33  ;;  %v2352_v36 = vunpack.i.h.bf16 %v2350_v33  ;;  %v3731_v33 = vld [vmem:[%s4191_s11] sm:$0xff] }
 0x319   :  { %v1156_v30 = vsel %vm1135_vm10, %v2301_v25, %v2302_v53  ;;  %v1157_v22 = vsel %vm1135_vm10, %v2302_v53, %v2282_v60  ;;  %v1007_v25 = vld [vmem:[%s4190_s5] sm:$0xff]  ;;  %v1017_v60 = vld [vmem:[%s4188_s6 + $0x10] sm:$0xff] }
 0x31a   :  { %v1139_v53 = vsel %vm1135_vm10, %v2336_v28, %v2351_v24  ;;  %1035 = vperm.xlu2 %2353, %v1017_v60  }
 0x31c   :  { %v2295_v50 = vpop.permute.xlu0 %2294 }
 0x31d   :  { %v2297_v54 = vunpack.i.h.bf16 %v2295_v50  ;;  %v2296_v57 = vunpack.i.l.bf16 %v2295_v50 }
 0x31e   :  { %v3429_v62 = vpop.permute.xlu1 %2304 }
 0x31f   :  { %v1158_v10 = vsel %vm1135_vm10, %v2296_v57, %v2297_v54  ;;  %v1159_v38 = vsel %vm1135_vm10, %v2297_v54, %v2276_v19  ;;  %v2306_v16 = vunpack.i.l.bf16 %v3429_v62  ;;  %v2307_v20 = vunpack.i.h.bf16 %v3429_v62  ;;  %v1020_v62 = vld [vmem:[%s4188_s6 + $0x28] sm:$0xff] }
 0x320   :  { %1213 = vmatpush.msra.mxu0 %v1158_v10  ;;  %1254 = vmatpush.msra.mxu1 %v1159_v38  ;;  %v1010_v10 = vld [vmem:[%s4190_s5 + $0x18] sm:$0xff] }
 0x321   :  { %v1151_v2 = vsel %vm1135_vm10, %v2281_v59, %v2306_v16  ;;  %v1142_v14 = vsel %vm1135_vm10, %v2307_v20, %v2316_v34  ;;  %v3501_v38 = vld [vmem:[%s4191_s11 + $0x78] sm:$0xff]  ;;  %v3575_v59 = vld [vmem:[%s4191_s11 + $0xd0] sm:$0xff] }
 0x322   :  { %1214 = vmatpush.msra.mxu0 %v1156_v30  ;;  %1255 = vmatpush.msra.mxu1 %v1157_v22  ;;  %v3506_v30 = vld [vmem:[%s4191_s11 + $0xf8] sm:$0xff]  ;;  %v3511_v22 = vld [vmem:[%s4191_s11 + $0x70] sm:$0xff] }
 0x323   :  { %1050 = vperm.xlu2 %2353, %v1020_v62   ;;  %1356 = vmatpush.msrb.mxu2 %v3501_v38  ;;  %v3556_v16 = vld [vmem:[%s4191_s11 + $0x58] sm:$0xff]  ;;  %v3697_v20 = vld [vmem:[%s4191_s11 + $0x90] sm:$0xff] }
 0x324   :  { %v2320_v13 = vpop.permute.xlu0 %2319  ;;  %1215 = vmatpush.msra.mxu0 %v1154_v23  ;;  %1256 = vmatpush.msra.mxu1 %v1155_v18  ;;  %v3518_v23 = vld [vmem:[%s4191_s11 + $0xf0] sm:$0xff]  ;;  %v3525_v18 = vld [vmem:[%s4191_s11 + $0x68] sm:$0xff] }
 0x325   :  { %v2322_v21 = vunpack.i.h.bf16 %v2320_v13  ;;  %v2321_v52 = vunpack.i.l.bf16 %v2320_v13  ;;  %1397 = vmatpush.msrb.mxu3 %v3506_v30  ;;  %1357 = vmatpush.msrb.mxu2 %v3511_v22  ;;  %v3544_v13 = vld [vmem:[%s4191_s11 + $0xe0] sm:$0xff] }
 0x326   :  { %v2330_v44 = vpop.permute.xlu1 %2329 }
 0x327   :  { %v1152_v56 = vsel %vm1135_vm10, %v2321_v52, %v2322_v21  ;;  %v1153_v58 = vsel %vm1135_vm10, %v2322_v21, %v2292_v15  ;;  %v2331_v47 = vunpack.i.l.bf16 %v2330_v44  ;;  %v2332_v12 = vunpack.i.h.bf16 %v2330_v44  ;;  %1398 = vmatpush.msrb.mxu3 %v3518_v23  ;;  %v1011_v15 = vld [vmem:[%s4190_s5 + $0x20] sm:$0xff]  ;;  %1358 = vmatpush.msrb.mxu2 %v3525_v18  ;;  %v3561_v21 = vld [vmem:[%s4191_s11 + $0xd8] sm:$0xff]  ;;  %v3570_v52 = vld [vmem:[%s4191_s11 + $0x50] sm:$0xff] }
 0x328   :  { %1216 = vmatpush.msra.mxu0 %v1152_v56  ;;  %1257 = vmatpush.msra.mxu1 %v1153_v58  ;;  %v3584_v44 = vld [vmem:[%s4191_s11 + $0x48] sm:$0xff]  ;;  %v3603_v56 = vld [vmem:[%s4191_s11 + $0xc0] sm:$0xff] }
 0x329   :  { %v1147_v51 = vsel %vm1135_vm10, %v2291_v40, %v2331_v47  ;;  %v1138_v50 = vsel %vm1135_vm10, %v2332_v12, %v2336_v28  ;;  %1399 = vmatpush.msrb.mxu3 %v3530_v55  ;;  %1359 = vmatpush.msrb.mxu2 %v3539_v11  ;;  %v1012_v58 = vld [vmem:[%s4190_s5 + $0x28] sm:$0xff]  ;;  %v3636_v47 = vld [vmem:[%s4191_s11 + $0xb0] sm:$0xff]  ;;  %v3664_v40 = vld [vmem:[%s4191_s11 + $0x20] sm:$0xff] }
 0x32a   :  { %1217 = vmatpush.msra.mxu0 %v1150_v31  ;;  %1258 = vmatpush.msra.mxu1 %v1151_v2  ;;  %v3617_v31 = vld [vmem:[%s4191_s11 + $0x38] sm:$0xff]  ;;  %v3645_v2 = vld [vmem:[%s4191_s11 + $0x28] sm:$0xff] }
 0x32b   :  { %2017 = vperm.xlu2 %2353, %v2008_v9   ;;  %1400 = vmatpush.msrb.mxu3 %v3544_v13 }
 0x32c   :  { %v2325_v6 = vpop.permute.xlu0 %2324  ;;  %1218 = vmatpush.msra.mxu0 %v1148_v41  ;;  %1259 = vmatpush.msra.mxu1 %v1149_v42  ;;  %v3669_v41 = vld [vmem:[%s4191_s11 + $0xa0] sm:$0xff]  ;;  %v3678_v42 = vld [vmem:[%s4191_s11 + $0x18] sm:$0xff] }
 0x32d   :  { %v2327_v17 = vunpack.i.h.bf16 %v2325_v6  ;;  %v2326_v29 = vunpack.i.l.bf16 %v2325_v6  ;;  %1360 = vmatpush.msrb.mxu2 %v3556_v16  ;;  %1401 = vmatpush.msrb.mxu3 %v3561_v21  ;;  %v3692_v6 = vld [vmem:[%s4191_s11 + $0x10] sm:$0xff] }
 0x32e   :  { %v2345_v26 = vpop.permute.xlu1 %2344  ;;  %1219 = vmatpush.msra.mxu0 %v1146_v39  ;;  %1260 = vmatpush.msra.mxu1 %v1147_v51  ;;  %v3706_v39 = vld [vmem:[%s4191_s11 + $0x8] sm:$0xff] }
 0x32f   :  { %v2347_v4 = vunpack.i.h.bf16 %v2345_v26  ;;  %v2346_v8 = vunpack.i.l.bf16 %v2345_v26  ;;  %v1140_v48 = vsel %vm1135_vm10, %v2326_v29, %v2327_v17  ;;  %1361 = vmatpush.msrb.mxu2 %v3570_v52  ;;  %1402 = vmatpush.msrb.mxu3 %v3575_v59  ;;  %v3711_v51 = vld [vmem:[%s4191_s11 + $0x88] sm:$0xff]  ;;  %v3736_v26 = vld [vmem:[%s4191_s11 + $0x80] sm:$0xff] }
 0x330   :  { %1220 = vmatpush.msra.mxu0 %v1144_v43  ;;  %1261 = vmatpush.msra.mxu1 %v1145_v3 }
 0x331   :  { %v1143_v5 = vsel %vm1135_vm10, %v2316_v34, %v2346_v8  ;;  %v1141_v46 = vsel %vm1135_vm10, %v2327_v17, %v2347_v4  ;;  %1362 = vmatpush.msrb.mxu2 %v3584_v44  ;;  %1403 = vmatpush.msrb.mxu3 %v3589_v1  ;;  %v1014_v34 = vld [vmem:[%s4190_s5 + $0x38] sm:$0xff] }
 0x332   :  { %1221 = vmatpush.msra.mxu0 %v1142_v14  ;;  %1262 = vmatpush.msra.mxu1 %v1143_v5 }
 0x333   :  { %1363 = vmatpush.msrb.mxu2 %v3598_v27  ;;  %1404 = vmatpush.msrb.mxu3 %v3603_v56 }
 0x334   :  { %v2340_v0 = vpop.permute.xlu0 %2339  ;;  %1222 = vmatpush.msra.mxu0 %v1140_v48  ;;  %1263 = vmatpush.msra.mxu1 %v1141_v46 }
 0x335   :  { %v2342_v49 = vunpack.i.h.bf16 %v2340_v0  ;;  %v2341_v19 = vunpack.i.l.bf16 %v2340_v0  ;;  %1364 = vmatpush.msrb.mxu2 %v3617_v31  ;;  %1405 = vmatpush.msrb.mxu3 %v3622_v35 }
 0x336   :  { %1223 = vmatpush.msra.mxu0 %v1138_v50  ;;  %1264 = vmatpush.msra.mxu1 %v1139_v53  ;;  %v1031_v12 = vpop.permute.xlu1 %1030 }
 0x337   :  { %v1136_v54 = vsel %vm1135_vm10, %v2341_v19, %v2342_v49  ;;  %v1137_v57 = vsel %vm1135_vm10, %v2342_v49, %v2352_v36  ;;  %1365 = vmatpush.msrb.mxu2 %v3631_v32  ;;  %1406 = vmatpush.msrb.mxu3 %v3636_v47 }
 0x338   :  { %1224 = vmatpush.msra.mxu0 %v1136_v54  ;;  %1265 = vmatpush.msra.mxu1 %v1137_v57 }
 0x339   :  { %2179 = vmatmul.msk.f32.vlgmr.msra.gmra.mxu0 %vm1184_vm11, %v1007_v25  ;;  %2187 = vmatmul.msk.f32.vlgmr.msra.gmra.mxu1 %vm1184_vm11, %v1007_v25 }
 0x33a   :  { %1454 = vmatpush.msrb.mxu0 %v3501_v38  ;;  %1495 = vmatpush.msrb.mxu1 %v3506_v30 }
 0x33b   :  { %1366 = vmatpush.msrb.mxu2 %v3645_v2  ;;  %1407 = vmatpush.msrb.mxu3 %v3650_v7 }
 0x33c   :  { %1455 = vmatpush.msrb.mxu0 %v3511_v22  ;;  %1496 = vmatpush.msrb.mxu1 %v3518_v23  ;;  %v1026_v43 = vpop.permute.xlu0 %1025 }
 0x33d   :  { %1367 = vmatpush.msrb.mxu2 %v3664_v40  ;;  %1408 = vmatpush.msrb.mxu3 %v3669_v41 }
 0x33e   :  { %1456 = vmatpush.msrb.mxu0 %v3525_v18  ;;  %1497 = vmatpush.msrb.mxu1 %v3530_v55 }
 0x33f   :  { %1368 = vmatpush.msrb.mxu2 %v3678_v42  ;;  %1409 = vmatpush.msrb.mxu3 %v3683_v45 }
 0x340   :  { %1457 = vmatpush.msrb.mxu0 %v3539_v11  ;;  %1498 = vmatpush.msrb.mxu1 %v3544_v13 }
 0x341   :  { %2180 = vmatmul.msk.f32.gmra.mxu0 %vm1184_vm11, %v1008_v61  ;;  %2188 = vmatmul.msk.f32.gmra.mxu1 %vm1184_vm11, %v1008_v61 }
 0x342   :  { %1458 = vmatpush.msrb.mxu0 %v3556_v16  ;;  %1499 = vmatpush.msrb.mxu1 %v3561_v21 }
 0x343   :  { %1369 = vmatpush.msrb.mxu2 %v3692_v6  ;;  %1410 = vmatpush.msrb.mxu3 %v3697_v20 }
 0x344   :  { %1459 = vmatpush.msrb.mxu0 %v3570_v52  ;;  %1500 = vmatpush.msrb.mxu1 %v3575_v59  ;;  %v1041_v57 = vpop.permute.xlu0 %1040 }
 0x345   :  { %1370 = vmatpush.msrb.mxu2 %v3706_v39  ;;  %1411 = vmatpush.msrb.mxu3 %v3711_v51 }
 0x346   :  { %1460 = vmatpush.msrb.mxu0 %v3584_v44  ;;  %1501 = vmatpush.msrb.mxu1 %v3589_v1 }
 0x347   :  { %1371 = vmatpush.msrb.mxu2 %v3731_v33  ;;  %1412 = vmatpush.msrb.mxu3 %v3736_v26 }
 0x348   :  { %1461 = vmatpush.msrb.mxu0 %v3598_v27  ;;  %1502 = vmatpush.msrb.mxu1 %v3603_v56 }
 0x349   :  { %2181 = vmatmul.msk.f32.gmra.mxu0 %vm1184_vm11, %v1009_v63  ;;  %2189 = vmatmul.msk.f32.gmra.mxu1 %vm1184_vm11, %v1009_v63 }
 0x34a   :  { %1462 = vmatpush.msrb.mxu0 %v3617_v31  ;;  %1503 = vmatpush.msrb.mxu1 %v3622_v35 }
 0x34b   :  { %2202 = vmatpush.msra.mxu2 %v3501_v38 }
 0x34c   :  { %1463 = vmatpush.msrb.mxu0 %v3631_v32  ;;  %1504 = vmatpush.msrb.mxu1 %v3636_v47 }
 0x34d   :  { %2203 = vmatpush.msra.mxu2 %v3511_v22 }
 0x34e   :  { %1464 = vmatpush.msrb.mxu0 %v3645_v2  ;;  %1505 = vmatpush.msrb.mxu1 %v3650_v7 }
 0x34f   :  { %2204 = vmatpush.msra.mxu2 %v3525_v18 }
 0x350   :  { %1465 = vmatpush.msrb.mxu0 %v3664_v40  ;;  %1506 = vmatpush.msrb.mxu1 %v3669_v41 }
 0x351   :  { %2182 = vmatmul.msk.f32.gmra.mxu0 %vm1184_vm11, %v1010_v10  ;;  %2190 = vmatmul.msk.f32.gmra.mxu1 %vm1184_vm11, %v1010_v10 }
 0x352   :  { %1466 = vmatpush.msrb.mxu0 %v3678_v42  ;;  %1507 = vmatpush.msrb.mxu1 %v3683_v45 }
 0x353   :  { %2205 = vmatpush.msra.mxu2 %v3539_v11 }
 0x354   :  { %1467 = vmatpush.msrb.mxu0 %v3692_v6  ;;  %1508 = vmatpush.msrb.mxu1 %v3697_v20 }
 0x355   :  { %2206 = vmatpush.msra.mxu2 %v3556_v16 }
 0x356   :  { %1468 = vmatpush.msrb.mxu0 %v3706_v39  ;;  %1509 = vmatpush.msrb.mxu1 %v3711_v51 }
 0x357   :  { %2207 = vmatpush.msra.mxu2 %v3570_v52 }
 0x358   :  { %1469 = vmatpush.msrb.mxu0 %v3731_v33  ;;  %1510 = vmatpush.msrb.mxu1 %v3736_v26 }
 0x359   :  { %2183 = vmatmul.msk.f32.gmra.mxu0 %vm1184_vm11, %v1011_v15  ;;  %2191 = vmatmul.msk.f32.gmra.mxu1 %vm1184_vm11, %v1011_v15  ;;  %v1046_v15 = vpop.permute.xlu1 %1045 }
 0x35a   :  { %2208 = vmatpush.msra.mxu2 %v3584_v44 }
 0x35c   :  { %2209 = vmatpush.msra.mxu2 %v3598_v27 }
 0x35e   :  { %2210 = vmatpush.msra.mxu2 %v3617_v31 }
 0x360   :  { %2211 = vmatpush.msra.mxu2 %v3631_v32 }
 0x361   :  { %2184 = vmatmul.msk.f32.gmra.mxu0 %vm1184_vm11, %v1012_v58  ;;  %2192 = vmatmul.msk.f32.gmra.mxu1 %vm1184_vm11, %v1012_v58 }
 0x362   :  { %2212 = vmatpush.msra.mxu2 %v3645_v2 }
 0x364   :  { %2213 = vmatpush.msra.mxu2 %v3664_v40 }
 0x366   :  { %2214 = vmatpush.msra.mxu2 %v3678_v42 }
 0x368   :  { %2215 = vmatpush.msra.mxu2 %v3692_v6 }
 0x369   :  { %2185 = vmatmul.msk.f32.gmra.mxu0 %vm1184_vm11, %v1013_v37  ;;  %2193 = vmatmul.msk.f32.gmra.mxu1 %vm1184_vm11, %v1013_v37 }
 0x36a   :  { %2216 = vmatpush.msra.mxu2 %v3706_v39 }
 0x36c   :  { %2217 = vmatpush.msra.mxu2 %v3731_v33 }
 0x371   :  { %2186 = vmatmul.msk.f32.gmra.mxu0 %vm1184_vm11, %v1014_v34  ;;  %2194 = vmatmul.msk.f32.gmra.mxu1 %vm1184_vm11, %v1014_v34 }
 0x374   :  { %v1036_v0 = vpop.permute.xlu2 %1035 }
 0x3b6   :  { %v1226_v3 = vpop.f32.mrf.mxu0  ;;  %v1267_v4 = vpop.f32.mrf.mxu1 }
 0x3b7   :  { %v3756_v8 = vadd.f32 %v1226_v3, %v1026_v43  ;;  %v3758_v17 = vadd.f32 %v1267_v4, %v1026_v43 }
 0x3b9   :  { %4222 = vst [vmem:[#allocation2_spill] sm:$0xff] %v3758_v17  ;;  %v1438_v29 = vmul.f32 %v3756_v8, %v3756_v8  ;;  %v1439_v24 = vmul.f32 %v3758_v17, %v3758_v17  ;;  %1372 = vmatmul.f32.vlgmr.msrb.gmra.mxu2 %v3756_v8  ;;  %1413 = vmatmul.f32.vlgmr.msrb.gmra.mxu3 %v3758_v17 }
 0x3bb   :  { %1470 = vmatmul.f32.vlgmr.msrb.gmra.mxu0 %v1438_v29  ;;  %1511 = vmatmul.f32.vlgmr.msrb.gmra.mxu1 %v1439_v24  ;;  %v1051_v29 = vpop.permute.xlu2 %1050 }
 0x3be   :  { %v1229_v14 = vpop.f32.mrf.mxu0  ;;  %v1270_v5 = vpop.f32.mrf.mxu1 }
 0x3bf   :  { %v3768_v28 = vadd.f32 %v1229_v14, %v1031_v12  ;;  %v3770_v48 = vadd.f32 %v1270_v5, %v1031_v12 }
 0x3c1   :  { %4223 = vst [vmem:[#allocation3_spill] sm:$0xff] %v3768_v28  ;;  %1375 = vmatmul.f32.gmra.mxu2 %v3768_v28  ;;  %1416 = vmatmul.f32.gmra.mxu3 %v3770_v48  ;;  %v1440_v46 = vmul.f32 %v3768_v28, %v3768_v28  ;;  %v1441_v36 = vmul.f32 %v3770_v48, %v3770_v48 }
 0x3c2   :  { %4224 = vst [vmem:[#allocation4_spill] sm:$0xff] %v3770_v48 }
 0x3c3   :  { %1473 = vmatmul.f32.gmra.mxu0 %v1440_v46  ;;  %1514 = vmatmul.f32.gmra.mxu1 %v1441_v36 }
 0x3c6   :  { %v1232_v49 = vpop.f32.mrf.mxu0  ;;  %v1273_v19 = vpop.f32.mrf.mxu1 }
 0x3c7   :  { %v3778_v50 = vadd.f32 %v1232_v49, %v1036_v0  ;;  %v3780_v53 = vadd.f32 %v1273_v19, %v1036_v0  ;;  %v1056_v0 = vpop.permute.xlu0 %1055 }
 0x3c9   :  { %4225 = vst [vmem:[#allocation5_spill] sm:$0xff] %v3778_v50  ;;  %1378 = vmatmul.f32.gmra.mxu2 %v3778_v50  ;;  %1419 = vmatmul.f32.gmra.mxu3 %v3780_v53  ;;  %v1442_v25 = vmul.f32 %v3778_v50, %v3778_v50  ;;  %v1443_v54 = vmul.f32 %v3780_v53, %v3780_v53 }
 0x3ca   :  { %4226 = vst [vmem:[#allocation6_spill] sm:$0xff] %v3780_v53 }
 0x3cb   :  { %1476 = vmatmul.f32.gmra.mxu0 %v1442_v25  ;;  %1517 = vmatmul.f32.gmra.mxu1 %v1443_v54 }
 0x3ce   :  { %v1235_v60 = vpop.f32.mrf.mxu0  ;;  %v1276_v61 = vpop.f32.mrf.mxu1 }
 0x3cf   :  { %v3788_v62 = vadd.f32 %v1235_v60, %v1041_v57  ;;  %v3790_v63 = vadd.f32 %v1276_v61, %v1041_v57  ;;  %v1061_v61 = vpop.permute.xlu1 %1060 }
 0x3d1   :  { %4227 = vst [vmem:[#allocation7_spill] sm:$0xff] %v3788_v62  ;;  %1381 = vmatmul.f32.gmra.mxu2 %v3788_v62  ;;  %1422 = vmatmul.f32.gmra.mxu3 %v3790_v63  ;;  %v1444_v9 = vmul.f32 %v3788_v62, %v3788_v62  ;;  %v1445_v10 = vmul.f32 %v3790_v63, %v3790_v63 }
 0x3d2   :  { %4228 = vst [vmem:[#allocation8_spill] sm:$0xff] %v3790_v63 }
 0x3d3   :  { %1479 = vmatmul.f32.gmra.mxu0 %v1444_v9  ;;  %1520 = vmatmul.f32.gmra.mxu1 %v1445_v10 }
 0x3d6   :  { %v1238_v58 = vpop.f32.mrf.mxu0  ;;  %v1279_v37 = vpop.f32.mrf.mxu1 }
 0x3d7   :  { %v3798_v34 = vadd.f32 %v1238_v58, %v1046_v15  ;;  %v3800_v43 = vadd.f32 %v1279_v37, %v1046_v15 }
 0x3d9   :  { %4229 = vst [vmem:[#allocation9_spill] sm:$0xff] %v3798_v34  ;;  %1384 = vmatmul.f32.gmra.mxu2 %v3798_v34  ;;  %1425 = vmatmul.f32.gmra.mxu3 %v3800_v43  ;;  %v1446_v3 = vmul.f32 %v3798_v34, %v3798_v34  ;;  %v1447_v4 = vmul.f32 %v3800_v43, %v3800_v43 }
 0x3da   :  { %4230 = vst [vmem:[#allocation10_spill] sm:$0xff] %v3800_v43 }
 0x3db   :  { %1482 = vmatmul.f32.gmra.mxu0 %v1446_v3  ;;  %1523 = vmatmul.f32.gmra.mxu1 %v1447_v4 }
 0x3de   :  { %v1241_v24 = vpop.f32.mrf.mxu0  ;;  %v1282_v12 = vpop.f32.mrf.mxu1 }
 0x3df   :  { %v3808_v14 = vadd.f32 %v1241_v24, %v1051_v29  ;;  %v3810_v5 = vadd.f32 %v1282_v12, %v1051_v29 }
 0x3e1   :  { %4231 = vst [vmem:[#allocation11_spill] sm:$0xff] %v3808_v14  ;;  %1387 = vmatmul.f32.gmra.mxu2 %v3808_v14  ;;  %1428 = vmatmul.f32.gmra.mxu3 %v3810_v5  ;;  %v1448_v46 = vmul.f32 %v3808_v14, %v3808_v14  ;;  %v1449_v36 = vmul.f32 %v3810_v5, %v3810_v5 }
 0x3e2   :  { %4232 = vst [vmem:[#allocation12_spill] sm:$0xff] %v3810_v5 }
 0x3e3   :  { %1485 = vmatmul.f32.gmra.mxu0 %v1448_v46  ;;  %1526 = vmatmul.f32.gmra.mxu1 %v1449_v36 }
 0x3e6   :  { %v1244_v49 = vpop.f32.mrf.mxu0  ;;  %v1285_v19 = vpop.f32.mrf.mxu1 }
 0x3e7   :  { %v3818_v25 = vadd.f32 %v1244_v49, %v1056_v0  ;;  %v3820_v54 = vadd.f32 %v1285_v19, %v1056_v0 }
 0x3e9   :  { %4233 = vst [vmem:[#allocation13_spill] sm:$0xff] %v3818_v25  ;;  %1390 = vmatmul.f32.gmra.mxu2 %v3818_v25  ;;  %1431 = vmatmul.f32.gmra.mxu3 %v3820_v54  ;;  %v1450_v57 = vmul.f32 %v3818_v25, %v3818_v25  ;;  %v1451_v60 = vmul.f32 %v3820_v54, %v3820_v54 }
 0x3ea   :  { %4234 = vst [vmem:[#allocation14_spill] sm:$0xff] %v3820_v54 }
 0x3eb   :  { %1488 = vmatmul.f32.gmra.mxu0 %v1450_v57  ;;  %1529 = vmatmul.f32.gmra.mxu1 %v1451_v60 }
 0x3ee   :  { %v1247_v9 = vpop.f32.mrf.mxu0  ;;  %v1288_v10 = vpop.f32.mrf.mxu1 }
 0x3ef   :  { %v3828_v15 = vadd.f32 %v1247_v9, %v1061_v61  ;;  %v3830_v58 = vadd.f32 %v1288_v10, %v1061_v61 }
 0x3f1   :  { %4235 = vst [vmem:[#allocation15_spill] sm:$0xff] %v3828_v15  ;;  %1393 = vmatmul.f32.gmra.mxu2 %v3828_v15  ;;  %1434 = vmatmul.f32.gmra.mxu3 %v3830_v58  ;;  %v1453_v37 = vmul.f32 %v3830_v58, %v3830_v58  ;;  %v1452_v3 = vmul.f32 %v3828_v15, %v3828_v15 }
 0x3f2   :  { %4236 = vst [vmem:[#allocation16_spill] sm:$0xff] %v3830_v58 }
 0x3f3   :  { %1532 = vmatmul.f32.gmra.mxu1 %v1453_v37 }
 0x3f9   :  { %1491 = vmatmul.f32.vlgmr.msra.gmra.mxu2 %v1452_v3 }
 0x438   :  { %v1471_v4 = vpop.f32.mrf.mxu0  ;;  %v1512_v29 = vpop.f32.mrf.mxu1 }
 0x439   :  { %v1513_v25 = vadd.f32 %v1512_v29, %v1471_v4 }
 0x43c   :  { %v1373_v24 = vpop.f32.mrf.mxu2  ;;  %v1414_v12 = vpop.f32.mrf.mxu3 }
 0x43d   :  { %v1415_v10 = vadd.f32 %v1414_v12, %v1373_v24  ;;  %v1545_v12 = vsel %vm575_vm2, %v1513_v25, 0.0 }
 0x43f   :  { %v1536_v5 = vsel %vm575_vm2, %v1415_v10, 0.0 }
 0x440   :  { %v1474_v46 = vpop.f32.mrf.mxu0  ;;  %v1515_v36 = vpop.f32.mrf.mxu1 }
 0x441   :  { %v1516_v54 = vadd.f32 %v1515_v36, %v1474_v46 }
 0x443   :  { %v1546_v62 = vsel %vm575_vm2, %v1516_v54, 0.0 }
 0x444   :  { %v1376_v0 = vpop.f32.mrf.mxu2  ;;  %v1417_v49 = vpop.f32.mrf.mxu3 }
 0x445   :  { %v1418_v9 = vadd.f32 %v1417_v49, %v1376_v0  ;;  %v1547_v49 = vadd.f32 %v1546_v62, %v1545_v12 }
 0x447   :  { %v1537_v15 = vsel %vm575_vm2, %v1418_v9, 0.0 }
 0x448   :  { %v1477_v19 = vpop.f32.mrf.mxu0  ;;  %v1518_v57 = vpop.f32.mrf.mxu1  ;;  %v1538_v34 = vadd.f32 %v1537_v15, %v1536_v5 }
 0x449   :  { %v1519_v29 = vadd.f32 %v1518_v57, %v1477_v19 }
 0x44a   :  { %v1539_v4 = vrot.slane %v1538_v34, 4 }
 0x44b   :  { %v1579_v15 = vsel %vm575_vm2, %v1519_v29, 0.0 }
 0x44c   :  { %v1379_v60 = vpop.f32.mrf.mxu2  ;;  %v1420_v61 = vpop.f32.mrf.mxu3  ;;  %v1540_v54 = vadd.f32 %v1539_v4, %v1538_v34 }
 0x44d   :  { %v1421_v3 = vadd.f32 %v1420_v61, %v1379_v60 }
 0x44f   :  { %v1570_v53 = vsel %vm575_vm2, %v1421_v3, 0.0 }
 0x450   :  { %v1480_v58 = vpop.f32.mrf.mxu0  ;;  %v1521_v37 = vpop.f32.mrf.mxu1 }
 0x451   :  { %v1522_v50 = vadd.f32 %v1521_v37, %v1480_v58  ;;  %v1541_v37 = vrot.slane %v1540_v54, 2 }
 0x453   :  { %v1580_v60 = vsel %vm575_vm2, %v1522_v50, 0.0  ;;  %v1542_v29 = vadd.f32 %v1541_v37, %v1540_v54 }
 0x454   :  { %v1382_v43 = vpop.f32.mrf.mxu2  ;;  %v1423_v14 = vpop.f32.mrf.mxu3  ;;  %v1581_v58 = vadd.f32 %v1580_v60, %v1579_v15 }
 0x455   :  { %v1424_v63 = vadd.f32 %v1423_v14, %v1382_v43  ;;  %v1548_v14 = vrot.slane %v1547_v49, 4 }
 0x456   :  { %v1582_v62 = vrot.slane %v1581_v58, 4 }
 0x457   :  { %v1571_v24 = vsel %vm575_vm2, %v1424_v63, 0.0 }
 0x458   :  { %v1572_v46 = vadd.f32 %v1571_v24, %v1570_v53  ;;  %v1483_v36 = vpop.f32.mrf.mxu0  ;;  %v1524_v0 = vpop.f32.mrf.mxu1  ;;  %v1549_v53 = vadd.f32 %v1548_v14, %v1547_v49 }
 0x459   :  { %v1525_v9 = vadd.f32 %v1524_v0, %v1483_v36  ;;  %v1583_v36 = vadd.f32 %v1582_v62, %v1581_v58 }
 0x45a   :  { %v1573_v61 = vrot.slane %v1572_v46, 4  ;;  %v1550_v4 = vrot.slane %v1549_v53, 2 }
 0x45b   :  { %v1613_v19 = vsel %vm575_vm2, %v1525_v9, 0.0 }
 0x45c   :  { %v1385_v5 = vpop.f32.mrf.mxu2  ;;  %v1426_v43 = vpop.f32.mrf.mxu3  ;;  %v1574_v63 = vadd.f32 %v1573_v61, %v1572_v46  ;;  %v1551_v9 = vadd.f32 %v1550_v4, %v1549_v53 }
 0x45d   :  { %v1427_v57 = vadd.f32 %v1426_v43, %v1385_v5  ;;  %v1543_v5 = vrot.slane %v1542_v29, 1  ;;  %v1584_v43 = vrot.slane %v1583_v36, 2 }
 0x45e   :  { %v1575_v24 = vrot.slane %v1574_v63, 2  ;;  %v1552_v54 = vrot.slane %v1551_v9, 1 }
 0x45f   :  { %v1604_v0 = vsel %vm575_vm2, %v1427_v57, 0.0  ;;  %v1585_v37 = vadd.f32 %v1584_v43, %v1583_v36 }
 0x460   :  { %v1486_v10 = vpop.f32.mrf.mxu0  ;;  %v1527_v25 = vpop.f32.mrf.mxu1  ;;  %v1576_v61 = vadd.f32 %v1575_v24, %v1574_v63 }
 0x461   :  { %v1528_v3 = vadd.f32 %v1527_v25, %v1486_v10  ;;  %v1586_v53 = vrot.slane %v1585_v37, 1 }
 0x463   :  { %v1614_v50 = vsel %vm575_vm2, %v1528_v3, 0.0  ;;  %v1577_v3 = vrot.slane %v1576_v61, 1 }
 0x464   :  { %v1615_v12 = vadd.f32 %v1614_v50, %v1613_v19  ;;  %v1388_v48 = vpop.f32.mrf.mxu2  ;;  %v1429_v34 = vpop.f32.mrf.mxu3 }
 0x465   :  { %v1430_v60 = vadd.f32 %v1429_v34, %v1388_v48  ;;  %v1544_v48 = vadd.f32 %v1543_v5, %v1542_v29  ;;  %v1578_v57 = vadd.f32 %v1577_v3, %v1576_v61  ;;  %v1682_v5 = vld.sshfl [vmem:[#allocation1 + $0x8] sm:$0xff pattern:$0x73625140] }
 0x466   :  { %v1616_v46 = vrot.slane %v1615_v12, 4  ;;  %2197 = vmatpush.msk.msra.mxu3 %vm698_vm3, %v1682_v5 }
 0x467   :  { %v1605_v49 = vsel %vm575_vm2, %v1430_v60, 0.0  ;;  %v1553_v60 = vadd.f32 %v1552_v54, %v1551_v9  ;;  %v3850_v63 = vmul.f32 0.0005, %v1544_v48 }
 0x468   :  { %v1617_v14 = vadd.f32 %v1616_v46, %v1615_v12  ;;  %v1606_v15 = vadd.f32 %v1605_v49, %v1604_v0  ;;  %v1530_v4 = vpop.f32.mrf.mxu1  ;;  %v3852_v0 = vmul.f32 0.0005, %v1578_v57  ;;  %1947 = vmatpush.msrb.mxu3 %v3506_v30 }
 0x469   :  { %v1555_v17 = vmul.f32 0.0005, %v1553_v60  ;;  %v1556_v29 = vmul.f32 %v3850_v63, %v3850_v63 }
 0x46a   :  { %v1618_v10 = vrot.slane %v1617_v14, 2  ;;  %v1607_v25 = vrot.slane %v1606_v15, 4  ;;  %v1590_v3 = vmul.f32 %v3852_v0, %v3852_v0  ;;  %1948 = vmatpush.msrb.mxu3 %v3518_v23 }
 0x46b   :  { %v1557_v48 = vsub.f32 %v1555_v17, %v1556_v29 }
 0x46c   :  { %v1608_v19 = vadd.f32 %v1607_v25, %v1606_v15  ;;  %v1391_v50 = vpop.f32.mrf.mxu2  ;;  %v1432_v28 = vpop.f32.mrf.mxu3  ;;  %v1619_v58 = vadd.f32 %v1618_v10, %v1617_v14  ;;  %v1587_v14 = vadd.f32 %v1586_v53, %v1585_v37  ;;  %1949 = vmatpush.msrb.mxu3 %v3530_v55 }
 0x46d   :  { %v1433_v46 = vadd.f32 %v1432_v28, %v1391_v50  ;;  %v1681_v28 = vld.sshfl [vmem:[#allocation1] sm:$0xff pattern:$0x73625140]  ;;  %v1489_v50 = vpop.f32.mrf.mxu0 }
 0x46e   :  { %v1609_v62 = vrot.slane %v1608_v19, 2  ;;  %v1620_v24 = vrot.slane %v1619_v58, 1  ;;  %2195 = vmatpush.msk.msrb.mxu2 %vm698_vm3, %v1681_v28  ;;  %v1589_v37 = vmul.f32 0.0005, %v1587_v14  ;;  %1950 = vmatpush.msrb.mxu3 %v3544_v13 }
 0x46f   :  { %v1638_v43 = vsel %vm575_vm2, %v1433_v46, 0.0  ;;  %v1558_v46 = vmax.f32 %v1557_v48, 0.0 }
 0x470   :  { %v1610_v34 = vadd.f32 %v1609_v62, %v1608_v19  ;;  %v1621_v36 = vadd.f32 %v1620_v24, %v1619_v58  ;;  %1906 = vmatpush.msra.mxu2 %v3501_v38  ;;  %v1591_v60 = vsub.f32 %v1589_v37, %v1590_v3  ;;  %v1533_v24 = vpop.f32.mrf.mxu1  ;;  %1951 = vmatpush.msrb.mxu3 %v3561_v21 }
 0x471   :  { %v3877_v55 = vadd.f32 1e-05, %v1558_v46 }
 0x472   :  { %v1611_v12 = vrot.slane %v1610_v34, 1  ;;  %v1623_v58 = vmul.f32 0.0005, %v1621_v36  ;;  %1907 = vmatpush.msra.mxu2 %v3511_v22  ;;  %v1592_v22 = vmax.f32 %v1591_v60, 0.0  ;;  %1952 = vmatpush.msrb.mxu3 %v3575_v59 }
 0x473   :  { %2362 = vrsqrt.f32 %v3877_v55  ;;  %vm1566_vm14 = vweird.f32 %v3877_v55 }
 0x474   :  { %v1612_v49 = vadd.f32 %v1611_v12, %v1610_v34  ;;  %v1394_v15 = vpop.f32.mrf.mxu2  ;;  %v1435_v25 = vpop.f32.mrf.mxu3  ;;  %v1531_v34 = vadd.f32 %v1530_v4, %v1489_v50  ;;  %1908 = vmatpush.msra.mxu2 %v3525_v18  ;;  %v3884_v29 = vadd.f32 1e-05, %v1592_v22  ;;  %1953 = vmatpush.msrb.mxu3 %v3589_v1 }
 0x475   :  { %v1436_v61 = vadd.f32 %v1435_v25, %v1394_v15 }
 0x476   :  { %v3856_v9 = vmul.f32 0.0005, %v1612_v49  ;;  %v1647_v23 = vsel %vm575_vm2, %v1531_v34, 0.0  ;;  %1909 = vmatpush.msra.mxu2 %v3539_v11  ;;  %1954 = vmatpush.msrb.mxu3 %v3603_v56  ;;  %vm1600_vm7 = vweird.f32 %v3884_v29 }
 0x477   :  { %v1639_v10 = vsel %vm575_vm2, %v1436_v61, 0.0 }
 0x478   :  { %v1624_v19 = vmul.f32 %v3856_v9, %v3856_v9  ;;  %v1640_v54 = vadd.f32 %v1639_v10, %v1638_v43  ;;  %1910 = vmatpush.msra.mxu2 %v3556_v16  ;;  %1955 = vmatpush.msrb.mxu3 %v3622_v35 }
 0x47a   :  { %v1641_v62 = vrot.slane %v1640_v54, 4  ;;  %v1625_v57 = vsub.f32 %v1623_v58, %v1624_v19  ;;  %1911 = vmatpush.msra.mxu2 %v3570_v52  ;;  %1956 = vmatpush.msrb.mxu3 %v3636_v47 }
 0x47c   :  { %v1642_v53 = vadd.f32 %v1641_v62, %v1640_v54  ;;  %v1492_v12 = vpop.f32.mrf.mxu2  ;;  %v1626_v38 = vmax.f32 %v1625_v57, 0.0  ;;  %1912 = vmatpush.msra.mxu2 %v3584_v44  ;;  %v2363_v44 = vpop.eup %2362  ;;  %1957 = vmatpush.msrb.mxu3 %v3650_v7 }
 0x47d   :  { %v1534_v30 = vadd.f32 %v1533_v24, %v1492_v12  ;;  %v1561_v61 = vmul.f32 %v2363_v44, %v3877_v55  ;;  %vm1567_vm13 = vweird.f32 %v2363_v44 }
 0x47e   :  { %v1643_v17 = vrot.slane %v1642_v53, 2  ;;  %v3881_v13 = vadd.f32 1e-05, %v1626_v38  ;;  %1913 = vmatpush.msra.mxu2 %v3598_v27  ;;  %1958 = vmatpush.msrb.mxu3 %v3669_v41  ;;  %vm1568_vm8 = vmor %vm1566_vm14, %vm1567_vm13  ;;  %vm4237_vm14 = vcmask 1046528  }
 0x47f   :  { %v1648_v4 = vsel %vm575_vm2, %v1534_v30, 0.0 }
 0x480   :  { %v1644_v49 = vadd.f32 %v1643_v17, %v1642_v53  ;;  %v1649_v15 = vadd.f32 %v1648_v4, %v1647_v23  ;;  %2364 = vrsqrt.f32 %v3881_v13  ;;  %1914 = vmatpush.msra.mxu2 %v3617_v31  ;;  %1959 = vmatpush.msrb.mxu3 %v3683_v45  ;;  %vm1634_vm15 = vweird.f32 %v3881_v13 }
 0x481   :  { %2366 = vrsqrt.f32 %v3884_v29 }
 0x482   :  { %v1645_v18 = vrot.slane %v1644_v49, 1  ;;  %v1650_v25 = vrot.slane %v1649_v15, 4  ;;  %1915 = vmatpush.msra.mxu2 %v3631_v32  ;;  %1960 = vmatpush.msrb.mxu3 %v3697_v20 }
 0x484   :  { %v1651_v11 = vadd.f32 %v1650_v25, %v1649_v15  ;;  %v1646_v21 = vadd.f32 %v1645_v18, %v1644_v49  ;;  %1916 = vmatpush.msra.mxu2 %v3645_v2  ;;  %v1562_v2 = vmul.f32 %v2363_v44, %v1561_v61  ;;  %1961 = vmatpush.msrb.mxu3 %v3711_v51  ;;  %v1291_v15 = vld [vmem:[%s4192_s7] sm:$0xff]  ;;  %v1292_v18 = vld [vmem:[%s4192_s7 + $0x8] sm:$0xff] }
 0x485   :  { %v1672_v51 = vsel %vm4214_vm4, %v3850_v63, %v3852_v0  ;;  %v4238_v25 = vld [vmem:[#allocation2_spill] sm:$0xff] }
 0x486   :  { %v1652_v36 = vrot.slane %v1651_v11, 2  ;;  %v1656_v52 = vmul.f32 0.0005, %v1646_v21  ;;  %v3898_v56 = vpop.eup %2364  ;;  %1917 = vmatpush.msra.mxu2 %v3664_v40  ;;  %v1563_v45 = vmul.f32 0.5, %v1562_v2  ;;  %1962 = vmatpush.msrb.mxu3 %v3736_v26  ;;  %v4240_v21 = vld [vmem:[#allocation4_spill] sm:$0xff] }
 0x487   :  { %v2367_v27 = vpop.eup %2366  ;;  %v1629_v31 = vmul.f32 %v3898_v56, %v3881_v13  ;;  %vm1635_vm6 = vweird.f32 %v3898_v56 }
 0x488   :  { %v1653_v16 = vadd.f32 %v1652_v36, %v1651_v11  ;;  %v1658_v35 = vmul.f32 %v1656_v52, %v1656_v52  ;;  %v1595_v47 = vmul.f32 %v2367_v27, %v3884_v29  ;;  %1918 = vmatpush.msra.mxu2 %v3678_v42  ;;  %v1564_v10 = vsub.f32 1.5, %v1563_v45  ;;  %vm1636_vm10 = vmor %vm1634_vm15, %vm1635_vm6  ;;  %v4239_v29 = vld [vmem:[#allocation3_spill] sm:$0xff]  ;;  %v1298_v45 = vld [vmem:[%s4192_s7 + $0x38] sm:$0xff] }
 0x489   :  { %v1630_v41 = vmul.f32 %v3898_v56, %v1629_v31  ;;  %vm1601_vm12 = vweird.f32 %v2367_v27  ;;  %v4244_v31 = vld [vmem:[#allocation8_spill] sm:$0xff] }
 0x48a   :  { %v1654_v59 = vrot.slane %v1653_v16, 1  ;;  %1919 = vmatpush.msra.mxu2 %v3692_v6  ;;  %v1596_v40 = vmul.f32 %v2367_v27, %v1595_v47  ;;  %v1565_v19 = vmul.f32 %v2363_v44, %v1564_v10  ;;  %vm1602_vm4 = vmor %vm1600_vm7, %vm1601_vm12  ;;  %v1311_v10 = vld [vmem:[%s4193_s8 + $0x20] sm:$0xff] }
 0x48b   :  { %v1631_v42 = vmul.f32 0.5, %v1630_v41  ;;  %v1296_v41 = vld [vmem:[%s4192_s7 + $0x28] sm:$0xff] }
 0x48c   :  { %v1655_v1 = vadd.f32 %v1654_v59, %v1653_v16  ;;  %1920 = vmatpush.msra.mxu2 %v3706_v39  ;;  %v1597_v43 = vmul.f32 0.5, %v1596_v40  ;;  %v1673_v39 = vsel %vm698_vm3, %v1672_v51, %v3856_v9  ;;  %v1569_v58 = vsel %vm1568_vm8, %v2363_v44, %v1565_v19  ;;  %v1307_v16 = vld [vmem:[%s4193_s8] sm:$0xff]  ;;  %v1294_v59 = vld [vmem:[%s4192_s7 + $0x18] sm:$0xff]  ;;  %v1297_v40 = vld [vmem:[%s4192_s7 + $0x30] sm:$0xff] }
 0x48d   :  { %v1632_v28 = vsub.f32 1.5, %v1631_v42  ;;  %v1674_v26 = vsel %vm4215_vm9, %v1673_v39, %v1656_v52  ;;  %v1308_v52 = vld [vmem:[%s4193_s8 + $0x8] sm:$0xff]  ;;  %v1295_v44 = vld [vmem:[%s4192_s7 + $0x20] sm:$0xff]  ;;  %v1309_v42 = vld [vmem:[%s4193_s8 + $0x10] sm:$0xff] }
 0x48e   :  { %v1657_v14 = vmul.f32 0.0005, %v1655_v1  ;;  %1921 = vmatpush.msra.mxu2 %v3731_v33  ;;  %v1598_v6 = vsub.f32 1.5, %v1597_v43  ;;  %v1675_v0 = vsel %vm101_vm0, %v1674_v26, %v1569_v58  ;;  %v4241_v1 = vld [vmem:[#allocation5_spill] sm:$0xff]  ;;  %v1310_v43 = vld [vmem:[%s4193_s8 + $0x18] sm:$0xff]  ;;  %v1312_v26 = vld [vmem:[%s4193_s8 + $0x28] sm:$0xff] }
 0x48f   :  { %v1633_v33 = vmul.f32 %v3898_v56, %v1632_v28 }
 0x490   :  { %v1659_v32 = vsub.f32 %v1657_v14, %v1658_v35  ;;  %v1599_v54 = vmul.f32 %v2367_v27, %v1598_v6  ;;  %v4243_v35 = vld [vmem:[#allocation7_spill] sm:$0xff] }
 0x491   :  { %v1637_v9 = vsel %vm1636_vm10, %v3898_v56, %v1633_v33  ;;  %v1313_v33 = vld [vmem:[%s4193_s8 + $0x30] sm:$0xff] }
 0x492   :  { %v1660_v7 = vmax.f32 %v1659_v32, 0.0  ;;  %v1603_v37 = vsel %vm1602_vm4, %v2367_v27, %v1599_v54  ;;  %v4242_v27 = vld [vmem:[#allocation6_spill] sm:$0xff]  ;;  %v1314_v54 = vld [vmem:[%s4193_s8 + $0x38] sm:$0xff] }
 0x493   :  { %v1676_v57 = vsel %vm703_vm1, %v1675_v0, %v1603_v37 }
 0x494   :  { %v1661_v5 = vadd.f32 1e-05, %v1660_v7  ;;  %v1677_v60 = vsel %vm705_vm5, %v1676_v57, %v1637_v9 }
 0x496   :  { %2368 = vrsqrt.f32 %v1661_v5  ;;  %vm1668_vm9 = vweird.f32 %v1661_v5 }
 0x49c   :  { %v2369_v20 = vpop.eup %2368 }
 0x49d   :  { %v1663_v3 = vmul.f32 %v2369_v20, %v1661_v5  ;;  %vm1669_vm3 = vweird.f32 %v2369_v20 }
 0x49e   :  { %vm1670_vm13 = vmor %vm1668_vm9, %vm1669_vm3 }
 0x49f   :  { %v1664_v50 = vmul.f32 %v2369_v20, %v1663_v3 }
 0x4a1   :  { %v1665_v48 = vmul.f32 0.5, %v1664_v50 }
 0x4a3   :  { %v1666_v63 = vsub.f32 1.5, %v1665_v48 }
 0x4a5   :  { %v1667_v62 = vmul.f32 %v2369_v20, %v1666_v63 }
 0x4a7   :  { %v1671_v34 = vsel %vm1670_vm13, %v2369_v20, %v1667_v62 }
 0x4a8   :  { %v1678_v24 = vsel %vm4237_vm14, %v1677_v60, %v1671_v34 }
 0x4a9   :  { %2196 = vmatmul.msk.f32.vlgmr.msrb.gmra.mxu2 %vm575_vm2, %v1678_v24  ;;  %2198 = vmatmul.msk.f32.vlgmr.msra.gmra.mxu3 %vm575_vm2, %v1678_v24 }
 0x52c   :  { %v3934_v53 = vpop.f32.mrf.mxu2  ;;  %v3936_v12 = vpop.f32.mrf.mxu3 }
 0x52d   :  { %v1730_v46 = vperm.slane %v3934_v53, 0  ;;  %v1736_v30 = vperm.slane %v3934_v53, 4  ;;  %v1731_v17 = vperm.slane %v3936_v12, 0  ;;  %v1737_v38 = vperm.slane %v3936_v12, 4 }
 0x52e   :  { %v1762_v23 = vperm.slane %v3934_v53, 1  ;;  %v1768_v4 = vperm.slane %v3934_v53, 5  ;;  %v1763_v22 = vperm.slane %v3936_v12, 1  ;;  %v1769_v49 = vperm.slane %v3936_v12, 5 }
 0x52f   :  { %v1732_v55 = vsub.f32 %v3756_v8, %v1730_v46  ;;  %v1733_v13 = vsub.f32 %v4238_v25, %v1731_v17  ;;  %v1734_v11 = vsub.f32 %v4239_v29, %v1730_v46  ;;  %v1735_v36 = vsub.f32 %v4240_v21, %v1731_v17  ;;  %v1293_v8 = vld [vmem:[%s4192_s7 + $0x10] sm:$0xff] }
 0x530   :  { %v1764_v56 = vsub.f32 %v4241_v1, %v1762_v23  ;;  %v1765_v61 = vsub.f32 %v4242_v27, %v1763_v22  ;;  %v1766_v14 = vsub.f32 %v4243_v35, %v1762_v23  ;;  %v1767_v32 = vsub.f32 %v4244_v31, %v1763_v22  ;;  %v4245_v1 = vld [vmem:[#allocation9_spill] sm:$0xff]  ;;  %v4246_v27 = vld [vmem:[#allocation11_spill] sm:$0xff]  ;;  %v1300_v31 = vld [vmem:[%s4192_s7 + $0x48] sm:$0xff] }
 0x531   :  { %v1738_v47 = vmul.f32 %v1736_v30, %v1732_v55  ;;  %v1739_v2 = vmul.f32 %v1737_v38, %v1733_v13  ;;  %v1740_v7 = vmul.f32 %v1736_v30, %v1734_v11  ;;  %v1741_v5 = vmul.f32 %v1737_v38, %v1735_v36 }
 0x532   :  { %v1770_v20 = vmul.f32 %v1768_v4, %v1764_v56  ;;  %v1771_v28 = vmul.f32 %v1769_v49, %v1765_v61  ;;  %v1772_v6 = vmul.f32 %v1768_v4, %v1766_v14  ;;  %v1773_v3 = vmul.f32 %v1769_v49, %v1767_v32  ;;  %v1299_v14 = vld [vmem:[%s4192_s7 + $0x40] sm:$0xff]  ;;  %v4247_v32 = vld [vmem:[#allocation10_spill] sm:$0xff] }
 0x533   :  { %v1742_v51 = vmul.f32 %v1738_v47, %v1291_v15  ;;  %v1743_v19 = vmul.f32 %v1739_v2, %v1292_v18  ;;  %v1744_v39 = vmul.f32 %v1740_v7, %v1293_v8  ;;  %v1745_v50 = vmul.f32 %v1741_v5, %v1294_v59  ;;  %v1301_v2 = vld [vmem:[%s4192_s7 + $0x50] sm:$0xff]  ;;  %v4249_v5 = vld [vmem:[#allocation13_spill] sm:$0xff] }
 0x534   :  { %v1774_v48 = vmul.f32 %v1770_v20, %v1295_v44  ;;  %v1775_v58 = vmul.f32 %v1771_v28, %v1296_v41  ;;  %v1776_v63 = vmul.f32 %v1772_v6, %v1297_v40  ;;  %v1777_v0 = vmul.f32 %v1773_v3, %v1298_v45  ;;  %v1315_v45 = vld [vmem:[%s4193_s8 + $0x40] sm:$0xff]  ;;  %v4250_v6 = vld [vmem:[#allocation15_spill] sm:$0xff] }
 0x535   :  { %v1746_v9 = vadd.f32 %v1742_v51, %v1307_v16  ;;  %v1747_v37 = vadd.f32 %v1743_v19, %v1308_v52  ;;  %v1748_v62 = vadd.f32 %v1744_v39, %v1309_v42  ;;  %v1749_v57 = vadd.f32 %v1745_v50, %v1310_v43  ;;  %v1303_v20 = vld [vmem:[%s4192_s7 + $0x60] sm:$0xff]  ;;  %v1316_v51 = vld [vmem:[%s4193_s8 + $0x48] sm:$0xff]  ;;  %v1317_v39 = vld [vmem:[%s4193_s8 + $0x50] sm:$0xff] }
 0x536   :  { %v1778_v34 = vadd.f32 %v1774_v48, %v1311_v10  ;;  %v1779_v60 = vadd.f32 %v1775_v58, %v1312_v26  ;;  %v1780_v24 = vadd.f32 %v1776_v63, %v1313_v33  ;;  %v1781_v46 = vadd.f32 %v1777_v0, %v1314_v54  ;;  %v1302_v10 = vld [vmem:[%s4192_s7 + $0x58] sm:$0xff]  ;;  %v4251_v33 = vld [vmem:[#allocation14_spill] sm:$0xff]  ;;  %v1305_v54 = vld [vmem:[%s4192_s7 + $0x70] sm:$0xff] }
 0x537   :  { %vm1750_vm0 = vcmp.gt.f32.partialorder %v1746_v9, 0.0  ;;  %v1754_v30 = vmul.f32 0.01, %v1746_v9  ;;  %vm1751_vm4 = vcmp.gt.f32.partialorder %v1747_v37, 0.0  ;;  %v1755_v17 = vmul.f32 0.01, %v1747_v37 }
 0x538   :  { %vm1752_vm9 = vcmp.gt.f32.partialorder %v1748_v62, 0.0  ;;  %v1756_v38 = vmul.f32 0.01, %v1748_v62  ;;  %vm1753_vm6 = vcmp.gt.f32.partialorder %v1749_v57, 0.0  ;;  %v1757_v23 = vmul.f32 0.01, %v1749_v57 }
 0x539   :  { %v1758_v4 = vsel %vm1750_vm0, %v1746_v9, %v1754_v30  ;;  %v1759_v22 = vsel %vm1751_vm4, %v1747_v37, %v1755_v17  ;;  %vm1782_vm8 = vcmp.gt.f32.partialorder %v1778_v34, 0.0  ;;  %v1786_v49 = vmul.f32 0.01, %v1778_v34  ;;  %v1318_v63 = vld [vmem:[%s4193_s8 + $0x58] sm:$0xff]  ;;  %v1319_v0 = vld [vmem:[%s4193_s8 + $0x60] sm:$0xff]  ;;  %v1304_v9 = vld [vmem:[%s4192_s7 + $0x68] sm:$0xff] }
 0x53a   :  { %1858 = vst [vmem:[%s4194_s15] sm:$0xff] %v1758_v4  ;;  %1922 = vmatmul.f32.vlgmr.msra.gmra.mxu2 %v1758_v4  ;;  %1963 = vmatmul.f32.vlgmr.msrb.gmra.mxu3 %v1759_v22  ;;  %v1760_v15 = vsel %vm1752_vm9, %v1748_v62, %v1756_v38  ;;  %v1761_v55 = vsel %vm1753_vm6, %v1749_v57, %v1757_v23  ;;  %vm1783_vm12 = vcmp.gt.f32.partialorder %v1779_v60, 0.0  ;;  %v1787_v18 = vmul.f32 0.01, %v1779_v60  ;;  %v4252_v17 = vld [vmem:[#allocation16_spill] sm:$0xff] }
 0x53b   :  { %1859 = vst [vmem:[%s4194_s15 + $0x8] sm:$0xff] %v1759_v22  ;;  %v4008_v25 = vsel %vm1782_vm8, %v1778_v34, %v1786_v49  ;;  %vm1784_vm15 = vcmp.gt.f32.partialorder %v1780_v24, 0.0  ;;  %v1788_v13 = vmul.f32 0.01, %v1780_v24  ;;  %vm1785_vm7 = vcmp.gt.f32.partialorder %v1781_v46, 0.0  ;;  %v1320_v49 = vld [vmem:[%s4193_s8 + $0x68] sm:$0xff] }
 0x53c   :  { %1860 = vst [vmem:[%s4194_s15 + $0x10] sm:$0xff] %v1760_v15  ;;  %v4013_v29 = vsel %vm1783_vm12, %v1779_v60, %v1787_v18  ;;  %v1789_v11 = vmul.f32 0.01, %v1781_v46  ;;  %v1794_v21 = vperm.slane %v3934_v53, 2  ;;  %v1800_v36 = vperm.slane %v3934_v53, 6 }
 0x53d   :  { %1861 = vst [vmem:[%s4194_s15 + $0x18] sm:$0xff] %v1761_v55  ;;  %v4020_v16 = vsel %vm1784_vm15, %v1780_v24, %v1788_v13  ;;  %v1795_v52 = vperm.slane %v3936_v12, 2  ;;  %v1801_v8 = vperm.slane %v3936_v12, 6  ;;  %v1826_v59 = vperm.slane %v3934_v53, 3 }
 0x53e   :  { %1862 = vst [vmem:[%s4194_s15 + $0x20] sm:$0xff] %v4008_v25  ;;  %v4029_v44 = vsel %vm1785_vm7, %v1781_v46, %v1789_v11  ;;  %v1796_v56 = vsub.f32 %v4245_v1, %v1794_v21  ;;  %v1798_v61 = vsub.f32 %v4246_v27, %v1794_v21  ;;  %v1832_v35 = vperm.slane %v3934_v53, 7  ;;  %v4248_v53 = vld [vmem:[#allocation12_spill] sm:$0xff] }
 0x53f   :  { %1863 = vst [vmem:[%s4194_s15 + $0x28] sm:$0xff] %v4013_v29  ;;  %v1797_v47 = vsub.f32 %v4247_v32, %v1795_v52  ;;  %v1799_v7 = vsub.f32 %v4248_v53, %v1795_v52  ;;  %v1828_v41 = vsub.f32 %v4249_v5, %v1826_v59  ;;  %v1827_v40 = vperm.slane %v3936_v12, 3  ;;  %v1322_v32 = vld [vmem:[%s4193_s8 + $0x78] sm:$0xff] }
 0x540   :  { %1864 = vst [vmem:[%s4194_s15 + $0x30] sm:$0xff] %v4020_v16  ;;  %v1802_v42 = vmul.f32 %v1800_v36, %v1796_v56  ;;  %v1804_v43 = vmul.f32 %v1800_v36, %v1798_v61  ;;  %v1833_v28 = vperm.slane %v3936_v12, 7  ;;  %v1830_v3 = vsub.f32 %v4250_v6, %v1826_v59  ;;  %v1306_v61 = vld [vmem:[%s4192_s7 + $0x78] sm:$0xff] }
 0x541   :  { %1865 = vst [vmem:[%s4194_s15 + $0x38] sm:$0xff] %v4029_v44  ;;  %v1803_v19 = vmul.f32 %v1801_v8, %v1797_v47  ;;  %v1805_v50 = vmul.f32 %v1801_v8, %v1799_v7  ;;  %v1834_v26 = vmul.f32 %v1832_v35, %v1828_v41  ;;  %v1829_v12 = vsub.f32 %v4251_v33, %v1827_v40 }
 0x542   :  { %1925 = vmatmul.f32.gmra.mxu2 %v1760_v15  ;;  %1966 = vmatmul.f32.gmra.mxu3 %v1761_v55  ;;  %v1806_v48 = vmul.f32 %v1802_v42, %v1299_v14  ;;  %v1808_v58 = vmul.f32 %v1804_v43, %v1301_v2  ;;  %v1836_v37 = vmul.f32 %v1832_v35, %v1830_v3  ;;  %v1321_v55 = vld [vmem:[%s4193_s8 + $0x70] sm:$0xff] }
 0x543   :  { %v1807_v62 = vmul.f32 %v1803_v19, %v1300_v31  ;;  %v1809_v57 = vmul.f32 %v1805_v50, %v1302_v10  ;;  %v1838_v34 = vmul.f32 %v1834_v26, %v1303_v20  ;;  %v1835_v60 = vmul.f32 %v1833_v28, %v1829_v12 }
 0x544   :  { %v1810_v24 = vadd.f32 %v1806_v48, %v1315_v45  ;;  %v1812_v46 = vadd.f32 %v1808_v58, %v1317_v39  ;;  %v1840_v30 = vmul.f32 %v1836_v37, %v1305_v54  ;;  %v1831_v38 = vsub.f32 %v4252_v17, %v1827_v40 }
 0x545   :  { %v1811_v23 = vadd.f32 %v1807_v62, %v1316_v51  ;;  %v1813_v4 = vadd.f32 %v1809_v57, %v1318_v63  ;;  %v1842_v22 = vadd.f32 %v1838_v34, %v1319_v0  ;;  %v1839_v15 = vmul.f32 %v1835_v60, %v1304_v9 }
 0x546   :  { %vm1814_vm10 = vcmp.gt.f32.partialorder %v1810_v24, 0.0  ;;  %v1818_v18 = vmul.f32 0.01, %v1810_v24  ;;  %vm1816_vm3 = vcmp.gt.f32.partialorder %v1812_v46, 0.0  ;;  %v1820_v13 = vmul.f32 0.01, %v1812_v46 }
 0x547   :  { %vm1815_vm13 = vcmp.gt.f32.partialorder %v1811_v23, 0.0  ;;  %v1819_v11 = vmul.f32 0.01, %v1811_v23  ;;  %vm1817_vm14 = vcmp.gt.f32.partialorder %v1813_v4, 0.0  ;;  %v1821_v21 = vmul.f32 0.01, %v1813_v4 }
 0x548   :  { %v1822_v36 = vsel %vm1814_vm10, %v1810_v24, %v1818_v18  ;;  %v1824_v52 = vsel %vm1816_vm3, %v1812_v46, %v1820_v13  ;;  %vm1846_vm0 = vcmp.gt.f32.partialorder %v1842_v22, 0.0  ;;  %v1850_v8 = vmul.f32 0.01, %v1842_v22  ;;  %v2005_v18 = vld [vmem:[%s4196_s13 + $0x8] sm:$0xff]  ;;  %v2006_v13 = vld [vmem:[%s4196_s13 + $0x10] sm:$0x3] }
 0x549   :  { %1866 = vst [vmem:[%s4194_s15 + $0x40] sm:$0xff] %v1822_v36  ;;  %v1823_v59 = vsel %vm1815_vm13, %v1811_v23, %v1819_v11  ;;  %v1825_v1 = vsel %vm1817_vm14, %v1813_v4, %v1821_v21  ;;  %v1843_v56 = vadd.f32 %v1839_v15, %v1320_v49  ;;  %v1844_v27 = vadd.f32 %v1840_v30, %v1321_v55  ;;  %v2004_v55 = vld [vmem:[%s4196_s13] sm:$0xff]  ;;  %v2013_v11 = vpop.permute.xlu1 %2012 }
 0x54a   :  { %1928 = vmatmul.f32.gmra.mxu2 %v4008_v25  ;;  %1969 = vmatmul.f32.gmra.mxu3 %v4013_v29  ;;  %1867 = vst [vmem:[%s4194_s15 + $0x48] sm:$0xff] %v1823_v59  ;;  %v1854_v35 = vsel %vm1846_vm0, %v1842_v22, %v1850_v8  ;;  %v1837_v14 = vmul.f32 %v1833_v28, %v1831_v38  ;;  %vm4253_vm14 = vcmask 1042432   ;;  %vm4254_vm0 = vcmask 1040384  }
 0x54b   :  { %1868 = vst [vmem:[%s4194_s15 + $0x50] sm:$0xff] %v1824_v52  ;;  %vm1847_vm4 = vcmp.gt.f32.partialorder %v1843_v56, 0.0  ;;  %v1851_v31 = vmul.f32 0.01, %v1843_v56  ;;  %vm1848_vm9 = vcmp.gt.f32.partialorder %v1844_v27, 0.0 }
 0x54c   :  { %1869 = vst [vmem:[%s4194_s15 + $0x58] sm:$0xff] %v1825_v1  ;;  %v1852_v25 = vmul.f32 0.01, %v1844_v27  ;;  %v1841_v29 = vmul.f32 %v1837_v14, %v1306_v61  ;;  %v2023_v14 = vpop.permute.xlu0 %2022 }
 0x54d   :  { %1870 = vst [vmem:[%s4194_s15 + $0x60] sm:$0xff] %v1854_v35  ;;  %v1855_v47 = vsel %vm1847_vm4, %v1843_v56, %v1851_v31  ;;  %v2018_v56 = vpop.permute.xlu2 %2017 }
 0x54e   :  { %1871 = vst [vmem:[%s4194_s15 + $0x68] sm:$0xff] %v1855_v47  ;;  %v1856_v2 = vsel %vm1848_vm9, %v1844_v27, %v1852_v25  ;;  %v1845_v53 = vadd.f32 %v1841_v29, %v1322_v32 }
 0x54f   :  { %1872 = vst [vmem:[%s4194_s15 + $0x70] sm:$0xff] %v1856_v2 }
 0x550   :  { %vm1849_vm6 = vcmp.gt.f32.partialorder %v1845_v53, 0.0  ;;  %v1853_v7 = vmul.f32 0.01, %v1845_v53 }
 0x552   :  { %1931 = vmatmul.f32.gmra.mxu2 %v4020_v16  ;;  %1972 = vmatmul.f32.gmra.mxu3 %v4029_v44  ;;  %v1857_v5 = vsel %vm1849_vm6, %v1845_v53, %v1853_v7 }
 0x553   :  { %1873 = vst [vmem:[%s4194_s15 + $0x78] sm:$0xff] %v1857_v5 }
 0x55a   :  { %1934 = vmatmul.f32.gmra.mxu2 %v1822_v36  ;;  %1975 = vmatmul.f32.gmra.mxu3 %v1823_v59 }
 0x562   :  { %1937 = vmatmul.f32.gmra.mxu2 %v1824_v52  ;;  %1978 = vmatmul.f32.gmra.mxu3 %v1825_v1 }
 0x56a   :  { %1940 = vmatmul.f32.gmra.mxu2 %v1854_v35  ;;  %1981 = vmatmul.f32.gmra.mxu3 %v1855_v47 }
 0x572   :  { %1943 = vmatmul.f32.gmra.mxu2 %v1856_v2  ;;  %1984 = vmatmul.f32.gmra.mxu3 %v1857_v5 }
 0x5bd   :  { %v1923_v41 = vpop.f32.mrf.mxu2  ;;  %v1964_v40 = vpop.f32.mrf.mxu3 }
 0x5be   :  { %v1965_v20 = vadd.f32 %v1964_v40, %v1923_v41 }
 0x5c0   :  { %v1988_v51 = vmul.f32 0.008, %v1965_v20 }
 0x5c5   :  { %v1926_v45 = vpop.f32.mrf.mxu2  ;;  %v1967_v42 = vpop.f32.mrf.mxu3 }
 0x5c6   :  { %v1968_v50 = vadd.f32 %v1967_v42, %v1926_v45 }
 0x5c8   :  { %v1989_v48 = vmul.f32 0.008, %v1968_v50 }
 0x5cd   :  { %v1929_v16 = vpop.f32.mrf.mxu2  ;;  %v1970_v43 = vpop.f32.mrf.mxu3 }
 0x5ce   :  { %v1971_v0 = vadd.f32 %v1970_v43, %v1929_v16 }
 0x5d0   :  { %v1990_v34 = vmul.f32 0.008, %v1971_v0 }
 0x5d5   :  { %v1932_v44 = vpop.f32.mrf.mxu2  ;;  %v1973_v10 = vpop.f32.mrf.mxu3 }
 0x5d6   :  { %v1974_v46 = vadd.f32 %v1973_v10, %v1932_v44 }
 0x5d8   :  { %v1991_v4 = vmul.f32 0.008, %v1974_v46 }
 0x5dd   :  { %v1935_v28 = vpop.f32.mrf.mxu2  ;;  %v1976_v6 = vpop.f32.mrf.mxu3 }
 0x5de   :  { %v1977_v3 = vadd.f32 %v1976_v6, %v1935_v28 }
 0x5e0   :  { %v1992_v19 = vmul.f32 0.008, %v1977_v3 }
 0x5e2   :  { %v1996_v39 = vadd.f32 %v1992_v19, %v1988_v51 }
 0x5e4   :  { %v2000_v26 = vmul.f32 0.5, %v1996_v39 }
 0x5e5   :  { %v1938_v33 = vpop.f32.mrf.mxu2  ;;  %v1979_v12 = vpop.f32.mrf.mxu3 }
 0x5e6   :  { %2137 = vst.msk [vmem:[%s4195_s16] sm:$0xff] %vm575_vm2, %v2000_v26  ;;  %v1980_v54 = vadd.f32 %v1979_v12, %v1938_v33 }
 0x5e8   :  { %v1993_v58 = vmul.f32 0.008, %v1980_v54 }
 0x5ea   :  { %v1997_v63 = vadd.f32 %v1993_v58, %v1989_v48 }
 0x5ec   :  { %v2001_v9 = vmul.f32 0.5, %v1997_v63 }
 0x5ed   :  { %v1941_v37 = vpop.f32.mrf.mxu2  ;;  %v1982_v62 = vpop.f32.mrf.mxu3 }
 0x5ee   :  { %2138 = vst.msk [vmem:[%s4195_s16 + $0x8] sm:$0xff] %vm575_vm2, %v2001_v9  ;;  %v1983_v57 = vadd.f32 %v1982_v62, %v1941_v37 }
 0x5f0   :  { %v1994_v60 = vmul.f32 0.008, %v1983_v57 }
 0x5f2   :  { %v1998_v24 = vadd.f32 %v1994_v60, %v1990_v34 }
 0x5f4   :  { %v2002_v30 = vmul.f32 0.5, %v1998_v24 }
 0x5f5   :  { %v1944_v17 = vpop.f32.mrf.mxu2  ;;  %v1985_v38 = vpop.f32.mrf.mxu3 }
 0x5f6   :  { %2139 = vst.msk [vmem:[%s4195_s16 + $0x10] sm:$0xff] %vm575_vm2, %v2002_v30  ;;  %v1986_v23 = vadd.f32 %v1985_v38, %v1944_v17 }
 0x5f8   :  { %v1995_v22 = vmul.f32 0.008, %v1986_v23 }
 0x5fa   :  { %v1999_v49 = vadd.f32 %v1995_v22, %v1991_v4 }
 0x5fc   :  { %v2003_v15 = vmul.f32 0.5, %v1999_v49 }
 0x5fe   :  { %2140 = vst.msk [vmem:[%s4195_s16 + $0x18] sm:$0xff] %vm575_vm2, %v2003_v15  ;;  %2038 = vmatpush.msra.mxu0 %v2003_v15 }
 0x600   :  { %2039 = vmatpush.msra.mxu0 %v2002_v30 }
 0x602   :  { %2040 = vmatpush.msra.mxu0 %v2001_v9 }
 0x604   :  { %2041 = vmatpush.msra.mxu0 %v2000_v26 }
 0x606   :  { %2042 = vmatpush.msra.mxu0 %v1995_v22 }
 0x608   :  { %2043 = vmatpush.msra.mxu0 %v1994_v60 }
 0x60a   :  { %2044 = vmatpush.msra.mxu0 %v1993_v58 }
 0x60c   :  { %2045 = vmatpush.msra.mxu0 %v1992_v19 }
 0x60e   :  { %2046 = vmatpush.msra.mxu0 %v1991_v4 }
 0x610   :  { %2047 = vmatpush.msra.mxu0 %v1990_v34 }
 0x612   :  { %2048 = vmatpush.msra.mxu0 %v1989_v48 }
 0x614   :  { %2049 = vmatpush.msra.mxu0 %v1988_v51 }
 0x615   :  { %2199 = vmatmul.msk.f32.vlgmr.msra.gmra.mxu0 %vm1184_vm11, %v2004_v55 }
 0x61d   :  { %2200 = vmatmul.msk.f32.gmra.mxu0 %vm1184_vm11, %v2005_v18 }
 0x625   :  { %2201 = vmatmul.msk.f32.gmra.mxu0 %vm1184_vm11, %v2006_v13 }
 0x692   :  { %v2051_v21 = vpop.f32.mrf.mxu0 }
 0x693   :  { %v2052_v36 = vadd.f32 %v2051_v21, %v2013_v11 }
 0x695   :  { %v2060_v52 = vmul.f32 %v2052_v36, %v2052_v36 }
 0x697   :  { %v2062_v8 = vrot.slane %v2060_v52, 3 }
 0x699   :  { %v4158_v59 = vadd.f32 %v2062_v8, %v2060_v52 }
 0x69a   :  { %v2054_v1 = vpop.f32.mrf.mxu0 }
 0x69b   :  { %v2055_v27 = vadd.f32 %v2054_v1, %v2018_v56  ;;  %2370 = vrsqrt.f32 %v4158_v59  ;;  %vm2072_vm7 = vcmp.eq.f32.partialorder %v4158_v59, inf  ;;  %v2075_v22 = vand.u32 2147483648, %v4158_v59 }
 0x69c   :  { %vm2074_vm13 = vcmp.eq.f32.partialorder %v4158_v59, 0.0 }
 0x69d   :  { %v2077_v61 = vmul.f32 %v2055_v27, %v2055_v27 }
 0x69f   :  { %v2079_v35 = vrot.slane %v2077_v61, 3 }
 0x6a1   :  { %v2081_v31 = vadd.f32 %v2079_v35, %v2060_v52  ;;  %v2082_v32 = vadd.f32 %v2079_v35, %v2077_v61  ;;  %v2371_v47 = vpop.eup %2370 }
 0x6a2   :  { %v2057_v25 = vpop.f32.mrf.mxu0  ;;  %v2066_v53 = vmul.f32 %v2371_v47, %v4158_v59 }
 0x6a3   :  { %v2058_v29 = vadd.f32 %v2057_v25, %v2023_v14  ;;  %2372 = vrsqrt.f32 %v2081_v31  ;;  %vm2090_vm11 = vcmp.eq.f32.partialorder %v2081_v31, inf  ;;  %v2093_v54 = vand.u32 2147483648, %v2081_v31 }
 0x6a4   :  { %2374 = vrsqrt.f32 %v2082_v32  ;;  %v2067_v45 = vmul.f32 %v2371_v47, %v2066_v53  ;;  %vm2102_vm8 = vcmp.eq.f32.partialorder %v2082_v32, inf  ;;  %v2105_v9 = vand.u32 2147483648, %v2082_v32 }
 0x6a5   :  { %v2107_v2 = vmul.f32 %v2058_v29, %v2058_v29  ;;  %vm2092_vm12 = vcmp.eq.f32.partialorder %v2081_v31, 0.0  ;;  %vm2104_vm15 = vcmp.eq.f32.partialorder %v2082_v32, 0.0 }
 0x6a6   :  { %v2068_v20 = vmul.f32 0.5, %v2067_v45 }
 0x6a7   :  { %v2109_v7 = vrot.slane %v2107_v2, 3 }
 0x6a8   :  { %v2069_v39 = vsub.f32 1.5, %v2068_v20 }
 0x6a9   :  { %v2373_v5 = vpop.eup %2372  ;;  %v2110_v41 = vsel %vm703_vm1, %v2079_v35, %v2109_v7 }
 0x6aa   :  { %v2375_v40 = vpop.eup %2374  ;;  %v2084_v42 = vmul.f32 %v2373_v5, %v2081_v31  ;;  %v2112_v16 = vadd.f32 %v2110_v41, %v2077_v61  ;;  %v2070_v63 = vmul.f32 %v2371_v47, %v2069_v39 }
 0x6ab   :  { %v2096_v43 = vmul.f32 %v2375_v40, %v2082_v32 }
 0x6ac   :  { %v2085_v44 = vmul.f32 %v2373_v5, %v2084_v42  ;;  %2376 = vrsqrt.f32 %v2112_v16  ;;  %v2071_v24 = vmul.f32 %v2070_v63, %v4158_v59  ;;  %vm2120_vm10 = vcmp.eq.f32.partialorder %v2112_v16, inf }
 0x6ad   :  { %v2097_v10 = vmul.f32 %v2375_v40, %v2096_v43  ;;  %v2123_v4 = vand.u32 2147483648, %v2112_v16  ;;  %vm2122_vm3 = vcmp.eq.f32.partialorder %v2112_v16, 0.0 }
 0x6ae   :  { %v2086_v28 = vmul.f32 0.5, %v2085_v44  ;;  %v2073_v23 = vsel %vm2072_vm7, %v4158_v59, %v2071_v24 }
 0x6af   :  { %v2098_v6 = vmul.f32 0.5, %v2097_v10  ;;  %v2076_v18 = vsel %vm2074_vm13, %v2075_v22, %v2073_v23 }
 0x6b0   :  { %v2087_v3 = vsub.f32 1.5, %v2086_v28 }
 0x6b1   :  { %v2099_v51 = vsub.f32 1.5, %v2098_v6 }
 0x6b2   :  { %v2377_v19 = vpop.eup %2376  ;;  %v2088_v50 = vmul.f32 %v2373_v5, %v2087_v3 }
 0x6b3   :  { %v2100_v26 = vmul.f32 %v2375_v40, %v2099_v51  ;;  %v2114_v33 = vmul.f32 %v2377_v19, %v2112_v16 }
 0x6b4   :  { %v2089_v12 = vmul.f32 %v2088_v50, %v2081_v31 }
 0x6b5   :  { %v2101_v48 = vmul.f32 %v2100_v26, %v2082_v32  ;;  %v2115_v58 = vmul.f32 %v2377_v19, %v2114_v33 }
 0x6b6   :  { %v2091_v0 = vsel %vm2090_vm11, %v2081_v31, %v2089_v12 }
 0x6b7   :  { %v2103_v37 = vsel %vm2102_vm8, %v2082_v32, %v2101_v48  ;;  %v2116_v62 = vmul.f32 0.5, %v2115_v58  ;;  %v2094_v57 = vsel %vm2092_vm12, %v2093_v54, %v2091_v0 }
 0x6b8   :  { %v2106_v34 = vsel %vm2104_vm15, %v2105_v9, %v2103_v37  ;;  %v2127_v46 = vrot.slane %v2094_v57, 3 }
 0x6b9   :  { %v2117_v60 = vsub.f32 1.5, %v2116_v62  ;;  %v2128_v30 = vrot.slane %v2106_v34, 3 }
 0x6bb   :  { %v2118_v17 = vmul.f32 %v2377_v19, %v2117_v60  ;;  %v2129_v49 = vsel %vm703_vm1, %v2127_v46, %v2128_v30 }
 0x6bc   :  { %v2134_v11 = vsel %vm4253_vm14, %v2076_v18, %v2129_v49 }
 0x6bd   :  { %v2119_v38 = vmul.f32 %v2118_v17, %v2112_v16 }
 0x6bf   :  { %v2121_v15 = vsel %vm2120_vm10, %v2112_v16, %v2119_v38 }
 0x6c0   :  { %v2124_v55 = vsel %vm2122_vm3, %v2123_v4, %v2121_v15 }
 0x6c1   :  { %v2132_v13 = vrot.slane %v2124_v55, 6 }
 0x6c3   :  { %v2135_v21 = vsel %vm705_vm5, %v2134_v11, %v2132_v13  ;;  %v2136_v36 = vsel %vm4254_vm0, %v2132_v13, 0.0 }
 0x6c4   :  { %2141 = vst.msk [vmem:[%s4195_s16 + $0x20] sm:$0xff] %vm575_vm2, %v2135_v21 }
 0x6c5   :  { %2142 = vst.msk [vmem:[%s4195_s16 + $0x28] sm:$0xff] %vm575_vm2, %v2136_v36 }

</bundles_post_ra>
